<compile_context>
chip_gen: v7x
topology: tpu7x:2x2x1
jax: 0.10.0
libtpu: 0.0.40
codegen_flags: <defaults>
</compile_context>

<pallas_src>
import functools

import jax
import jax.numpy as jnp
from jax import lax
from jax.experimental import pallas as pl
from jax.experimental.pallas import tpu as pltpu


SMALL_N = 256                      # <= this many nodes -> single-block kernel
_VMEM_LIMIT = 48 * 1024 * 1024     # < v7x 64 MiB physical, > 16/32 MiB defaults


def _vmem_spec():
    return pl.BlockSpec(memory_space=pltpu.MemorySpace.VMEM)


def _sigmoid1(x):
    # Single EUP transcendental (tanh) instead of exp + divide.
    return 0.5 * (jnp.tanh(0.5 * x) + 1.0)


# ---------------------------------------------------------------------------
# Small-N path: everything in one VMEM-resident block (no grid).
# ---------------------------------------------------------------------------
def fused_rggc_small_kernel(x_ref, adj_ref, w_ref, pb_ref, cv_ref,
                            w1_ref, hv_ref, w2_ref, b2_ref, out_ref):
    x = x_ref[...]                      # [N, H] (layer-1 input zero-padded to H)
    adj = adj_ref[...]                  # [N, N] dense adjacency A[target, source]
    n_layers, hidden, _ = w_ref.shape
    n_nodes = x.shape[0]

    h = x
    for l in range(n_layers):           # static unroll over the 5 layers
        # One lane-dense projection: [N,H] @ [H,4H] -> K|Q|V|skip (fused biases,
        # conv bias folded into the skip column at pack time).
        proj = jnp.dot(h, w_ref[l], preferred_element_type=jnp.float32) + pb_ref[l]
        k = proj[:, 0 * hidden:1 * hidden]       # lin_key(x_target)
        q = proj[:, 1 * hidden:2 * hidden]       # lin_query(x_source)
        v = proj[:, 2 * hidden:3 * hidden]       # lin_value(x_source)
        skip = proj[:, 3 * hidden:4 * hidden]    # lin_skip(x_target) + conv bias

        # Vectorized gated sum-aggregation over SOURCE nodes (axis=1).
        gate = _sigmoid1(k[:, None, :] + q[None, :, :])                 # [N,N,H]
        msg = jnp.sum(adj[:, :, None] * gate * v[None, :, :], axis=1)   # [N,H]

        row = jnp.maximum(msg + skip, 0.0)       # conv output -> F.relu
        cv = cv_ref[l]                           # [2, H]: bn scale, bn shift
        row = row * cv[0:1, :] + cv[1:2, :]      # BatchNorm1d (eval, folded)
        h = row if l == 0 else row + h           # residual for layers 2..5

    # global_mean_pool with batch == zeros -> mean over all nodes (one graph)
    g = jnp.sum(h, axis=0, keepdims=True) * (1.0 / n_nodes)             # [1, H]

    # regression head: Linear -> ReLU -> BN(eval) -> Linear
    z = jnp.dot(g, w1_ref[...], preferred_element_type=jnp.float32) + hv_ref[0:1, :]
    z = jnp.maximum(z, 0.0)
    z = z * hv_ref[1:2, :] + hv_ref[2:3, :]
    out_ref[...] = jnp.dot(z, w2_ref[...],
                           preferred_element_type=jnp.float32) + b2_ref[...]


# ---------------------------------------------------------------------------
# Large-N path: grid = (layer, target-row tile).  adj streamed per tile,
# gate temp bounded to [TQ, H, N], activations ping-pong in VMEM scratch.
# ---------------------------------------------------------------------------
def fused_rggc_tiled_kernel(n_real, x_ref, adj_ref, w_ks_ref, w_qvT_ref,
                            b_ks_ref, b_qvT_ref, cv_ref,
                            w1_ref, hv_ref, w2_ref, b2_ref, out_ref,
                            h_ref, qT_ref, vT_ref, k_ref, s_ref):
    l = pl.program_id(0)                 # layer index (outer, sequential)
    t = pl.program_id(1)                 # target-row tile index
    n_layers = pl.num_programs(0)
    n_tiles = pl.num_programs(1)
    hidden = w1_ref.shape[0]
    n_pad = h_ref.shape[1]
    tq = adj_ref.shape[0]
    src = l % 2                          # ping-pong activation slot (read)
    dst = (l + 1) % 2                    # ping-pong activation slot (write)

    # First grid step: stage the zero-padded node features as layer-1 input.
    @pl.when(jnp.logical_and(l == 0, t == 0))
    def _():
        h_ref[0] = x_ref[...]

    # Once per layer: projections for ALL nodes.  K/skip stay node-major
    # (sliced per target tile along the sublane axis); Q/V are produced
    # directly in [H, N] form (source nodes on the 128-lane axis) so the heavy
    # gate math below runs lane-dense.
    @pl.when(t == 0)
    def _():
        h_src = h_ref[src]                                               # [Np,H]
        ks = jnp.dot(h_src, w_ks_ref[0],
                     preferred_element_type=jnp.float32) + b_ks_ref[0]   # [Np,2H]
        k_ref[...] = ks[:, 0:hidden]               # lin_key(x_target)
        s_ref[...] = ks[:, hidden:2 * hidden]      # lin_skip(x_target) + conv bias
        qv = jnp.dot(w_qvT_ref[0], h_src.T,
                     preferred_element_type=jnp.float32) + b_qvT_ref[0]  # [2H,Np]
        qT_ref[...] = qv[0:hidden, :]              # lin_query(x_source)^T
        vT_ref[...] = qv[hidden:2 * hidden, :]     # lin_value(x_source)^T

    # Per target-row tile: gated sum-aggregation, sources on the lane axis.
    row0 = pl.multiple_of(t * tq, tq)
    k_tile = k_ref[pl.ds(row0, tq), :]                                    # [TQ,H]
    skip_tile = s_ref[pl.ds(row0, tq), :]                                 # [TQ,H]
    adj_tile = adj_ref[...]                                               # [TQ,Np]
    qT = qT_ref[...]                                                      # [H,Np]
    vT = vT_ref[...]                                                      # [H,Np]

    gate = _sigmoid1(k_tile[:, :, None] + qT[None, :, :])                 # [TQ,H,Np]
    msg = jnp.sum(adj_tile[:, None, :] * gate * vT[None, :, :], axis=-1)  # [TQ,H]

    row = jnp.maximum(msg + skip_tile, 0.0)                  # conv out -> relu
    cv = cv_ref[0]                                           # [2,H] scale, shift
    row = row * cv[0:1, :] + cv[1:2, :]                      # BatchNorm1d (eval)

    h_dst = h_ref.at[dst]
    h_prev = h_ref.at[src]

    @pl.when(l == 0)
    def _():
        h_dst[pl.ds(row0, tq), :] = row

    @pl.when(l > 0)
    def _():
        h_dst[pl.ds(row0, tq), :] = row + h_prev[pl.ds(row0, tq), :]   # residual

    # Last layer, last tile: masked mean-pool over the real nodes + MLP head.
    @pl.when(jnp.logical_and(l == n_layers - 1, t == n_tiles - 1))
    def _():
        h_fin = h_ref[dst]                                               # [Np,H]
        node = lax.broadcasted_iota(jnp.int32, (n_pad, hidden), 0)
        valid = (node < n_real).astype(jnp.float32)        # mask padded rows
        g = jnp.sum(h_fin * valid, axis=0, keepdims=True) * (1.0 / n_real)
        z = jnp.dot(g, w1_ref[...],
                    preferred_element_type=jnp.float32) + hv_ref[0:1, :]
        z = jnp.maximum(z, 0.0)
        z = z * hv_ref[1:2, :] + hv_ref[2:3, :]
        out_ref[...] = jnp.dot(z, w2_ref[...],
                               preferred_element_type=jnp.float32) + b2_ref[...]


# ---------------------------------------------------------------------------
# Parameter packing: concat/stack per-layer weights into a few lane-dense
# tensors.  Conv bias is folded into the (otherwise zero) skip bias column.
# ---------------------------------------------------------------------------
def pack_params(params):
    hidden = params["layers"][0]["wk"].shape[1]
    w_list, pb_list, cv_list = [], [], []
    for p in params["layers"]:
        cin = p["wk"].shape[0]
        w_fused = jnp.concatenate([p["wk"], p["wq"], p["wv"], p["ws"]], axis=1)
        if cin < hidden:                 # zero-pad layer-1 rows so layers stack
            w_fused = jnp.pad(w_fused, ((0, hidden - cin), (0, 0)))
        w_list.append(w_fused)
        # conv bias folded into the skip-bias column (lin_skip itself has none)
        pb_list.append(jnp.concatenate([p["bk"], p["bq"], p["bv"], p["cb"]], axis=1))
        cv_list.append(jnp.concatenate([p["bn_scale"], p["bn_shift"]], axis=0))
    w_all = jnp.stack(w_list)            # [5, H, 4H]
    pb_all = jnp.stack(pb_list)          # [5, 1, 4H]
    cv_all = jnp.stack(cv_list)          # [5, 2, H]
    hd = params["head"]
    hv = jnp.concatenate([hd["b1"], hd["bn_scale"], hd["bn_shift"]], axis=0)  # [3,H/2]
    return w_all, pb_all, cv_all, hd["w1"], hv, hd["w2"], hd["b2"]


def _pick_tq(n, hidden, target_bytes=4 << 20):
    # Gate temporary per tile is TQ * hidden * n * 4 bytes; aim for ~4 MiB.
    tq = target_bytes // max(1, 4 * hidden * n)
    return int(max(8, min(128, (tq // 8) * 8)))


# ---------------------------------------------------------------------------
# Full forward (eval mode): returns `out` of shape [num_graphs] (= [1]).
# ---------------------------------------------------------------------------
def simple_rggc_forward(x, adj, params):
    hidden = params["layers"][0]["wk"].shape[1]
    h2 = params["head"]["w1"].shape[1]
    n, in_ch = x.shape
    assert hidden >= in_ch, "input channels must fit the padded hidden width"
    n_layers = len(params["layers"])

    w_all, pb_all, cv_all, w1, hv, w2, b2 = pack_params(params)
    x_pad = jnp.pad(x.astype(jnp.float32), ((0, 0), (0, hidden - in_ch)))
    adj = adj.astype(jnp.float32)

    if n <= SMALL_N:
        # Launch-overhead-bound regime: one block, everything VMEM-resident.
        args = (x_pad, adj, w_all, pb_all, cv_all, w1, hv, w2, b2)
        out = pl.pallas_call(
            fused_rggc_small_kernel,
            out_shape=jax.ShapeDtypeStruct((1, 1), jnp.float32),
            in_specs=[_vmem_spec() for _ in args],
            out_specs=_vmem_spec(),
            compiler_params=pltpu.CompilerParams(vmem_limit_bytes=_VMEM_LIMIT),
        )(*args)
        return out[:, 0]                                   # .squeeze(-1)

    # ---- large graphs: grid over (layer, target-row tile) ------------------
    tq = _pick_tq(n, hidden)
    n_pad = ((n + tq - 1) // tq) * tq
    n_tiles = n_pad // tq
    x_pad = jnp.pad(x_pad, ((0, n_pad - n), (0, 0)))
    adj_pad = jnp.pad(adj, ((0, n_pad - n), (0, n_pad - n)))

    # Split / transpose the packed projection weights for the tiled layout:
    #   K|skip consumed node-major, Q|V consumed transposed (sources on lanes).
    w_k = w_all[:, :, 0 * hidden:1 * hidden]
    w_q = w_all[:, :, 1 * hidden:2 * hidden]
    w_v = w_all[:, :, 2 * hidden:3 * hidden]
    w_s = w_all[:, :, 3 * hidden:4 * hidden]
    w_ks = jnp.concatenate([w_k, w_s], axis=2)                     # [5, H, 2H]
    w_qvT = jnp.concatenate([jnp.swapaxes(w_q, 1, 2),
                             jnp.swapaxes(w_v, 1, 2)], axis=1)     # [5, 2H, H]
    b_k = pb_all[:, :, 0 * hidden:1 * hidden]
    b_q = pb_all[:, :, 1 * hidden:2 * hidden]
    b_v = pb_all[:, :, 2 * hidden:3 * hidden]
    b_s = pb_all[:, :, 3 * hidden:4 * hidden]
    b_ks = jnp.concatenate([b_k, b_s], axis=2)                     # [5, 1, 2H]
    b_qvT = jnp.concatenate([jnp.swapaxes(b_q, 1, 2),
                             jnp.swapaxes(b_v, 1, 2)], axis=1)     # [5, 2H, 1]

    kernel = functools.partial(fused_rggc_tiled_kernel, n)
    in_specs = [
        pl.BlockSpec((n_pad, hidden), lambda l, t: (0, 0)),             # x
        pl.BlockSpec((tq, n_pad), lambda l, t: (t, 0)),                 # adj slab
        pl.BlockSpec((1, hidden, 2 * hidden), lambda l, t: (l, 0, 0)),  # Wk|Ws
        pl.BlockSpec((1, 2 * hidden, hidden), lambda l, t: (l, 0, 0)),  # (Wq|Wv)^T
        pl.BlockSpec((1, 1, 2 * hidden), lambda l, t: (l, 0, 0)),       # bk|cb
        pl.BlockSpec((1, 2 * hidden, 1), lambda l, t: (l, 0, 0)),       # (bq|bv)^T
        pl.BlockSpec((1, 2, hidden), lambda l, t: (l, 0, 0)),           # bn scale/shift
        pl.BlockSpec((hidden, h2), lambda l, t: (0, 0)),                # head w1
        pl.BlockSpec((3, h2), lambda l, t: (0, 0)),                     # head b1/bn
        pl.BlockSpec((h2, 1), lambda l, t: (0, 0)),                     # head w2
        pl.BlockSpec((1, 1), lambda l, t: (0, 0)),                      # head b2
    ]
    out = pl.pallas_call(
        kernel,
        out_shape=jax.ShapeDtypeStruct((1, 1), jnp.float32),
        grid_spec=pltpu.PrefetchScalarGridSpec(
            num_scalar_prefetch=0,
            grid=(n_layers, n_tiles),
            in_specs=in_specs,
            out_specs=pl.BlockSpec((1, 1), lambda l, t: (0, 0)),
            scratch_shapes=[
                pltpu.VMEM((2, n_pad, hidden), jnp.float32),   # h ping-pong
                pltpu.VMEM((hidden, n_pad), jnp.float32),      # Q^T
                pltpu.VMEM((hidden, n_pad), jnp.float32),      # V^T
                pltpu.VMEM((n_pad, hidden), jnp.float32),      # K
                pltpu.VMEM((n_pad, hidden), jnp.float32),      # skip (+cb)
            ]),
        compiler_params=pltpu.CompilerParams(
            dimension_semantics=("arbitrary", "arbitrary"),
            vmem_limit_bytes=_VMEM_LIMIT),
    )(x_pad, adj_pad, w_ks, w_qvT, b_ks, b_qvT, cv_all, w1, hv, w2, b2)
    return out[:, 0]


# ---------------------------------------------------------------------------
# Pure-JAX reference (unfused, unpacked) for a sanity check.
# ---------------------------------------------------------------------------
def reference_forward(x, adj, params):
    h = x.astype(jnp.float32)
    adj = adj.astype(jnp.float32)
    for l, p in enumerate(params["layers"]):
        K = h @ p["wk"] + p["bk"]
        Q = h @ p["wq"] + p["bq"]
        V = h @ p["wv"] + p["bv"]
        skip = h @ p["ws"]
        gate = jax.nn.sigmoid(K[:, None, :] + Q[None, :, :])
        msg = jnp.sum(adj[:, :, None] * gate * V[None, :, :], axis=1)
        row = jnp.maximum(msg + skip + p["cb"], 0.0)
        row = row * p["bn_scale"] + p["bn_shift"]
        h = row if l == 0 else row + h
    g = jnp.mean(h, axis=0, keepdims=True)
    hd = params["head"]
    z = jnp.maximum(g @ hd["w1"] + hd["b1"], 0.0)
    z = z * hd["bn_scale"] + hd["bn_shift"]
    return (z @ hd["w2"] + hd["b2"])[:, 0]


# ---------------------------------------------------------------------------
# Parameter construction (deterministic, in-script)
# ---------------------------------------------------------------------------
def _bn_affine(key, h, eps=1e-5):
    k1, k2, k3, k4 = jax.random.split(key, 4)
    weight = 1.0 + 0.1 * jax.random.normal(k1, (1, h), jnp.float32)
    bias = 0.1 * jax.random.normal(k2, (1, h), jnp.float32)
    running_mean = 0.05 * jax.random.normal(k3, (1, h), jnp.float32)
    running_var = 1.0 + 0.1 * jax.random.uniform(k4, (1, h), jnp.float32)
    scale = weight / jnp.sqrt(running_var + eps)
    shift = bias - running_mean * scale
    return scale, shift


def init_params(key, in_channels, hidden_channels):
    layers = []
    cin = in_channels
    for _ in range(5):
        key, kk, kq, kv, ks, kb, kbn = jax.random.split(key, 7)
        scale, shift = _bn_affine(kbn, hidden_channels)
        layers.append(dict(
            wk=0.2 * jax.random.normal(kk, (cin, hidden_channels), jnp.float32),
            bk=jnp.zeros((1, hidden_channels), jnp.float32),
            wq=0.2 * jax.random.normal(kq, (cin, hidden_channels), jnp.float32),
            bq=jnp.zeros((1, hidden_channels), jnp.float32),
            wv=0.2 * jax.random.normal(kv, (cin, hidden_channels), jnp.float32),
            bv=jnp.zeros((1, hidden_channels), jnp.float32),
            ws=0.2 * jax.random.normal(ks, (cin, hidden_channels), jnp.float32),
            cb=0.05 * jax.random.normal(kb, (1, hidden_channels), jnp.float32),
            bn_scale=scale, bn_shift=shift,
        ))
        cin = hidden_channels

    h2 = hidden_channels // 2
    key, k1, k2, kb1, kb2, kbn = jax.random.split(key, 6)
    scale, shift = _bn_affine(kbn, h2)
    head = dict(
        w1=0.2 * jax.random.normal(k1, (hidden_channels, h2), jnp.float32),
        b1=0.05 * jax.random.normal(kb1, (1, h2), jnp.float32),
        bn_scale=scale, bn_shift=shift,
        w2=0.2 * jax.random.normal(k2, (h2, 1), jnp.float32),
        b2=0.05 * jax.random.normal(kb2, (1, 1), jnp.float32),
    )
    return dict(layers=layers, head=head)


if __name__ == "__main__":
    IN_CH, HIDDEN = 4, 32
    key = jax.random.PRNGKey(0)
    key, kp = jax.random.split(key)
    params = init_params(kp, IN_CH, HIDDEN)

    fwd = jax.jit(simple_rggc_forward)

    # N=12 exercises the single-block path; N=384 exercises the tiled
    # (layer, target-tile) grid path incl. row padding (n_pad=400, tq=80).
    for n_nodes in (12, 384):
        key, kx = jax.random.split(key)
        x = jax.random.normal(kx, (n_nodes, IN_CH), jnp.float32)

        # Bidirectional ring graph -> dense adjacency A[target, source].
        idx = jnp.arange(n_nodes)
        src = jnp.concatenate([idx, (idx + 1) % n_nodes])
        dst = jnp.concatenate([(idx + 1) % n_nodes, idx])
        adj = jnp.zeros((n_nodes, n_nodes), jnp.float32).at[dst, src].add(1.0)

        out = jax.block_until_ready(fwd(x, adj, params))
        assert out.shape == (1,)
        ref = jax.block_until_ready(reference_forward(x, adj, params))
        assert jnp.all(jnp.isfinite(out))
        assert jnp.allclose(out, ref, rtol=1e-2, atol=1e-2), (n_nodes, out, ref)

    print("KERNEL_OK")
</pallas_src>

<mosaic_0001>
module attributes {stable_mosaic.version = 11 : i64} {
  func.func @fused_rggc_small_kernel(%arg0: memref<12x32xf32, #tpu.memory_space<vmem>>, %arg1: memref<12x12xf32, #tpu.memory_space<vmem>>, %arg2: memref<5x32x128xf32, #tpu.memory_space<vmem>>, %arg3: memref<5x1x128xf32, #tpu.memory_space<vmem>>, %arg4: memref<5x2x32xf32, #tpu.memory_space<vmem>>, %arg5: memref<32x16xf32, #tpu.memory_space<vmem>>, %arg6: memref<3x16xf32, #tpu.memory_space<vmem>>, %arg7: memref<16x1xf32, #tpu.memory_space<vmem>>, %arg8: memref<1x1xf32, #tpu.memory_space<vmem>>, %arg9: memref<1x1xf32, #tpu.memory_space<vmem>>) attributes {dimension_semantics = [], scalar_prefetch = 0 : i64, scratch_operands = 0 : i64, tpu.core_type = #tpu.core_type<tc>} {
    %c0 = arith.constant 0 : index
    %c0_0 = arith.constant 0 : index
    %0 = vector.load %arg0[%c0, %c0_0] : memref<12x32xf32, #tpu.memory_space<vmem>>, vector<12x32xf32>
    %c0_1 = arith.constant 0 : index
    %c0_2 = arith.constant 0 : index
    %1 = vector.load %arg1[%c0_1, %c0_2] : memref<12x12xf32, #tpu.memory_space<vmem>>, vector<12x12xf32>
    %c0_3 = arith.constant 0 : index
    %c0_4 = arith.constant 0 : index
    %c0_5 = arith.constant 0 : index
    %2 = vector.load %arg2[%c0_3, %c0_4, %c0_5] : memref<5x32x128xf32, #tpu.memory_space<vmem>>, vector<1x32x128xf32>
    %3 = vector.shape_cast %2 : vector<1x32x128xf32> to vector<32x128xf32>
    %cst = arith.constant dense<0.000000e+00> : vector<12x128xf32>
    %4 = tpu.matmul %0, %3, %cst {dimension_numbers = #tpu.dot_dimension_numbers<[1], [0], [0], [1], [0, 0, 1, 1], [], []>} : vector<12x32xf32>, vector<32x128xf32>, vector<12x128xf32> -> vector<12x128xf32>
    %c0_6 = arith.constant 0 : index
    %c0_7 = arith.constant 0 : index
    %c0_8 = arith.constant 0 : index
    %5 = vector.load %arg3[%c0_6, %c0_7, %c0_8] : memref<5x1x128xf32, #tpu.memory_space<vmem>>, vector<1x1x128xf32>
    %6 = vector.shape_cast %5 : vector<1x1x128xf32> to vector<1x128xf32>
    %7 = vector.broadcast %6 : vector<1x128xf32> to vector<12x128xf32>
    %8 = arith.addf %4, %7 : vector<12x128xf32>
    %9 = vector.extract_strided_slice %8 {offsets = [0, 0], sizes = [12, 32], strides = [1, 1]} : vector<12x128xf32> to vector<12x32xf32>
    %10 = vector.extract_strided_slice %8 {offsets = [0, 32], sizes = [12, 32], strides = [1, 1]} : vector<12x128xf32> to vector<12x32xf32>
    %11 = vector.extract_strided_slice %8 {offsets = [0, 64], sizes = [12, 32], strides = [1, 1]} : vector<12x128xf32> to vector<12x32xf32>
    %12 = vector.extract_strided_slice %8 {offsets = [0, 96], sizes = [12, 32], strides = [1, 1]} : vector<12x128xf32> to vector<12x32xf32>
    %13 = vector.shape_cast %9 : vector<12x32xf32> to vector<12x1x32xf32>
    %14 = vector.shape_cast %10 : vector<12x32xf32> to vector<1x12x32xf32>
    %15 = vector.broadcast %13 : vector<12x1x32xf32> to vector<12x12x32xf32>
    %16 = vector.broadcast %14 : vector<1x12x32xf32> to vector<12x12x32xf32>
    %17 = arith.addf %15, %16 : vector<12x12x32xf32>
    %cst_9 = arith.constant 5.000000e-01 : f32
    %18 = vector.broadcast %cst_9 : f32 to vector<12x12x32xf32>
    %19 = arith.mulf %18, %17 : vector<12x12x32xf32>
    %20 = math.tanh %19 : vector<12x12x32xf32>
    %cst_10 = arith.constant 1.000000e+00 : f32
    %21 = vector.broadcast %cst_10 : f32 to vector<12x12x32xf32>
    %22 = arith.addf %20, %21 : vector<12x12x32xf32>
    %cst_11 = arith.constant 5.000000e-01 : f32
    %23 = vector.broadcast %cst_11 : f32 to vector<12x12x32xf32>
    %24 = arith.mulf %23, %22 : vector<12x12x32xf32>
    %25 = vector.shape_cast %1 : vector<12x12xf32> to vector<12x12x1xf32>
    %26 = vector.broadcast %25 : vector<12x12x1xf32> to vector<12x12x32xf32>
    %27 = arith.mulf %26, %24 : vector<12x12x32xf32>
    %28 = vector.shape_cast %11 : vector<12x32xf32> to vector<1x12x32xf32>
    %29 = vector.broadcast %28 : vector<1x12x32xf32> to vector<12x12x32xf32>
    %30 = arith.mulf %27, %29 : vector<12x12x32xf32>
    %cst_12 = arith.constant dense<0.000000e+00> : vector<12x32xf32>
    %31 = vector.multi_reduction <add>, %30, %cst_12 [1] : vector<12x12x32xf32> to vector<12x32xf32>
    %32 = arith.addf %31, %12 : vector<12x32xf32>
    %cst_13 = arith.constant 0.000000e+00 : f32
    %33 = vector.broadcast %cst_13 : f32 to vector<12x32xf32>
    %34 = arith.maximumf %32, %33 : vector<12x32xf32>
    %c0_14 = arith.constant 0 : index
    %c0_15 = arith.constant 0 : index
    %c0_16 = arith.constant 0 : index
    %35 = vector.load %arg4[%c0_14, %c0_15, %c0_16] : memref<5x2x32xf32, #tpu.memory_space<vmem>>, vector<1x2x32xf32>
    %36 = vector.shape_cast %35 : vector<1x2x32xf32> to vector<2x32xf32>
    %37 = vector.extract_strided_slice %36 {offsets = [0, 0], sizes = [1, 32], strides = [1, 1]} : vector<2x32xf32> to vector<1x32xf32>
    %38 = vector.broadcast %37 : vector<1x32xf32> to vector<12x32xf32>
    %39 = arith.mulf %34, %38 : vector<12x32xf32>
    %40 = vector.extract_strided_slice %36 {offsets = [1, 0], sizes = [1, 32], strides = [1, 1]} : vector<2x32xf32> to vector<1x32xf32>
    %41 = vector.broadcast %40 : vector<1x32xf32> to vector<12x32xf32>
    %42 = arith.addf %39, %41 : vector<12x32xf32>
    %c1 = arith.constant 1 : index
    %c0_17 = arith.constant 0 : index
    %c0_18 = arith.constant 0 : index
    %43 = vector.load %arg2[%c1, %c0_17, %c0_18] : memref<5x32x128xf32, #tpu.memory_space<vmem>>, vector<1x32x128xf32>
    %44 = vector.shape_cast %43 : vector<1x32x128xf32> to vector<32x128xf32>
    %cst_19 = arith.constant dense<0.000000e+00> : vector<12x128xf32>
    %45 = tpu.matmul %42, %44, %cst_19 {dimension_numbers = #tpu.dot_dimension_numbers<[1], [0], [0], [1], [0, 0, 1, 1], [], []>} : vector<12x32xf32>, vector<32x128xf32>, vector<12x128xf32> -> vector<12x128xf32>
    %c1_20 = arith.constant 1 : index
    %c0_21 = arith.constant 0 : index
    %c0_22 = arith.constant 0 : index
    %46 = vector.load %arg3[%c1_20, %c0_21, %c0_22] : memref<5x1x128xf32, #tpu.memory_space<vmem>>, vector<1x1x128xf32>
    %47 = vector.shape_cast %46 : vector<1x1x128xf32> to vector<1x128xf32>
    %48 = vector.broadcast %47 : vector<1x128xf32> to vector<12x128xf32>
    %49 = arith.addf %45, %48 : vector<12x128xf32>
    %50 = vector.extract_strided_slice %49 {offsets = [0, 0], sizes = [12, 32], strides = [1, 1]} : vector<12x128xf32> to vector<12x32xf32>
    %51 = vector.extract_strided_slice %49 {offsets = [0, 32], sizes = [12, 32], strides = [1, 1]} : vector<12x128xf32> to vector<12x32xf32>
    %52 = vector.extract_strided_slice %49 {offsets = [0, 64], sizes = [12, 32], strides = [1, 1]} : vector<12x128xf32> to vector<12x32xf32>
    %53 = vector.extract_strided_slice %49 {offsets = [0, 96], sizes = [12, 32], strides = [1, 1]} : vector<12x128xf32> to vector<12x32xf32>
    %54 = vector.shape_cast %50 : vector<12x32xf32> to vector<12x1x32xf32>
    %55 = vector.shape_cast %51 : vector<12x32xf32> to vector<1x12x32xf32>
    %56 = vector.broadcast %54 : vector<12x1x32xf32> to vector<12x12x32xf32>
    %57 = vector.broadcast %55 : vector<1x12x32xf32> to vector<12x12x32xf32>
    %58 = arith.addf %56, %57 : vector<12x12x32xf32>
    %cst_23 = arith.constant 5.000000e-01 : f32
    %59 = vector.broadcast %cst_23 : f32 to vector<12x12x32xf32>
    %60 = arith.mulf %59, %58 : vector<12x12x32xf32>
    %61 = math.tanh %60 : vector<12x12x32xf32>
    %cst_24 = arith.constant 1.000000e+00 : f32
    %62 = vector.broadcast %cst_24 : f32 to vector<12x12x32xf32>
    %63 = arith.addf %61, %62 : vector<12x12x32xf32>
    %cst_25 = arith.constant 5.000000e-01 : f32
    %64 = vector.broadcast %cst_25 : f32 to vector<12x12x32xf32>
    %65 = arith.mulf %64, %63 : vector<12x12x32xf32>
    %66 = vector.shape_cast %1 : vector<12x12xf32> to vector<12x12x1xf32>
    %67 = vector.broadcast %66 : vector<12x12x1xf32> to vector<12x12x32xf32>
    %68 = arith.mulf %67, %65 : vector<12x12x32xf32>
    %69 = vector.shape_cast %52 : vector<12x32xf32> to vector<1x12x32xf32>
    %70 = vector.broadcast %69 : vector<1x12x32xf32> to vector<12x12x32xf32>
    %71 = arith.mulf %68, %70 : vector<12x12x32xf32>
    %cst_26 = arith.constant dense<0.000000e+00> : vector<12x32xf32>
    %72 = vector.multi_reduction <add>, %71, %cst_26 [1] : vector<12x12x32xf32> to vector<12x32xf32>
    %73 = arith.addf %72, %53 : vector<12x32xf32>
    %cst_27 = arith.constant 0.000000e+00 : f32
    %74 = vector.broadcast %cst_27 : f32 to vector<12x32xf32>
    %75 = arith.maximumf %73, %74 : vector<12x32xf32>
    %c1_28 = arith.constant 1 : index
    %c0_29 = arith.constant 0 : index
    %c0_30 = arith.constant 0 : index
    %76 = vector.load %arg4[%c1_28, %c0_29, %c0_30] : memref<5x2x32xf32, #tpu.memory_space<vmem>>, vector<1x2x32xf32>
    %77 = vector.shape_cast %76 : vector<1x2x32xf32> to vector<2x32xf32>
    %78 = vector.extract_strided_slice %77 {offsets = [0, 0], sizes = [1, 32], strides = [1, 1]} : vector<2x32xf32> to vector<1x32xf32>
    %79 = vector.broadcast %78 : vector<1x32xf32> to vector<12x32xf32>
    %80 = arith.mulf %75, %79 : vector<12x32xf32>
    %81 = vector.extract_strided_slice %77 {offsets = [1, 0], sizes = [1, 32], strides = [1, 1]} : vector<2x32xf32> to vector<1x32xf32>
    %82 = vector.broadcast %81 : vector<1x32xf32> to vector<12x32xf32>
    %83 = arith.addf %80, %82 : vector<12x32xf32>
    %84 = arith.addf %83, %42 : vector<12x32xf32>
    %c2 = arith.constant 2 : index
    %c0_31 = arith.constant 0 : index
    %c0_32 = arith.constant 0 : index
    %85 = vector.load %arg2[%c2, %c0_31, %c0_32] : memref<5x32x128xf32, #tpu.memory_space<vmem>>, vector<1x32x128xf32>
    %86 = vector.shape_cast %85 : vector<1x32x128xf32> to vector<32x128xf32>
    %cst_33 = arith.constant dense<0.000000e+00> : vector<12x128xf32>
    %87 = tpu.matmul %84, %86, %cst_33 {dimension_numbers = #tpu.dot_dimension_numbers<[1], [0], [0], [1], [0, 0, 1, 1], [], []>} : vector<12x32xf32>, vector<32x128xf32>, vector<12x128xf32> -> vector<12x128xf32>
    %c2_34 = arith.constant 2 : index
    %c0_35 = arith.constant 0 : index
    %c0_36 = arith.constant 0 : index
    %88 = vector.load %arg3[%c2_34, %c0_35, %c0_36] : memref<5x1x128xf32, #tpu.memory_space<vmem>>, vector<1x1x128xf32>
    %89 = vector.shape_cast %88 : vector<1x1x128xf32> to vector<1x128xf32>
    %90 = vector.broadcast %89 : vector<1x128xf32> to vector<12x128xf32>
    %91 = arith.addf %87, %90 : vector<12x128xf32>
    %92 = vector.extract_strided_slice %91 {offsets = [0, 0], sizes = [12, 32], strides = [1, 1]} : vector<12x128xf32> to vector<12x32xf32>
    %93 = vector.extract_strided_slice %91 {offsets = [0, 32], sizes = [12, 32], strides = [1, 1]} : vector<12x128xf32> to vector<12x32xf32>
    %94 = vector.extract_strided_slice %91 {offsets = [0, 64], sizes = [12, 32], strides = [1, 1]} : vector<12x128xf32> to vector<12x32xf32>
    %95 = vector.extract_strided_slice %91 {offsets = [0, 96], sizes = [12, 32], strides = [1, 1]} : vector<12x128xf32> to vector<12x32xf32>
    %96 = vector.shape_cast %92 : vector<12x32xf32> to vector<12x1x32xf32>
    %97 = vector.shape_cast %93 : vector<12x32xf32> to vector<1x12x32xf32>
    %98 = vector.broadcast %96 : vector<12x1x32xf32> to vector<12x12x32xf32>
    %99 = vector.broadcast %97 : vector<1x12x32xf32> to vector<12x12x32xf32>
    %100 = arith.addf %98, %99 : vector<12x12x32xf32>
    %cst_37 = arith.constant 5.000000e-01 : f32
    %101 = vector.broadcast %cst_37 : f32 to vector<12x12x32xf32>
    %102 = arith.mulf %101, %100 : vector<12x12x32xf32>
    %103 = math.tanh %102 : vector<12x12x32xf32>
    %cst_38 = arith.constant 1.000000e+00 : f32
    %104 = vector.broadcast %cst_38 : f32 to vector<12x12x32xf32>
    %105 = arith.addf %103, %104 : vector<12x12x32xf32>
    %cst_39 = arith.constant 5.000000e-01 : f32
    %106 = vector.broadcast %cst_39 : f32 to vector<12x12x32xf32>
    %107 = arith.mulf %106, %105 : vector<12x12x32xf32>
    %108 = vector.shape_cast %1 : vector<12x12xf32> to vector<12x12x1xf32>
    %109 = vector.broadcast %108 : vector<12x12x1xf32> to vector<12x12x32xf32>
    %110 = arith.mulf %109, %107 : vector<12x12x32xf32>
    %111 = vector.shape_cast %94 : vector<12x32xf32> to vector<1x12x32xf32>
    %112 = vector.broadcast %111 : vector<1x12x32xf32> to vector<12x12x32xf32>
    %113 = arith.mulf %110, %112 : vector<12x12x32xf32>
    %cst_40 = arith.constant dense<0.000000e+00> : vector<12x32xf32>
    %114 = vector.multi_reduction <add>, %113, %cst_40 [1] : vector<12x12x32xf32> to vector<12x32xf32>
    %115 = arith.addf %114, %95 : vector<12x32xf32>
    %cst_41 = arith.constant 0.000000e+00 : f32
    %116 = vector.broadcast %cst_41 : f32 to vector<12x32xf32>
    %117 = arith.maximumf %115, %116 : vector<12x32xf32>
    %c2_42 = arith.constant 2 : index
    %c0_43 = arith.constant 0 : index
    %c0_44 = arith.constant 0 : index
    %118 = vector.load %arg4[%c2_42, %c0_43, %c0_44] : memref<5x2x32xf32, #tpu.memory_space<vmem>>, vector<1x2x32xf32>
    %119 = vector.shape_cast %118 : vector<1x2x32xf32> to vector<2x32xf32>
    %120 = vector.extract_strided_slice %119 {offsets = [0, 0], sizes = [1, 32], strides = [1, 1]} : vector<2x32xf32> to vector<1x32xf32>
    %121 = vector.broadcast %120 : vector<1x32xf32> to vector<12x32xf32>
    %122 = arith.mulf %117, %121 : vector<12x32xf32>
    %123 = vector.extract_strided_slice %119 {offsets = [1, 0], sizes = [1, 32], strides = [1, 1]} : vector<2x32xf32> to vector<1x32xf32>
    %124 = vector.broadcast %123 : vector<1x32xf32> to vector<12x32xf32>
    %125 = arith.addf %122, %124 : vector<12x32xf32>
    %126 = arith.addf %125, %84 : vector<12x32xf32>
    %c3 = arith.constant 3 : index
    %c0_45 = arith.constant 0 : index
    %c0_46 = arith.constant 0 : index
    %127 = vector.load %arg2[%c3, %c0_45, %c0_46] : memref<5x32x128xf32, #tpu.memory_space<vmem>>, vector<1x32x128xf32>
    %128 = vector.shape_cast %127 : vector<1x32x128xf32> to vector<32x128xf32>
    %cst_47 = arith.constant dense<0.000000e+00> : vector<12x128xf32>
    %129 = tpu.matmul %126, %128, %cst_47 {dimension_numbers = #tpu.dot_dimension_numbers<[1], [0], [0], [1], [0, 0, 1, 1], [], []>} : vector<12x32xf32>, vector<32x128xf32>, vector<12x128xf32> -> vector<12x128xf32>
    %c3_48 = arith.constant 3 : index
    %c0_49 = arith.constant 0 : index
    %c0_50 = arith.constant 0 : index
    %130 = vector.load %arg3[%c3_48, %c0_49, %c0_50] : memref<5x1x128xf32, #tpu.memory_space<vmem>>, vector<1x1x128xf32>
    %131 = vector.shape_cast %130 : vector<1x1x128xf32> to vector<1x128xf32>
    %132 = vector.broadcast %131 : vector<1x128xf32> to vector<12x128xf32>
    %133 = arith.addf %129, %132 : vector<12x128xf32>
    %134 = vector.extract_strided_slice %133 {offsets = [0, 0], sizes = [12, 32], strides = [1, 1]} : vector<12x128xf32> to vector<12x32xf32>
    %135 = vector.extract_strided_slice %133 {offsets = [0, 32], sizes = [12, 32], strides = [1, 1]} : vector<12x128xf32> to vector<12x32xf32>
    %136 = vector.extract_strided_slice %133 {offsets = [0, 64], sizes = [12, 32], strides = [1, 1]} : vector<12x128xf32> to vector<12x32xf32>
    %137 = vector.extract_strided_slice %133 {offsets = [0, 96], sizes = [12, 32], strides = [1, 1]} : vector<12x128xf32> to vector<12x32xf32>
    %138 = vector.shape_cast %134 : vector<12x32xf32> to vector<12x1x32xf32>
    %139 = vector.shape_cast %135 : vector<12x32xf32> to vector<1x12x32xf32>
    %140 = vector.broadcast %138 : vector<12x1x32xf32> to vector<12x12x32xf32>
    %141 = vector.broadcast %139 : vector<1x12x32xf32> to vector<12x12x32xf32>
    %142 = arith.addf %140, %141 : vector<12x12x32xf32>
    %cst_51 = arith.constant 5.000000e-01 : f32
    %143 = vector.broadcast %cst_51 : f32 to vector<12x12x32xf32>
    %144 = arith.mulf %143, %142 : vector<12x12x32xf32>
    %145 = math.tanh %144 : vector<12x12x32xf32>
    %cst_52 = arith.constant 1.000000e+00 : f32
    %146 = vector.broadcast %cst_52 : f32 to vector<12x12x32xf32>
    %147 = arith.addf %145, %146 : vector<12x12x32xf32>
    %cst_53 = arith.constant 5.000000e-01 : f32
    %148 = vector.broadcast %cst_53 : f32 to vector<12x12x32xf32>
    %149 = arith.mulf %148, %147 : vector<12x12x32xf32>
    %150 = vector.shape_cast %1 : vector<12x12xf32> to vector<12x12x1xf32>
    %151 = vector.broadcast %150 : vector<12x12x1xf32> to vector<12x12x32xf32>
    %152 = arith.mulf %151, %149 : vector<12x12x32xf32>
    %153 = vector.shape_cast %136 : vector<12x32xf32> to vector<1x12x32xf32>
    %154 = vector.broadcast %153 : vector<1x12x32xf32> to vector<12x12x32xf32>
    %155 = arith.mulf %152, %154 : vector<12x12x32xf32>
    %cst_54 = arith.constant dense<0.000000e+00> : vector<12x32xf32>
    %156 = vector.multi_reduction <add>, %155, %cst_54 [1] : vector<12x12x32xf32> to vector<12x32xf32>
    %157 = arith.addf %156, %137 : vector<12x32xf32>
    %cst_55 = arith.constant 0.000000e+00 : f32
    %158 = vector.broadcast %cst_55 : f32 to vector<12x32xf32>
    %159 = arith.maximumf %157, %158 : vector<12x32xf32>
    %c3_56 = arith.constant 3 : index
    %c0_57 = arith.constant 0 : index
    %c0_58 = arith.constant 0 : index
    %160 = vector.load %arg4[%c3_56, %c0_57, %c0_58] : memref<5x2x32xf32, #tpu.memory_space<vmem>>, vector<1x2x32xf32>
    %161 = vector.shape_cast %160 : vector<1x2x32xf32> to vector<2x32xf32>
    %162 = vector.extract_strided_slice %161 {offsets = [0, 0], sizes = [1, 32], strides = [1, 1]} : vector<2x32xf32> to vector<1x32xf32>
    %163 = vector.broadcast %162 : vector<1x32xf32> to vector<12x32xf32>
    %164 = arith.mulf %159, %163 : vector<12x32xf32>
    %165 = vector.extract_strided_slice %161 {offsets = [1, 0], sizes = [1, 32], strides = [1, 1]} : vector<2x32xf32> to vector<1x32xf32>
    %166 = vector.broadcast %165 : vector<1x32xf32> to vector<12x32xf32>
    %167 = arith.addf %164, %166 : vector<12x32xf32>
    %168 = arith.addf %167, %126 : vector<12x32xf32>
    %c4 = arith.constant 4 : index
    %c0_59 = arith.constant 0 : index
    %c0_60 = arith.constant 0 : index
    %169 = vector.load %arg2[%c4, %c0_59, %c0_60] : memref<5x32x128xf32, #tpu.memory_space<vmem>>, vector<1x32x128xf32>
    %170 = vector.shape_cast %169 : vector<1x32x128xf32> to vector<32x128xf32>
    %cst_61 = arith.constant dense<0.000000e+00> : vector<12x128xf32>
    %171 = tpu.matmul %168, %170, %cst_61 {dimension_numbers = #tpu.dot_dimension_numbers<[1], [0], [0], [1], [0, 0, 1, 1], [], []>} : vector<12x32xf32>, vector<32x128xf32>, vector<12x128xf32> -> vector<12x128xf32>
    %c4_62 = arith.constant 4 : index
    %c0_63 = arith.constant 0 : index
    %c0_64 = arith.constant 0 : index
    %172 = vector.load %arg3[%c4_62, %c0_63, %c0_64] : memref<5x1x128xf32, #tpu.memory_space<vmem>>, vector<1x1x128xf32>
    %173 = vector.shape_cast %172 : vector<1x1x128xf32> to vector<1x128xf32>
    %174 = vector.broadcast %173 : vector<1x128xf32> to vector<12x128xf32>
    %175 = arith.addf %171, %174 : vector<12x128xf32>
    %176 = vector.extract_strided_slice %175 {offsets = [0, 0], sizes = [12, 32], strides = [1, 1]} : vector<12x128xf32> to vector<12x32xf32>
    %177 = vector.extract_strided_slice %175 {offsets = [0, 32], sizes = [12, 32], strides = [1, 1]} : vector<12x128xf32> to vector<12x32xf32>
    %178 = vector.extract_strided_slice %175 {offsets = [0, 64], sizes = [12, 32], strides = [1, 1]} : vector<12x128xf32> to vector<12x32xf32>
    %179 = vector.extract_strided_slice %175 {offsets = [0, 96], sizes = [12, 32], strides = [1, 1]} : vector<12x128xf32> to vector<12x32xf32>
    %180 = vector.shape_cast %176 : vector<12x32xf32> to vector<12x1x32xf32>
    %181 = vector.shape_cast %177 : vector<12x32xf32> to vector<1x12x32xf32>
    %182 = vector.broadcast %180 : vector<12x1x32xf32> to vector<12x12x32xf32>
    %183 = vector.broadcast %181 : vector<1x12x32xf32> to vector<12x12x32xf32>
    %184 = arith.addf %182, %183 : vector<12x12x32xf32>
    %cst_65 = arith.constant 5.000000e-01 : f32
    %185 = vector.broadcast %cst_65 : f32 to vector<12x12x32xf32>
    %186 = arith.mulf %185, %184 : vector<12x12x32xf32>
    %187 = math.tanh %186 : vector<12x12x32xf32>
    %cst_66 = arith.constant 1.000000e+00 : f32
    %188 = vector.broadcast %cst_66 : f32 to vector<12x12x32xf32>
    %189 = arith.addf %187, %188 : vector<12x12x32xf32>
    %cst_67 = arith.constant 5.000000e-01 : f32
    %190 = vector.broadcast %cst_67 : f32 to vector<12x12x32xf32>
    %191 = arith.mulf %190, %189 : vector<12x12x32xf32>
    %192 = vector.shape_cast %1 : vector<12x12xf32> to vector<12x12x1xf32>
    %193 = vector.broadcast %192 : vector<12x12x1xf32> to vector<12x12x32xf32>
    %194 = arith.mulf %193, %191 : vector<12x12x32xf32>
    %195 = vector.shape_cast %178 : vector<12x32xf32> to vector<1x12x32xf32>
    %196 = vector.broadcast %195 : vector<1x12x32xf32> to vector<12x12x32xf32>
    %197 = arith.mulf %194, %196 : vector<12x12x32xf32>
    %cst_68 = arith.constant dense<0.000000e+00> : vector<12x32xf32>
    %198 = vector.multi_reduction <add>, %197, %cst_68 [1] : vector<12x12x32xf32> to vector<12x32xf32>
    %199 = arith.addf %198, %179 : vector<12x32xf32>
    %cst_69 = arith.constant 0.000000e+00 : f32
    %200 = vector.broadcast %cst_69 : f32 to vector<12x32xf32>
    %201 = arith.maximumf %199, %200 : vector<12x32xf32>
    %c4_70 = arith.constant 4 : index
    %c0_71 = arith.constant 0 : index
    %c0_72 = arith.constant 0 : index
    %202 = vector.load %arg4[%c4_70, %c0_71, %c0_72] : memref<5x2x32xf32, #tpu.memory_space<vmem>>, vector<1x2x32xf32>
    %203 = vector.shape_cast %202 : vector<1x2x32xf32> to vector<2x32xf32>
    %204 = vector.extract_strided_slice %203 {offsets = [0, 0], sizes = [1, 32], strides = [1, 1]} : vector<2x32xf32> to vector<1x32xf32>
    %205 = vector.broadcast %204 : vector<1x32xf32> to vector<12x32xf32>
    %206 = arith.mulf %201, %205 : vector<12x32xf32>
    %207 = vector.extract_strided_slice %203 {offsets = [1, 0], sizes = [1, 32], strides = [1, 1]} : vector<2x32xf32> to vector<1x32xf32>
    %208 = vector.broadcast %207 : vector<1x32xf32> to vector<12x32xf32>
    %209 = arith.addf %206, %208 : vector<12x32xf32>
    %210 = arith.addf %209, %168 : vector<12x32xf32>
    %cst_73 = arith.constant dense<0.000000e+00> : vector<32xf32>
    %211 = vector.multi_reduction <add>, %210, %cst_73 [0] : vector<12x32xf32> to vector<32xf32>
    %212 = vector.shape_cast %211 : vector<32xf32> to vector<1x32xf32>
    %cst_74 = arith.constant 0.0833333358 : f32
    %213 = vector.broadcast %cst_74 : f32 to vector<1x32xf32>
    %214 = arith.mulf %212, %213 : vector<1x32xf32>
    %c0_75 = arith.constant 0 : index
    %c0_76 = arith.constant 0 : index
    %215 = vector.load %arg5[%c0_75, %c0_76] : memref<32x16xf32, #tpu.memory_space<vmem>>, vector<32x16xf32>
    %cst_77 = arith.constant dense<0.000000e+00> : vector<1x16xf32>
    %216 = tpu.matmul %214, %215, %cst_77 {dimension_numbers = #tpu.dot_dimension_numbers<[1], [0], [0], [1], [0, 0, 1, 1], [], []>} : vector<1x32xf32>, vector<32x16xf32>, vector<1x16xf32> -> vector<1x16xf32>
    %c0_78 = arith.constant 0 : index
    %c0_79 = arith.constant 0 : index
    %217 = vector.load %arg6[%c0_78, %c0_79] : memref<3x16xf32, #tpu.memory_space<vmem>>, vector<1x16xf32>
    %218 = arith.addf %216, %217 : vector<1x16xf32>
    %cst_80 = arith.constant 0.000000e+00 : f32
    %219 = vector.broadcast %cst_80 : f32 to vector<1x16xf32>
    %220 = arith.maximumf %218, %219 : vector<1x16xf32>
    %c1_81 = arith.constant 1 : index
    %c0_82 = arith.constant 0 : index
    %221 = vector.load %arg6[%c1_81, %c0_82] : memref<3x16xf32, #tpu.memory_space<vmem>>, vector<1x16xf32>
    %222 = arith.mulf %220, %221 : vector<1x16xf32>
    %c2_83 = arith.constant 2 : index
    %c0_84 = arith.constant 0 : index
    %223 = vector.load %arg6[%c2_83, %c0_84] : memref<3x16xf32, #tpu.memory_space<vmem>>, vector<1x16xf32>
    %224 = arith.addf %222, %223 : vector<1x16xf32>
    %c0_85 = arith.constant 0 : index
    %c0_86 = arith.constant 0 : index
    %225 = vector.load %arg7[%c0_85, %c0_86] : memref<16x1xf32, #tpu.memory_space<vmem>>, vector<16x1xf32>
    %cst_87 = arith.constant dense<0.000000e+00> : vector<1x1xf32>
    %226 = tpu.matmul %224, %225, %cst_87 {dimension_numbers = #tpu.dot_dimension_numbers<[1], [0], [0], [1], [0, 0, 1, 1], [], []>} : vector<1x16xf32>, vector<16x1xf32>, vector<1x1xf32> -> vector<1x1xf32>
    %c0_88 = arith.constant 0 : index
    %c0_89 = arith.constant 0 : index
    %227 = vector.load %arg8[%c0_88, %c0_89] : memref<1x1xf32, #tpu.memory_space<vmem>>, vector<1x1xf32>
    %228 = arith.addf %226, %227 : vector<1x1xf32>
    %c0_90 = arith.constant 0 : index
    %c0_91 = arith.constant 0 : index
    %229 = vector.load %arg9[%c0_90, %c0_91] : memref<1x1xf32, #tpu.memory_space<vmem>>, vector<1x1xf32>
    tpu.vector_store %arg9[%c0_90, %c0_91], %228 {strides = array<i32>} : memref<1x1xf32, #tpu.memory_space<vmem>>, vector<1x1xf32>,
    return
  }
}

</mosaic_0001>

<bundles_post_ra>
// kernel: simple_rggc_forward.1
= control target key start
LH: loop header
LB: loop body
LE: loop exit
PB: predicated region body
PF: predicated region fallthrough
CT: control target
= control target key end

     0   :  { %s5763_s0 = inlined_call_operand.vmem [shape: f32[12,32], index: 0, kind: input, shape index: {}]   ;;  %s5764_s1 = inlined_call_operand.vmem [shape: f32[12,12], index: 1, kind: input, shape index: {}]   ;;  %s5765_s2 = inlined_call_operand.vmem [shape: f32[5,32,128], index: 2, kind: input, shape index: {}]   ;;  %s5766_s3 = inlined_call_operand.vmem [shape: f32[5,1,128], index: 3, kind: input, shape index: {}]   ;;  %s5767_s4 = inlined_call_operand.vmem [shape: f32[5,2,32], index: 4, kind: input, shape index: {}]   ;;  %s5768_s5 = inlined_call_operand.vmem [shape: f32[32,16], index: 5, kind: input, shape index: {}]   ;;  %s5769_s6 = inlined_call_operand.vmem [shape: f32[3,16], index: 6, kind: input, shape index: {}]   ;;  %s5770_s7 = inlined_call_operand.vmem [shape: f32[16,1], index: 7, kind: input, shape index: {}]   ;;  %s5771_s8 = inlined_call_operand.<no memory space> [shape: f32[1,1], index: 8, kind: input, shape index: {}]   ;;  %s5772_s9 = inlined_call_operand.hbm [shape: f32[1,1], index: 9, kind: output, shape index: {}]  }
   0x1   :  { %v14_v0 = vstv %s5771_s8 }
   0x2   :  { %15 = vst [vmem:[#allocation2] sm:$0x1] %v14_v0 }
   0x3   :  { %v39_v1 = vld [vmem:[%s5765_s2] sm:$0xff]  ;;  %v40_v2 = vld [vmem:[%s5765_s2 + $0x8] sm:$0xff]  ;;  %v41_v3 = vld [vmem:[%s5765_s2 + $0x10] sm:$0xff]  ;;  %vm50_vm0 = vcmask 261120   ;;  %v138_v4 = vlaneseq }
   0x4   :  { %v3822_v5 = vpack.c.bf16 %v40_v2, %v39_v1  ;;  %v42_v6 = vld [vmem:[%s5765_s2 + $0x18] sm:$0xff]  ;;  %v35_v7 = vld [vmem:[%s5763_s0] sm:$0xff] }
   0x5   :  { %v3826_v8 = vpack.c.bf16 %v42_v6, %v41_v3  ;;  %3757 = vmatprep.mubr.msk.f32.mxu0 %vm50_vm0, %v35_v7  ;;  %v4220_v9 = vshrl.u32 %v138_v4, 7  ;;  %v37_v10 = vld [vmem:[%s5764_s1] sm:$0xff] }
   0x6   :  { %3823 = vmatprep.subr.bf16.mxu0 %v3822_v5 }
   0x7   :  { %3825 = vmatpush3.bf16.msra.mxu0 %v3822_v5  ;;  %v4226_v11 = vsub.s32 1, %v4220_v9 }
   0x9   :  { %5831 = vst [vmem:[#allocation6_spill] sm:$0xff] %v4226_v11 }
   0xa   :  { %16 = vsyncpa [#allocation4], 0  ;;  %3827 = vmatprep.subr.bf16.mxu0 %v3826_v8  ;;  %v417_v12 = vsub.s32 2, %v4220_v9  ;;  %v407_v13 = vrot.slane %v37_v10, %v4226_v11  ;;  %v4231_v14 = vsub.s32 0, %v4220_v9  ;;  %v36_v15 = vld [vmem:[%s5763_s0 + $0x8] sm:$0xf] }
   0xb   :  { %3829 = vmatpush3.bf16.msra.mxu0 %v3826_v8  ;;  %v428_v18 = vsub.s32 3, %v4220_v9  ;;  %v439_v20 = vsub.s32 4, %v4220_v9  ;;  %v450_v22 = vsub.s32 5, %v4220_v9  ;;  %v461_v24 = vsub.s32 6, %v4220_v9  ;;  %v3670_v26 = vld [vmem:[%s5766_s3] ss:$0 sm:$0xff] }
   0xc   :  { %5832 = vst [vmem:[#allocation7_spill] sm:$0xff] %v4231_v14  ;;  %409 = vbcast.lane.b32.xlu1 %v407_v13, 256  ;;  %v418_v16 = vrot.slane %v37_v10, %v417_v12  ;;  %v396_v17 = vrot.slane %v37_v10, %v4231_v14  ;;  %v38_v28 = vld [vmem:[%s5764_s1 + $0x8] sm:$0xf]  ;;  %s4143_s27 = smov 64   ;;  %s4144_s28 = smov 96  }
   0xd   :  { %v429_v19 = vrot.slane %v37_v10, %v428_v18  ;;  %v440_v21 = vrot.slane %v37_v10, %v439_v20  ;;  %v451_v23 = vrot.slane %v37_v10, %v450_v22  ;;  %v462_v25 = vrot.slane %v37_v10, %v461_v24  ;;  %s4145_s1 = smov 32   ;;  %v3673_v50 = vld [vmem:[%s5765_s2 + $0x20] sm:$0xff]  ;;  %v3674_v51 = vld [vmem:[%s5765_s2 + $0x28] sm:$0xff]  ;;  %v3675_v52 = vld [vmem:[%s5765_s2 + $0x30] sm:$0xff] }
   0xe   :  { %3758 = vmatmul.mubr.msk.f32.vlgmr.msra.gmra.mrb[0].mxu0 %vm50_vm0, %v36_v15  ;;  %420 = vbcast.lane.b32.xlu0 %v418_v16, 256  ;;  %v495_v31 = vrot.slane %v38_v28, %v4226_v11  ;;  %v472_v32 = vsub.s32 7, %v4220_v9  ;;  %v506_v35 = vrot.slane %v38_v28, %v417_v12  ;;  %v484_v36 = vrot.slane %v38_v28, %v4231_v14  ;;  %v3676_v54 = vld [vmem:[%s5765_s2 + $0x38] sm:$0xff] }
   0xf   :  { %v517_v37 = vrot.slane %v38_v28, %v428_v18  ;;  %v3830_v53 = vpack.c.bf16 %v3674_v51, %v3673_v50  ;;  %v3834_v55 = vpack.c.bf16 %v3676_v54, %v3675_v52  ;;  %v4146_v60 = vmov 1966171168  }
  0x10   :  { %413 = vbcast.lane.b32.xlu1 %v407_v13, 264  ;;  %v473_v34 = vrot.slane %v37_v10, %v472_v32  ;;  %v136_v61 = vunpack.c.l.s4 %v4146_v60  ;;  %vm580_vm1 = vcmask 257024   ;;  %vm817_vm2 = vcmask 1041409  }
  0x11   :  { %3831 = vmatprep.subr.bf16.mxu1 %v3830_v53  ;;  %vm820_vm3 = vcmask 1042434   ;;  %vm823_vm4 = vcmask 1043459   ;;  %vm826_vm5 = vcmask 1044484   ;;  %vm829_vm6 = vcmask 1045509  }
  0x12   :  { %398 = vbcast.lane.b32.xlu0 %v396_v17, 256  ;;  %3833 = vmatpush3.bf16.msra.mxu1 %v3830_v53  ;;  %v137_v0 = vunpack.c.0.s8 %v136_v61  ;;  %vm832_vm7 = vcmask 1046534   ;;  %vm835_vm8 = vcmask 1047559   ;;  %vm4148_vm9 = vmmov 0  }
  0x13   :  { %3835 = vmatprep.subr.bf16.mxu1 %v3834_v55  ;;  %vm3580_vm10 = vcmask 130048   ;;  %vm3654_vm11 = vcmask 0  }
  0x14   :  { %424 = vbcast.lane.b32.xlu1 %v418_v16, 264  ;;  %v4318_v2 = vsub.s32 %v137_v0, %v4220_v9 }
  0x16   :  { %431 = vbcast.lane.b32.xlu0 %v429_v19, 256  ;;  %3837 = vmatpush3.bf16.msra.mxu1 %v3834_v55  ;;  %5841 = vst [vmem:[#allocation16_spill] sm:$0xff] %v4318_v2 }
  0x18   :  { %402 = vbcast.lane.b32.xlu1 %v396_v17, 264 }
  0x1a   :  { %442 = vbcast.lane.b32.xlu0 %v440_v21, 256 }
  0x1c   :  { %435 = vbcast.lane.b32.xlu1 %v429_v19, 264 }
  0x1e   :  { %453 = vbcast.lane.b32.xlu0 %v451_v23, 256 }
  0x20   :  { %446 = vbcast.lane.b32.xlu1 %v440_v21, 264 }
  0x22   :  { %464 = vbcast.lane.b32.xlu0 %v462_v25, 256 }
  0x24   :  { %457 = vbcast.lane.b32.xlu1 %v451_v23, 264 }
  0x28   :  { %468 = vbcast.lane.b32.xlu1 %v462_v25, 264 }
  0x7e   :  { %v4287_v48 = vpop.permute.xlu1 %409 }
  0x7f   :  { %5833 = vst [vmem:[#allocation8_spill] sm:$0xff] %v4287_v48 }
  0x80   :  { %v4303_v56 = vpop.permute.xlu0 %420 }
  0x81   :  { %5835 = vst [vmem:[#allocation10_spill] sm:$0xff] %v4303_v56 }
  0x82   :  { %v4289_v49 = vpop.permute.xlu1 %413 }
  0x83   :  { %5834 = vst [vmem:[#allocation9_spill] sm:$0xff] %v4289_v49 }
  0x84   :  { %v4309_v59 = vpop.permute.xlu0 %398 }
  0x85   :  { %5838 = vst [vmem:[#allocation13_spill] sm:$0xff] %v4309_v59 }
  0x86   :  { %v4305_v57 = vpop.permute.xlu1 %424 }
  0x87   :  { %5836 = vst [vmem:[#allocation11_spill] sm:$0xff] %v4305_v57 }
  0x88   :  { %v4313_v63 = vpop.permute.xlu0 %431 }
  0x89   :  { %5840 = vst [vmem:[#allocation15_spill] sm:$0xff] %v4313_v63 }
  0x8a   :  { %v4307_v58 = vpop.permute.xlu1 %402 }
  0x8b   :  { %5837 = vst [vmem:[#allocation12_spill] sm:$0xff] %v4307_v58 }
  0x8c   :  { %v4322_v4 = vpop.permute.xlu0 %442 }
  0x8d   :  { %5843 = vst [vmem:[#allocation18_spill] sm:$0xff] %v4322_v4 }
  0x8e   :  { %v4311_v62 = vpop.permute.xlu1 %435 }
  0x8f   :  { %5839 = vst [vmem:[#allocation14_spill] sm:$0xff] %v4311_v62 }
  0x90   :  { %v4329_v10 = vpop.permute.xlu0 %453 }
  0x91   :  { %5845 = vst [vmem:[#allocation20_spill] sm:$0xff] %v4329_v10 }
  0x92   :  { %v4320_v3 = vpop.permute.xlu1 %446 }
  0x93   :  { %5842 = vst [vmem:[#allocation17_spill] sm:$0xff] %v4320_v3 }
  0x94   :  { %v4339_v17 = vpop.permute.xlu0 %464 }
  0x96   :  { %v4327_v8 = vpop.permute.xlu1 %457 }
  0x97   :  { %5844 = vst [vmem:[#allocation19_spill] sm:$0xff] %v4327_v8 }
  0x9a   :  { %v4337_v16 = vpop.permute.xlu1 %468 }
  0xe1   :  { %v3759_v27 = vpop.f32.mrb[0].mxu0 }
  0xe2   :  { %v4248_v29 = vadd.f32 %v3759_v27, %v3670_v26  ;;  %v123_v30 = vpop.f32.mrb[1].mxu0 }
  0xe3   :  { %v4256_v33 = vadd.f32 %v3670_v26, %v123_v30 }
  0xe4   :  { %551 = vrot.lane.b32.xlu1 %v4248_v29, %s4143_s27  ;;  %269 = vrot.lane.b32.xlu0 %v4248_v29, %s4144_s28  ;;  %v695_v38 = vrot.slane %v4248_v29, 1  ;;  %v696_v39 = vrot.slane %v4248_v29, 2  ;;  %v697_v45 = vrot.slane %v4248_v29, 3  ;;  %v189_v6 = vrot.slane %v4248_v29, %v4318_v2 }
  0xe5   :  { %v689_v40 = vrot.slane %v4256_v33, 2  ;;  %v690_v41 = vrot.slane %v4256_v33, 3  ;;  %v688_v42 = vrot.slane %v4256_v33, 1  ;;  %v692_v43 = vrot.slane %v4256_v33, 5 }
  0xe6   :  { %v691_v44 = vrot.slane %v4256_v33, 4  ;;  %v693_v46 = vrot.slane %v4256_v33, 6  ;;  %v694_v47 = vrot.slane %v4256_v33, 7  ;;  %v134_v1 = vcombine.high %v4256_v33, %v4256_v33 }
  0xe7   :  { %v190_v12 = vcombine.high %v189_v6, %v189_v6  ;;  %v197_v9 = vrot.slane %v189_v6, %v4318_v2  ;;  %v141_v15 = vrot.slane %v4256_v33, %v4318_v2 }
  0xe8   :  { %501 = vbcast.lane.b32.xlu1 %v495_v31, 264  ;;  %267 = vrot.lane.b32.xlu0 %v4256_v33, %s4144_s28  ;;  %v148_v5 = vrot.slane %v134_v1, %v4318_v2 }
  0xe9   :  { %v204_v18 = vrot.slane %v190_v12, %v4318_v2  ;;  %v205_v20 = vcombine.high %v197_v9, %v197_v9  ;;  %v149_v21 = vcombine.high %v141_v15, %v141_v15  ;;  %v157_v23 = vrot.slane %v141_v15, %v4318_v2 }
  0xea   :  { %v150_v7 = vcombine.high %v148_v5, %v148_v5  ;;  %v242_v27 = vrot.slane %v197_v9, %v4231_v14  ;;  %v164_v53 = vrot.slane %v148_v5, %v4318_v2 }
  0xeb   :  { %v206_v22 = vcombine.high %v204_v18, %v204_v18  ;;  %v246_v24 = vrot.slane %v204_v18, %v4231_v14  ;;  %v250_v26 = vrot.slane %v205_v20, %v4231_v14  ;;  %v171_v30 = vrot.slane %v149_v21, %v4318_v2 }
  0xec   :  { %479 = vbcast.lane.b32.xlu1 %v473_v34, 264  ;;  %497 = vbcast.lane.b32.xlu0 %v495_v31, 256  ;;  %v4332_v13 = vrot.slane %v150_v7, %v4318_v2 }
  0xed   :  { %v214_v18 = vrot.slane %v171_v30, %v4231_v14 }
  0xee   :  { %v182_v19 = vcombine.high %v4332_v13, %v4332_v13 }
  0xf0   :  { %512 = vbcast.lane.b32.xlu1 %v506_v35, 264  ;;  %475 = vbcast.lane.b32.xlu0 %v473_v34, 256  ;;  %v238_v25 = vrot.slane %v182_v19, %v4231_v14  ;;  %v758_v19 = vld [vmem:[%s5767_s4] sm:$0x3] }
  0xf4   :  { %490 = vbcast.lane.b32.xlu1 %v484_v36, 264  ;;  %508 = vbcast.lane.b32.xlu0 %v506_v35, 256  ;;  %v254_v35 = vrot.slane %v206_v22, %v4231_v14  ;;  %v180_v22 = vcombine.high %v164_v53, %v164_v53 }
  0xf8   :  { %523 = vbcast.lane.b32.xlu1 %v517_v37, 264  ;;  %486 = vbcast.lane.b32.xlu0 %v484_v36, 256  ;;  %v179_v36 = vcombine.high %v157_v23, %v157_v23 }
  0xfa   :  { %v218_v52 = vrot.slane %v179_v36, %v4231_v14 }
  0xfc   :  { %716 = vrot.lane.b32.xlu1 %v695_v38, %s4145_s1  ;;  %519 = vbcast.lane.b32.xlu0 %v517_v37, 256 }
 0x100   :  { %718 = vrot.lane.b32.xlu1 %v696_v39, %s4145_s1  ;;  %549 = vrot.lane.b32.xlu0 %v4256_v33, %s4143_s27 }
 0x104   :  { %698 = vrot.lane.b32.xlu0 %v4256_v33, %s4145_s1  ;;  %702 = vrot.lane.b32.xlu1 %v689_v40, %s4145_s1 }
 0x108   :  { %704 = vrot.lane.b32.xlu1 %v690_v41, %s4145_s1  ;;  %700 = vrot.lane.b32.xlu0 %v688_v42, %s4145_s1 }
 0x10c   :  { %708 = vrot.lane.b32.xlu1 %v692_v43, %s4145_s1  ;;  %706 = vrot.lane.b32.xlu0 %v691_v44, %s4145_s1  ;;  %v210_v44 = vrot.slane %v157_v23, %v4231_v14 }
 0x110   :  { %720 = vrot.lane.b32.xlu1 %v697_v45, %s4145_s1  ;;  %710 = vrot.lane.b32.xlu0 %v693_v46, %s4145_s1  ;;  %v181_v45 = vcombine.high %v171_v30, %v171_v30 }
 0x112   :  { %v222_v9 = vrot.slane %v181_v45, %v4231_v14 }
 0x114   :  { %712 = vrot.lane.b32.xlu0 %v694_v47, %s4145_s1 }
 0x118   :  { %714 = vrot.lane.b32.xlu0 %v4248_v29, %s4145_s1 }
 0x156   :  { %v4349_v28 = vpop.permute.xlu1 %551  ;;  %v4351_v29 = vpop.permute.xlu0 %269 }
 0x157   :  { %v292_v31 = vadd.f32 %v4351_v29, %v246_v24  ;;  %v288_v32 = vadd.f32 %v4351_v29, %v238_v25  ;;  %v294_v33 = vadd.f32 %v4351_v29, %v250_v26  ;;  %v290_v34 = vadd.f32 %v4351_v29, %v242_v27 }
 0x158   :  { %v296_v43 = vadd.f32 %v4351_v29, %v254_v35  ;;  %v274_v6 = vadd.f32 %v4351_v29, %v210_v44  ;;  %v278_v15 = vadd.f32 %v4351_v29, %v218_v52 }
 0x159   :  { %v316_v37 = vmul.f32 0.5, %v292_v31  ;;  %v312_v38 = vmul.f32 0.5, %v288_v32  ;;  %v318_v39 = vmul.f32 0.5, %v294_v33  ;;  %v314_v42 = vmul.f32 0.5, %v290_v34 }
 0x15a   :  { %v4359_v40 = vpop.permute.xlu1 %501  ;;  %v4361_v41 = vpop.permute.xlu0 %267  ;;  %v320_v1 = vmul.f32 0.5, %v296_v43  ;;  %v280_v31 = vadd.f32 %v4351_v29, %v222_v9  ;;  %v4393_v33 = vrot.slane %v758_v19, %v4231_v14  ;;  %v302_v34 = vmul.f32 0.5, %v278_v15 }
 0x15b   :  { %5846 = vst [vmem:[#allocation21_spill] sm:$0xff] %v4359_v40  ;;  %3879 = vtanh.f32 %v316_v37  ;;  %v291_v46 = vadd.f32 %v4361_v41, %v246_v24  ;;  %v287_v47 = vadd.f32 %v4361_v41, %v238_v25  ;;  %v293_v50 = vadd.f32 %v4361_v41, %v250_v26 }
 0x15c   :  { %3881 = vtanh.f32 %v312_v38  ;;  %v295_v51 = vadd.f32 %v4361_v41, %v254_v35  ;;  %v273_v60 = vadd.f32 %v4361_v41, %v210_v44  ;;  %v277_v12 = vadd.f32 %v4361_v41, %v218_v52 }
 0x15d   :  { %v315_v54 = vmul.f32 0.5, %v291_v46  ;;  %3883 = vtanh.f32 %v318_v39  ;;  %v311_v55 = vmul.f32 0.5, %v287_v47  ;;  %v317_v7 = vmul.f32 0.5, %v293_v50 }
 0x15e   :  { %v4372_v61 = vpop.permute.xlu1 %479  ;;  %v4374_v0 = vpop.permute.xlu0 %497  ;;  %3885 = vtanh.f32 %v314_v42  ;;  %v319_v5 = vmul.f32 0.5, %v295_v51  ;;  %v297_v20 = vmul.f32 0.5, %v273_v60  ;;  %v279_v21 = vadd.f32 %v4361_v41, %v222_v9 }
 0x15f   :  { %5847 = vst [vmem:[#allocation22_spill] sm:$0xff] %v4372_v61  ;;  %5848 = vst [vmem:[#allocation23_spill] sm:$0xff] %v4374_v0  ;;  %3887 = vtanh.f32 %v315_v54  ;;  %v289_v25 = vadd.f32 %v4361_v41, %v242_v27  ;;  %v298_v26 = vmul.f32 0.5, %v274_v6  ;;  %v301_v30 = vmul.f32 0.5, %v277_v12 }
 0x160   :  { %3889 = vtanh.f32 %v311_v55  ;;  %v275_v32 = vadd.f32 %v4361_v41, %v214_v18  ;;  %v226_v35 = vrot.slane %v164_v53, %v4231_v14  ;;  %v303_v37 = vmul.f32 0.5, %v279_v21 }
 0x161   :  { %3891 = vtanh.f32 %v320_v1  ;;  %v230_v27 = vrot.slane %v4332_v13, %v4231_v14  ;;  %v234_v38 = vrot.slane %v180_v22, %v4231_v14  ;;  %v313_v44 = vmul.f32 0.5, %v289_v25 }
 0x162   :  { %v4385_v23 = vpop.permute.xlu1 %512  ;;  %v4387_v24 = vpop.permute.xlu0 %475  ;;  %3893 = vtanh.f32 %v317_v7  ;;  %v304_v45 = vmul.f32 0.5, %v280_v31  ;;  %v276_v50 = vadd.f32 %v4351_v29, %v214_v18  ;;  %v299_v51 = vmul.f32 0.5, %v275_v32 }
 0x163   :  { %5849 = vst [vmem:[#allocation24_spill] sm:$0xff] %v4385_v23  ;;  %5850 = vst [vmem:[#allocation25_spill] sm:$0xff] %v4387_v24  ;;  %3895 = vtanh.f32 %v319_v5  ;;  %v283_v13 = vadd.f32 %v4361_v41, %v230_v27  ;;  %v284_v1 = vadd.f32 %v4351_v29, %v230_v27  ;;  %v281_v6 = vadd.f32 %v4361_v41, %v226_v35 }
 0x164   :  { %3897 = vtanh.f32 %v297_v20  ;;  %v282_v7 = vadd.f32 %v4351_v29, %v226_v35  ;;  %v285_v5 = vadd.f32 %v4361_v41, %v234_v38  ;;  %v286_v15 = vadd.f32 %v4351_v29, %v234_v38 }
 0x165   :  { %v3880_v36 = vpop.eup %3879  ;;  %3899 = vtanh.f32 %v298_v26  ;;  %v4413_v20 = vrot.slane %v758_v19, %v4226_v11  ;;  %v307_v32 = vmul.f32 0.5, %v283_v13  ;;  %v305_v41 = vmul.f32 0.5, %v281_v6 }
 0x166   :  { %v3882_v39 = vpop.eup %3881  ;;  %v364_v42 = vadd.f32 1.0, %v3880_v36  ;;  %v4399_v43 = vpop.permute.xlu0 %508  ;;  %3901 = vtanh.f32 %v301_v30  ;;  %v300_v30 = vmul.f32 0.5, %v276_v50  ;;  %v308_v36 = vmul.f32 0.5, %v284_v1 }
 0x167   :  { %5851 = vst [vmem:[#allocation26_spill] sm:$0xff] %v4399_v43  ;;  %v3884_v46 = vpop.eup %3883  ;;  %v360_v47 = vadd.f32 1.0, %v3882_v39  ;;  %v4402_v55 = vpop.permute.xlu1 %490  ;;  %3903 = vtanh.f32 %v302_v34  ;;  %v306_v38 = vmul.f32 0.5, %v282_v7  ;;  %v4421_v39 = vmul.f32 0.5, %v285_v5 }
 0x168   :  { %v3886_v52 = vpop.eup %3885  ;;  %v388_v53 = vmul.f32 0.5, %v364_v42  ;;  %v366_v54 = vadd.f32 1.0, %v3884_v46  ;;  %5852 = vst [vmem:[#allocation27_spill] sm:$0xff] %v4402_v55  ;;  %3905 = vtanh.f32 %v303_v37  ;;  %v4423_v42 = vmul.f32 0.5, %v286_v15 }
 0x169   :  { %v3888_v60 = vpop.eup %3887  ;;  %v384_v12 = vmul.f32 0.5, %v360_v47  ;;  %3907 = vtanh.f32 %v304_v45  ;;  %v362_v22 = vadd.f32 1.0, %v3886_v52 }
 0x16a   :  { %v4408_v9 = vpop.permute.xlu0 %486  ;;  %v3890_v18 = vpop.eup %3889  ;;  %v544_v21 = vmul.f32 %v4359_v40, %v388_v53  ;;  %3909 = vtanh.f32 %v299_v51  ;;  %v363_v26 = vadd.f32 1.0, %v3888_v60  ;;  %v390_v31 = vmul.f32 0.5, %v366_v54 }
 0x16b   :  { %v3892_v25 = vpop.eup %3891  ;;  %3911 = vtanh.f32 %v313_v44  ;;  %v540_v29 = vmul.f32 %v4372_v61, %v384_v12  ;;  %v4417_v19 = vpop.permute.xlu1 %523  ;;  %v4428_v44 = vadd.f32 1.0, %v3890_v18  ;;  %v4430_v47 = vmul.f32 0.5, %v362_v22 }
 0x16c   :  { %v3894_v34 = vpop.eup %3893  ;;  %v368_v35 = vadd.f32 1.0, %v3892_v25  ;;  %5853 = vst [vmem:[#allocation28_spill] sm:$0xff] %v4417_v19  ;;  %v4426_v46 = vmul.f32 %v4349_v28, %v544_v21  ;;  %v4432_v52 = vmul.f32 0.5, %v363_v26  ;;  %v4435_v53 = vmul.f32 %v4385_v23, %v390_v31 }
 0x16d   :  { %v3896_v37 = vpop.eup %3895  ;;  %v4437_v1 = vadd.f32 1.0, %v3894_v34  ;;  %3913 = vtanh.f32 %v300_v30  ;;  %v4441_v22 = vmul.f32 %v4349_v28, %v540_v29 }
 0x16e   :  { %v4419_v27 = vpop.permute.xlu0 %519  ;;  %v3898_v45 = vpop.eup %3897  ;;  %v392_v50 = vmul.f32 0.5, %v368_v35  ;;  %v367_v54 = vadd.f32 1.0, %v3896_v37  ;;  %3915 = vtanh.f32 %v307_v32 }
 0x16f   :  { %5854 = vst [vmem:[#allocation29_spill] sm:$0xff] %v4419_v27  ;;  %v3900_v51 = vpop.eup %3899  ;;  %v345_v13 = vadd.f32 1.0, %v3898_v45  ;;  %3917 = vtanh.f32 %v308_v36 }
 0x170   :  { %v3902_v60 = vpop.eup %3901  ;;  %v548_v6 = vmul.f32 %v4417_v19, %v392_v50  ;;  %v346_v7 = vadd.f32 1.0, %v3900_v51  ;;  %v391_v5 = vmul.f32 0.5, %v367_v54  ;;  %3919 = vtanh.f32 %v305_v41 }
 0x171   :  { %v3904_v12 = vpop.eup %3903  ;;  %v369_v15 = vmul.f32 0.5, %v345_v13  ;;  %v349_v18 = vadd.f32 1.0, %v3902_v60  ;;  %3921 = vtanh.f32 %v306_v38 }
 0x172   :  { %v3906_v21 = vpop.eup %3905  ;;  %v578_v25 = vmul.f32 %v4349_v28, %v548_v6  ;;  %v4444_v26 = vpop.permute.xlu0 %549  ;;  %v370_v31 = vmul.f32 0.5, %v346_v7  ;;  %v350_v34 = vadd.f32 1.0, %v3904_v12  ;;  %v547_v37 = vmul.f32 %v4419_v27, %v391_v5 }
 0x173   :  { %v3908_v35 = vpop.eup %3907  ;;  %v525_v30 = vmul.f32 %v4309_v59, %v369_v15  ;;  %v373_v45 = vmul.f32 0.5, %v349_v18  ;;  %v351_v50 = vadd.f32 1.0, %v3906_v21  ;;  %3923 = vtanh.f32 %v4421_v39 }
 0x174   :  { %v3910_v51 = vpop.eup %3909  ;;  %v526_v32 = vmul.f32 %v4307_v58, %v370_v31  ;;  %v374_v54 = vmul.f32 0.5, %v350_v34  ;;  %v352_v13 = vadd.f32 1.0, %v3908_v35  ;;  %3925 = vtanh.f32 %v4423_v42 }
 0x175   :  { %v555_v29 = vmul.f32 %v4444_v26, %v525_v30  ;;  %v529_v60 = vmul.f32 %v4303_v56, %v373_v45  ;;  %v375_v6 = vmul.f32 0.5, %v351_v50  ;;  %v347_v7 = vadd.f32 1.0, %v3910_v51  ;;  %v4451_v12 = vpop.eup %3911 }
 0x176   :  { %v556_v5 = vmul.f32 %v4349_v28, %v526_v32  ;;  %v530_v15 = vmul.f32 %v4305_v57, %v374_v54  ;;  %v376_v18 = vmul.f32 0.5, %v352_v13  ;;  %v4487_v39 = vsel %vm580_vm1, %v4426_v46, 0.0 }
 0x177   :  { %v579_v21 = vsel %vm50_vm0, %v555_v29, 0.0  ;;  %v559_v31 = vmul.f32 %v4444_v26, %v529_v60  ;;  %v531_v36 = vmul.f32 %v4313_v63, %v375_v6  ;;  %v371_v34 = vmul.f32 0.5, %v347_v7  ;;  %v3914_v54 = vpop.eup %3913 }
 0x178   :  { %v581_v35 = vsel %vm580_vm1, %v556_v5, 0.0  ;;  %v560_v30 = vmul.f32 %v4349_v28, %v530_v15  ;;  %v532_v45 = vmul.f32 %v4311_v62, %v376_v18  ;;  %v577_v60 = vmul.f32 %v4444_v26, %v547_v37  ;;  %v3916_v7 = vpop.eup %3915 }
 0x179   :  { %v582_v50 = vadd.f32 %v581_v35, %v579_v21  ;;  %v598_v51 = vsel %vm50_vm0, %v559_v31, 0.0  ;;  %v561_v32 = vmul.f32 %v4444_v26, %v531_v36  ;;  %v527_v41 = vmul.f32 %v4287_v48, %v371_v34  ;;  %v3918_v37 = vpop.eup %3917 }
 0x17a   :  { %v599_v13 = vsel %vm580_vm1, %v560_v30, 0.0  ;;  %v562_v29 = vmul.f32 %v4349_v28, %v532_v45  ;;  %v680_v6 = vsel %vm580_vm1, %v578_v25, 0.0  ;;  %v348_v18 = vadd.f32 1.0, %v3914_v54 }
 0x17b   :  { %v583_v5 = vrot.slane %v582_v50, 4  ;;  %v600_v15 = vadd.f32 %v599_v13, %v598_v51  ;;  %v607_v38 = vsel %vm50_vm0, %v561_v32, 0.0  ;;  %v557_v31 = vmul.f32 %v4444_v26, %v527_v41  ;;  %v4474_v32 = vpop.permute.xlu1 %716 }
 0x17c   :  { %v608_v21 = vsel %vm580_vm1, %v562_v29, 0.0  ;;  %v355_v36 = vadd.f32 1.0, %v3916_v7  ;;  %v679_v34 = vsel %vm50_vm0, %v577_v60, 0.0  ;;  %v372_v19 = vmul.f32 0.5, %v348_v18  ;;  %v3920_v7 = vpop.eup %3919 }
 0x17d   :  { %v584_v35 = vadd.f32 %v583_v5, %v582_v50  ;;  %v601_v30 = vrot.slane %v600_v15, 4  ;;  %v609_v45 = vadd.f32 %v608_v21, %v607_v38  ;;  %v383_v25 = vmul.f32 0.5, %v4428_v44 }
 0x17e   :  { %v589_v27 = vsel %vm50_vm0, %v557_v31, 0.0  ;;  %v379_v51 = vmul.f32 0.5, %v355_v36  ;;  %v681_v13 = vadd.f32 %v680_v6, %v679_v34  ;;  %v528_v41 = vmul.f32 %v4289_v49, %v372_v19  ;;  %v3922_v6 = vpop.eup %3921 }
 0x17f   :  { %v585_v54 = vrot.slane %v584_v35, 2  ;;  %v602_v29 = vadd.f32 %v601_v30, %v600_v15  ;;  %v610_v61 = vrot.slane %v609_v45, 4  ;;  %v356_v60 = vadd.f32 1.0, %v3918_v37 }
 0x180   :  { %v535_v50 = vmul.f32 %v4329_v10, %v379_v51  ;;  %v682_v5 = vrot.slane %v681_v13, 4  ;;  %v558_v21 = vmul.f32 %v4349_v28, %v528_v41  ;;  %v353_v15 = vadd.f32 1.0, %v3920_v7  ;;  %v4490_v51 = vpop.permute.xlu1 %718 }
 0x181   :  { %v586_v38 = vadd.f32 %v585_v54, %v584_v35  ;;  %v603_v44 = vrot.slane %v602_v29, 2  ;;  %v611_v18 = vadd.f32 %v610_v61, %v609_v45  ;;  %v380_v31 = vmul.f32 0.5, %v356_v60 }
 0x182   :  { %v565_v36 = vmul.f32 %v4444_v26, %v535_v50  ;;  %v542_v19 = vmul.f32 %v4402_v55, %v4430_v47  ;;  %v590_v37 = vsel %vm580_vm1, %v558_v21, 0.0  ;;  %v354_v45 = vadd.f32 1.0, %v3922_v6 }
 0x183   :  { %v604_v34 = vadd.f32 %v603_v44, %v602_v29  ;;  %v612_v30 = vrot.slane %v611_v18, 2  ;;  %v591_v61 = vadd.f32 %v590_v37, %v589_v27  ;;  %v536_v35 = vmul.f32 %v4327_v8, %v380_v31  ;;  %v699_v44 = vpop.permute.xlu0 %698 }
 0x184   :  { %v587_v54 = vrot.slane %v586_v38, 1  ;;  %v377_v42 = vmul.f32 0.5, %v353_v15  ;;  %v683_v7 = vadd.f32 %v682_v5, %v681_v13  ;;  %v625_v29 = vsel %vm50_vm0, %v565_v36, 0.0 }
 0x185   :  { %v605_v41 = vrot.slane %v604_v34, 1  ;;  %v592_v60 = vrot.slane %v591_v61, 4  ;;  %v566_v47 = vmul.f32 %v4349_v28, %v536_v35  ;;  %v378_v50 = vmul.f32 0.5, %v354_v45  ;;  %v3924_v45 = vpop.eup %3923 }
 0x186   :  { %v4496_v46 = vmul.f32 %v4374_v0, %v4432_v52  ;;  %v576_v27 = vmul.f32 %v4349_v28, %v4435_v53  ;;  %v613_v6 = vadd.f32 %v612_v30, %v611_v18  ;;  %v533_v13 = vmul.f32 %v4322_v4, %v377_v42 }
 0x187   :  { %v606_v21 = vadd.f32 %v605_v41, %v604_v34  ;;  %v593_v31 = vadd.f32 %v592_v60, %v591_v61  ;;  %v626_v15 = vsel %vm580_vm1, %v566_v47, 0.0  ;;  %v534_v5 = vmul.f32 %v4320_v3, %v378_v50  ;;  %v703_v41 = vpop.permute.xlu1 %702 }
 0x188   :  { %v389_v36 = vmul.f32 0.5, %v4437_v1  ;;  %v361_v37 = vadd.f32 1.0, %v4451_v12  ;;  %v588_v35 = vadd.f32 %v587_v54, %v586_v38  ;;  %v627_v52 = vadd.f32 %v626_v15, %v625_v29  ;;  %v3926_v1 = vpop.eup %3925  ;;  %v701_v15 = vpop.permute.xlu0 %700 }
 0x189   :  { %v594_v55 = vrot.slane %v593_v31, 2  ;;  %v563_v53 = vmul.f32 %v4444_v26, %v533_v13  ;;  %v564_v34 = vmul.f32 %v4349_v28, %v534_v5  ;;  %v684_v18 = vrot.slane %v683_v7, 2 }
 0x18a   :  { %v539_v30 = vmul.f32 %v4387_v24, %v383_v25  ;;  %v4509_v61 = vmul.f32 %v4349_v28, %v542_v19  ;;  %v614_v42 = vrot.slane %v613_v6, 1  ;;  %v628_v60 = vrot.slane %v627_v52, 4 }
 0x18b   :  { %v4512_v12 = vsel %vm580_vm1, %v576_v27, 0.0  ;;  %v736_v38 = vadd.f32 %v703_v41, %v606_v21  ;;  %v595_v54 = vadd.f32 %v594_v55, %v593_v31  ;;  %v616_v47 = vsel %vm50_vm0, %v563_v53, 0.0 }
 0x18c   :  { %v385_v29 = vmul.f32 0.5, %v361_v37  ;;  %v734_v50 = vadd.f32 %v699_v44, %v588_v35  ;;  %v629_v13 = vadd.f32 %v628_v60, %v627_v52  ;;  %v617_v25 = vsel %vm580_vm1, %v564_v34, 0.0  ;;  %v705_v34 = vpop.permute.xlu1 %704 }
 0x18d   :  { %v596_v5 = vrot.slane %v595_v54, 1  ;;  %v618_v19 = vadd.f32 %v617_v25, %v616_v47  ;;  %v4516_v24 = vadd.f32 %v684_v18, %v683_v7  ;;  %v357_v8 = vadd.f32 1.0, %v3924_v45  ;;  %v707_v18 = vpop.permute.xlu0 %706 }
 0x18e   :  { %v545_v11 = vmul.f32 %v4399_v43, %v389_v36  ;;  %v615_v10 = vadd.f32 %v614_v42, %v613_v6  ;;  %v630_v27 = vrot.slane %v629_v13, 2  ;;  %v358_v62 = vadd.f32 1.0, %v3926_v1 }
 0x18f   :  { %v748_v21 = vmax.f32 %v736_v38, 0.0  ;;  %v597_v55 = vadd.f32 %v596_v5, %v595_v54  ;;  %v619_v31 = vrot.slane %v618_v19, 4  ;;  %v381_v53 = vmul.f32 0.5, %v357_v8 }
 0x190   :  { %v541_v44 = vmul.f32 %v4408_v9, %v385_v29  ;;  %v746_v37 = vmax.f32 %v734_v50, 0.0  ;;  %v631_v35 = vadd.f32 %v630_v27, %v629_v13  ;;  %v382_v52 = vmul.f32 0.5, %v358_v62 }
 0x191   :  { %v735_v41 = vadd.f32 %v701_v15, %v597_v55  ;;  %v620_v60 = vadd.f32 %v619_v31, %v618_v19  ;;  %v686_v7 = vrot.slane %v4516_v24, 1  ;;  %v537_v45 = vmul.f32 %v4339_v17, %v381_v53 }
 0x192   :  { %v737_v36 = vadd.f32 %v705_v34, %v615_v10  ;;  %v632_v6 = vrot.slane %v631_v35, 1  ;;  %v538_v42 = vmul.f32 %v4337_v16, %v382_v52  ;;  %v569_v1 = vmul.f32 %v4444_v26, %v539_v30 }
 0x193   :  { %v765_v8 = vmul.f32 %v4393_v33, %v748_v21  ;;  %v747_v38 = vmax.f32 %v735_v41, 0.0  ;;  %v621_v54 = vrot.slane %v620_v60, 2  ;;  %v567_v62 = vmul.f32 %v4444_v26, %v537_v45 }
 0x194   :  { %v763_v47 = vmul.f32 %v4393_v33, %v746_v37  ;;  %v633_v29 = vadd.f32 %v632_v6, %v631_v35  ;;  %v568_v50 = vmul.f32 %v4349_v28, %v538_v42  ;;  %v643_v10 = vsel %vm50_vm0, %v569_v1, 0.0  ;;  %v709_v37 = vpop.permute.xlu1 %708  ;;  %v711_v35 = vpop.permute.xlu0 %710 }
 0x195   :  { %v764_v15 = vmul.f32 %v4393_v33, %v747_v38  ;;  %v622_v13 = vadd.f32 %v621_v54, %v620_v60  ;;  %v634_v25 = vsel %vm50_vm0, %v567_v62, 0.0  ;;  %v644_v30 = vsel %vm580_vm1, %v4441_v22, 0.0 }
 0x196   :  { %v749_v5 = vmax.f32 %v737_v36, 0.0  ;;  %v635_v19 = vsel %vm580_vm1, %v568_v50, 0.0  ;;  %v645_v27 = vadd.f32 %v644_v30, %v643_v10  ;;  %v571_v21 = vmul.f32 %v4444_v26, %v541_v44 }
 0x197   :  { %v4536_v55 = vadd.f32 %v4413_v20, %v765_v8  ;;  %v4539_v28 = vadd.f32 %v4413_v20, %v764_v15  ;;  %v623_v31 = vrot.slane %v622_v13, 1  ;;  %v636_v53 = vadd.f32 %v635_v19, %v634_v25 }
 0x198   :  { %v646_v52 = vrot.slane %v645_v27, 4  ;;  %v652_v22 = vsel %vm50_vm0, %v571_v21, 0.0  ;;  %v653_v34 = vsel %vm580_vm1, %v4509_v61, 0.0  ;;  %v573_v44 = vmul.f32 %v4444_v26, %v4496_v46 }
 0x199   :  { %v739_v41 = vadd.f32 %v709_v37, %v633_v29  ;;  %v624_v60 = vadd.f32 %v623_v31, %v622_v13  ;;  %v637_v45 = vrot.slane %v636_v53, 4  ;;  %v654_v36 = vadd.f32 %v653_v34, %v652_v22 }
 0x19a   :  { %v816_v6 = vrot.slane %v4539_v28, 7  ;;  %v647_v42 = vadd.f32 %v646_v52, %v645_v27  ;;  %v575_v1 = vmul.f32 %v4444_v26, %v545_v11  ;;  %v661_v8 = vsel %vm50_vm0, %v573_v44, 0.0  ;;  %v713_v26 = vpop.permute.xlu0 %712 }
 0x19b   :  { %v4550_v38 = vadd.f32 %v4413_v20, %v763_v47  ;;  %v738_v54 = vadd.f32 %v707_v18, %v624_v60  ;;  %v638_v62 = vadd.f32 %v637_v45, %v636_v53  ;;  %v655_v61 = vrot.slane %v654_v36, 4  ;;  %v721_v60 = vpop.permute.xlu1 %720 }
 0x19c   :  { %v819_v50 = vrot.slane %v4536_v55, 6  ;;  %v766_v46 = vmul.f32 %v4393_v33, %v749_v5  ;;  %v648_v29 = vrot.slane %v647_v42, 2  ;;  %v663_v10 = vadd.f32 %v4487_v39, %v661_v8 }
 0x19d   :  { %v751_v15 = vmax.f32 %v739_v41, 0.0  ;;  %v750_v13 = vmax.f32 %v738_v54, 0.0  ;;  %v639_v25 = vrot.slane %v638_v62, 2  ;;  %v656_v30 = vadd.f32 %v655_v61, %v654_v36 }
 0x19e   :  { %v818_v11 = vsel %vm817_vm2, %v816_v6, %v4550_v38  ;;  %v649_v47 = vadd.f32 %v648_v29, %v647_v42  ;;  %v664_v19 = vrot.slane %v663_v10, 4  ;;  %v670_v18 = vsel %vm50_vm0, %v575_v1, 0.0 }
 0x19f   :  { %v767_v27 = vmul.f32 %v4393_v33, %v750_v13  ;;  %v640_v21 = vadd.f32 %v639_v25, %v638_v62  ;;  %v657_v31 = vrot.slane %v656_v30, 2  ;;  %v672_v5 = vadd.f32 %v4512_v12, %v670_v18 }
 0x1a0   :  { %v4561_v39 = vadd.f32 %v4413_v20, %v766_v46  ;;  %v650_v53 = vrot.slane %v649_v47, 1  ;;  %v665_v37 = vadd.f32 %v664_v19, %v663_v10  ;;  %v687_v52 = vadd.f32 %v686_v7, %v4516_v24  ;;  %v715_v24 = vpop.permute.xlu0 %714 }
 0x1a1   :  { %v641_v22 = vrot.slane %v640_v21, 1  ;;  %v658_v34 = vadd.f32 %v657_v31, %v656_v30  ;;  %v673_v44 = vrot.slane %v672_v5, 4  ;;  %v768_v41 = vmul.f32 %v4393_v33, %v751_v15 }
 0x1a2   :  { %v651_v45 = vadd.f32 %v650_v53, %v649_v47  ;;  %v821_v36 = vsel %vm820_vm3, %v819_v50, %v818_v11  ;;  %v666_v12 = vrot.slane %v665_v37, 2  ;;  %v4569_v6 = vadd.f32 %v4413_v20, %v767_v27 }
 0x1a3   :  { %v642_v42 = vadd.f32 %v641_v22, %v640_v21  ;;  %v659_v1 = vrot.slane %v658_v34, 1  ;;  %v674_v8 = vadd.f32 %v673_v44, %v672_v5  ;;  %v822_v54 = vrot.slane %v4561_v39, 5 }
 0x1a4   :  { %v741_v62 = vadd.f32 %v713_v26, %v651_v45  ;;  %v667_v7 = vadd.f32 %v666_v12, %v665_v37  ;;  %v745_v61 = vadd.f32 %v721_v60, %v687_v52  ;;  %v4573_v15 = vadd.f32 %v4413_v20, %v768_v41 }
 0x1a5   :  { %v740_v46 = vadd.f32 %v711_v35, %v642_v42  ;;  %v660_v29 = vadd.f32 %v659_v1, %v658_v34  ;;  %v675_v10 = vrot.slane %v674_v8, 2  ;;  %v824_v13 = vsel %vm823_vm4, %v822_v54, %v821_v36 }
 0x1a6   :  { %v753_v50 = vmax.f32 %v741_v62, 0.0  ;;  %v668_v25 = vrot.slane %v667_v7, 1  ;;  %v825_v30 = vrot.slane %v4569_v6, 4  ;;  %v828_v5 = vrot.slane %v4573_v15, 3 }
 0x1a7   :  { %v752_v11 = vmax.f32 %v740_v46, 0.0  ;;  %v742_v47 = vadd.f32 %v715_v24, %v660_v29  ;;  %v676_v19 = vadd.f32 %v675_v10, %v674_v8  ;;  %v757_v53 = vmax.f32 %v745_v61, 0.0 }
 0x1a8   :  { %v770_v26 = vmul.f32 %v4393_v33, %v753_v50  ;;  %v669_v18 = vadd.f32 %v668_v25, %v667_v7  ;;  %v827_v21 = vsel %vm826_vm5, %v825_v30, %v824_v13 }
 0x1a9   :  { %v769_v35 = vmul.f32 %v4393_v33, %v752_v11  ;;  %v754_v27 = vmax.f32 %v742_v47, 0.0  ;;  %v677_v31 = vrot.slane %v676_v19, 1  ;;  %v830_v41 = vsel %vm829_vm6, %v828_v5, %v827_v21 }
 0x1aa   :  { %v4582_v37 = vadd.f32 %v4413_v20, %v770_v26  ;;  %v743_v52 = vadd.f32 %v4474_v32, %v669_v18  ;;  %v774_v12 = vmul.f32 %v4393_v33, %v757_v53 }
 0x1ab   :  { %v4586_v22 = vadd.f32 %v4413_v20, %v769_v35  ;;  %v678_v34 = vadd.f32 %v677_v31, %v676_v19  ;;  %v771_v44 = vmul.f32 %v4393_v33, %v754_v27 }
 0x1ac   :  { %v755_v60 = vmax.f32 %v743_v52, 0.0  ;;  %v834_v42 = vrot.slane %v4582_v37, 1  ;;  %v4606_v7 = vadd.f32 %v4413_v20, %v774_v12 }
 0x1ad   :  { %v831_v45 = vrot.slane %v4586_v22, 2  ;;  %v744_v36 = vadd.f32 %v4490_v51, %v678_v34  ;;  %v4597_v54 = vadd.f32 %v4413_v20, %v771_v44  ;;  %v3682_v34 = vld [vmem:[%s5765_s2 + $0x40] sm:$0xff]  ;;  %v3683_v44 = vld [vmem:[%s5765_s2 + $0x48] sm:$0xff] }
 0x1ae   :  { %v772_v32 = vmul.f32 %v4393_v33, %v755_v60  ;;  %v841_v50 = vrot.slane %v4606_v7, 5  ;;  %v3838_v60 = vpack.c.bf16 %v3683_v44, %v3682_v34 }
 0x1af   :  { %v833_v1 = vsel %vm832_vm7, %v831_v45, %v830_v41  ;;  %v756_v8 = vmax.f32 %v744_v36, 0.0  ;;  %v3684_v41 = vld [vmem:[%s5765_s2 + $0x50] sm:$0xff]  ;;  %v3685_v45 = vld [vmem:[%s5765_s2 + $0x58] sm:$0xff] }
 0x1b0   :  { %v836_v62 = vsel %vm835_vm8, %v834_v42, %v833_v1  ;;  %v4601_v24 = vadd.f32 %v4413_v20, %v772_v32  ;;  %v3842_v36 = vpack.c.bf16 %v3685_v45, %v3684_v41  ;;  %3839 = vmatprep.subr.bf16.mxu0 %v3838_v60 }
 0x1b1   :  { %3768 = vmatprep.mubr.msk.f32.mxu1 %vm50_vm0, %v836_v62  ;;  %v773_v51 = vmul.f32 %v4393_v33, %v756_v8  ;;  %v3678_v33 = vld [vmem:[%s5766_s3 + $0x1] ss:$0 sm:$0xff]  ;;  %3841 = vmatpush3.bf16.msra.mxu0 %v3838_v60 }
 0x1b2   :  { %v837_v61 = vrot.slane %v4601_v24, 7  ;;  %3843 = vmatprep.subr.bf16.mxu0 %v3842_v36 }
 0x1b3   :  { %v4610_v46 = vadd.f32 %v4413_v20, %v773_v51 }
 0x1b4   :  { %v838_v29 = vsel %vm817_vm2, %v837_v61, %v4597_v54 }
 0x1b5   :  { %v839_v10 = vrot.slane %v4610_v46, 6  ;;  %3845 = vmatpush3.bf16.msra.mxu0 %v3842_v36 }
 0x1b7   :  { %v840_v13 = vsel %vm820_vm3, %v839_v10, %v838_v29 }
 0x1b8   :  { %v842_v25 = vsel %vm823_vm4, %v841_v50, %v840_v13 }
 0x1b9   :  { %3769 = vmatmul.mubr.msk.f32.vlgmr.msra.gmra.mrb[0].mxu1 %vm50_vm0, %v842_v25 }
 0x28c   :  { %v3770_v30 = vpop.f32.mrb[0].mxu1 }
 0x28d   :  { %v919_v20 = vadd.f32 %v3770_v30, %v3678_v33  ;;  %v913_v11 = vpop.f32.mrb[1].mxu1 }
 0x28e   :  { %v914_v47 = vadd.f32 %v3678_v33, %v913_v11 }
 0x28f   :  { %1059 = vrot.lane.b32.xlu1 %v919_v20, %s4144_s28  ;;  %v1352_v19 = vrot.slane %v919_v20, 1  ;;  %v1353_v26 = vrot.slane %v919_v20, 2  ;;  %v1354_v52 = vrot.slane %v919_v20, 3  ;;  %v979_v12 = vrot.slane %v919_v20, %v4318_v2 }
 0x290   :  { %1057 = vrot.lane.b32.xlu0 %v914_v47, %s4144_s28  ;;  %v1345_v18 = vrot.slane %v914_v47, 1  ;;  %v1346_v35 = vrot.slane %v914_v47, 2  ;;  %v1348_v27 = vrot.slane %v914_v47, 4  ;;  %v1347_v21 = vrot.slane %v914_v47, 3 }
 0x291   :  { %v1350_v31 = vrot.slane %v914_v47, 6  ;;  %v1349_v5 = vrot.slane %v914_v47, 5  ;;  %v1351_v53 = vrot.slane %v914_v47, 7  ;;  %v931_v42 = vrot.slane %v914_v47, %v4318_v2 }
 0x292   :  { %v980_v32 = vcombine.high %v979_v12, %v979_v12  ;;  %v4653_v1 = vrot.slane %v979_v12, %v4318_v2  ;;  %v924_v61 = vcombine.high %v914_v47, %v914_v47 }
 0x293   :  { %1209 = vrot.lane.b32.xlu1 %v919_v20, %s4143_s27  ;;  %v939_v8 = vcombine.high %v931_v42, %v931_v42  ;;  %v947_v51 = vrot.slane %v931_v42, %v4318_v2 }
 0x294   :  { %1207 = vrot.lane.b32.xlu0 %v914_v47, %s4143_s27  ;;  %v4656_v62 = vrot.slane %v980_v32, %v4318_v2  ;;  %v995_v29 = vcombine.high %v4653_v1, %v4653_v1  ;;  %v938_v33 = vrot.slane %v924_v61, %v4318_v2 }
 0x295   :  { %v961_v10 = vrot.slane %v939_v8, %v4318_v2  ;;  %v1000_v13 = vrot.slane %v947_v51, %v4231_v14  ;;  %v969_v25 = vcombine.high %v947_v51, %v947_v51 }
 0x296   :  { %v1036_v50 = vrot.slane %v4656_v62, %v4231_v14 }
 0x297   :  { %1373 = vrot.lane.b32.xlu1 %v1352_v19, %s4145_s1  ;;  %v971_v61 = vcombine.high %v961_v10, %v961_v10 }
 0x298   :  { %1355 = vrot.lane.b32.xlu0 %v914_v47, %s4145_s1 }
 0x29b   :  { %1375 = vrot.lane.b32.xlu1 %v1353_v26, %s4145_s1  ;;  %v1004_v26 = vrot.slane %v961_v10, %v4231_v14 }
 0x29c   :  { %1357 = vrot.lane.b32.xlu0 %v1345_v18, %s4145_s1 }
 0x29f   :  { %1359 = vrot.lane.b32.xlu1 %v1346_v35, %s4145_s1 }
 0x2a0   :  { %1363 = vrot.lane.b32.xlu0 %v1348_v27, %s4145_s1 }
 0x2a3   :  { %1361 = vrot.lane.b32.xlu1 %v1347_v21, %s4145_s1 }
 0x2a4   :  { %1367 = vrot.lane.b32.xlu0 %v1350_v31, %s4145_s1 }
 0x2a7   :  { %1365 = vrot.lane.b32.xlu1 %v1349_v5, %s4145_s1  ;;  %v1008_v5 = vrot.slane %v969_v25, %v4231_v14 }
 0x2a8   :  { %1369 = vrot.lane.b32.xlu0 %v1351_v53, %s4145_s1  ;;  %v954_v53 = vrot.slane %v938_v33, %v4318_v2 }
 0x2aa   :  { %v1016_v8 = vrot.slane %v954_v53, %v4231_v14 }
 0x2ab   :  { %1377 = vrot.lane.b32.xlu1 %v1354_v52, %s4145_s1 }
 0x2ac   :  { %1371 = vrot.lane.b32.xlu0 %v919_v20, %s4145_s1  ;;  %v1040_v20 = vrot.slane %v995_v29, %v4231_v14 }
 0x301   :  { %v4666_v30 = vpop.permute.xlu1 %1059 }
 0x302   :  { %v4669_v11 = vpop.permute.xlu0 %1057  ;;  %v1082_v47 = vadd.f32 %v4666_v30, %v1036_v50  ;;  %v1064_v19 = vadd.f32 %v4666_v30, %v1000_v13  ;;  %v1066_v41 = vadd.f32 %v4666_v30, %v1004_v26  ;;  %v1084_v60 = vadd.f32 %v4666_v30, %v1040_v20 }
 0x303   :  { %v1081_v18 = vadd.f32 %v4669_v11, %v1036_v50  ;;  %v1063_v35 = vadd.f32 %v4669_v11, %v1000_v13  ;;  %v1083_v27 = vadd.f32 %v4669_v11, %v1040_v20  ;;  %v1065_v31 = vadd.f32 %v4669_v11, %v1004_v26 }
 0x304   :  { %v1106_v21 = vmul.f32 0.5, %v1082_v47  ;;  %v1088_v44 = vmul.f32 0.5, %v1064_v19  ;;  %v1067_v36 = vadd.f32 %v4669_v11, %v1008_v5  ;;  %v1090_v42 = vmul.f32 0.5, %v1066_v41 }
 0x305   :  { %v1105_v52 = vmul.f32 0.5, %v1081_v18  ;;  %v1087_v34 = vmul.f32 0.5, %v1063_v35  ;;  %v1107_v45 = vmul.f32 0.5, %v1083_v27  ;;  %v1089_v12 = vmul.f32 0.5, %v1065_v31 }
 0x306   :  { %3927 = vtanh.f32 %v1106_v21  ;;  %v1068_v32 = vadd.f32 %v4666_v30, %v1008_v5  ;;  %v1108_v51 = vmul.f32 0.5, %v1084_v60  ;;  %v1091_v29 = vmul.f32 0.5, %v1067_v36 }
 0x307   :  { %3929 = vtanh.f32 %v1105_v52  ;;  %v1071_v50 = vadd.f32 %v4669_v11, %v1016_v8  ;;  %v1072_v25 = vadd.f32 %v4666_v30, %v1016_v8  ;;  %v1012_v20 = vrot.slane %v971_v61, %v4231_v14 }
 0x308   :  { %3931 = vtanh.f32 %v1087_v34  ;;  %v1092_v13 = vmul.f32 0.5, %v1068_v32  ;;  %v940_v47 = vcombine.high %v938_v33, %v938_v33  ;;  %v970_v35 = vcombine.high %v954_v53, %v954_v53 }
 0x309   :  { %3933 = vtanh.f32 %v1088_v44  ;;  %v1095_v19 = vmul.f32 0.5, %v1071_v50  ;;  %v1069_v18 = vadd.f32 %v4669_v11, %v1012_v20  ;;  %v1096_v27 = vmul.f32 0.5, %v1072_v25 }
 0x30a   :  { %3935 = vtanh.f32 %v1107_v45  ;;  %v4690_v31 = vrot.slane %v940_v47, %v4318_v2  ;;  %v1070_v34 = vadd.f32 %v4666_v30, %v1012_v20  ;;  %v1024_v41 = vrot.slane %v970_v35, %v4231_v14  ;;  %v4704_v47 = vpop.permute.xlu0 %1207 }
 0x30b   :  { %3937 = vtanh.f32 %v1089_v12  ;;  %v1093_v33 = vmul.f32 0.5, %v1069_v18 }
 0x30c   :  { %3939 = vtanh.f32 %v1090_v42  ;;  %v1075_v32 = vadd.f32 %v4669_v11, %v1024_v41  ;;  %v4697_v8 = vrot.slane %v4690_v31, %v4231_v14  ;;  %v1076_v18 = vadd.f32 %v4666_v30, %v1024_v41 }
 0x30d   :  { %3941 = vtanh.f32 %v1108_v51 }
 0x30e   :  { %3943 = vtanh.f32 %v1091_v29  ;;  %v1100_v25 = vmul.f32 0.5, %v1076_v18 }
 0x30f   :  { %3945 = vtanh.f32 %v1092_v13  ;;  %v1094_v13 = vmul.f32 0.5, %v1070_v34 }
 0x310   :  { %v3928_v26 = vpop.eup %3927  ;;  %3947 = vtanh.f32 %v1095_v19 }
 0x311   :  { %v3930_v10 = vpop.eup %3929  ;;  %v1154_v36 = vadd.f32 1.0, %v3928_v26  ;;  %3949 = vtanh.f32 %v1096_v27 }
 0x312   :  { %v3932_v21 = vpop.eup %3931  ;;  %v1153_v45 = vadd.f32 1.0, %v3930_v10  ;;  %3951 = vtanh.f32 %v1093_v33  ;;  %v4708_v10 = vpop.permute.xlu1 %1209 }
 0x313   :  { %v3934_v5 = vpop.eup %3933  ;;  %v1135_v52 = vadd.f32 1.0, %v3932_v21  ;;  %v1178_v21 = vmul.f32 0.5, %v1154_v36  ;;  %3953 = vtanh.f32 %v1094_v13 }
 0x314   :  { %v1136_v44 = vadd.f32 1.0, %v3934_v5  ;;  %v3936_v60 = vpop.eup %3935  ;;  %v1177_v27 = vmul.f32 0.5, %v1153_v45 }
 0x315   :  { %v1159_v53 = vmul.f32 0.5, %v1135_v52  ;;  %v3938_v12 = vpop.eup %3937 }
 0x316   :  { %v1160_v42 = vmul.f32 0.5, %v1136_v44  ;;  %v3940_v61 = vpop.eup %3939  ;;  %v1137_v50 = vadd.f32 1.0, %v3938_v12  ;;  %v1073_v12 = vadd.f32 %v4669_v11, %v4697_v8 }
 0x317   :  { %v1183_v29 = vmul.f32 %v1159_v53, %v4309_v59  ;;  %v3942_v20 = vpop.eup %3941  ;;  %v1138_v26 = vadd.f32 1.0, %v3940_v61  ;;  %v1099_v53 = vmul.f32 0.5, %v1075_v32  ;;  %v1155_v61 = vadd.f32 1.0, %v3936_v60 }
 0x318   :  { %v1184_v19 = vmul.f32 %v1160_v42, %v4307_v58  ;;  %v3944_v35 = vpop.eup %3943  ;;  %v1161_v52 = vmul.f32 0.5, %v1137_v50  ;;  %v1156_v33 = vadd.f32 1.0, %v3942_v20  ;;  %v1202_v32 = vmul.f32 %v1178_v21, %v4359_v40 }
 0x319   :  { %v1213_v5 = vmul.f32 %v4704_v47, %v1183_v29  ;;  %v1162_v44 = vmul.f32 0.5, %v1138_v26  ;;  %v3946_v42 = vpop.eup %3945  ;;  %v1139_v29 = vadd.f32 1.0, %v3944_v35  ;;  %v1097_v13 = vmul.f32 0.5, %v1073_v12 }
 0x31a   :  { %v1214_v34 = vmul.f32 %v4708_v10, %v1184_v19  ;;  %v1185_v41 = vmul.f32 %v1161_v52, %v4287_v48  ;;  %v3948_v50 = vpop.eup %3947  ;;  %v1201_v19 = vmul.f32 %v1177_v27, %v4374_v0  ;;  %v1140_v20 = vadd.f32 1.0, %v3946_v42 }
 0x31b   :  { %v1237_v51 = vsel %vm50_vm0, %v1213_v5, 0.0  ;;  %v1186_v36 = vmul.f32 %v1162_v44, %v4289_v49  ;;  %v1163_v52 = vmul.f32 0.5, %v1139_v29  ;;  %v3950_v48 = vpop.eup %3949  ;;  %v1179_v58 = vmul.f32 0.5, %v1155_v61 }
 0x31c   :  { %v1238_v45 = vsel %vm580_vm1, %v1214_v34, 0.0  ;;  %v1215_v26 = vmul.f32 %v4704_v47, %v1185_v41  ;;  %v1180_v34 = vmul.f32 0.5, %v1156_v33  ;;  %v1164_v49 = vmul.f32 0.5, %v1140_v20  ;;  %v3952_v42 = vpop.eup %3951 }
 0x31d   :  { %v1216_v60 = vmul.f32 %v4708_v10, %v1186_v36  ;;  %v1239_v5 = vadd.f32 %v1238_v45, %v1237_v51  ;;  %v1187_v27 = vmul.f32 %v1163_v52, %v4303_v56  ;;  %v1143_v21 = vadd.f32 1.0, %v3948_v50 }
 0x31e   :  { %v1246_v44 = vsel %vm50_vm0, %v1215_v26, 0.0  ;;  %v1231_v41 = vmul.f32 %v4704_v47, %v1201_v19  ;;  %v1232_v18 = vmul.f32 %v4708_v10, %v1202_v32  ;;  %3955 = vtanh.f32 %v1099_v53  ;;  %v3954_v53 = vpop.eup %3953 }
 0x31f   :  { %v1247_v35 = vsel %vm580_vm1, %v1216_v60, 0.0  ;;  %v1188_v12 = vmul.f32 %v1164_v49, %v4305_v57  ;;  %v1217_v51 = vmul.f32 %v4704_v47, %v1187_v27  ;;  %v1144_v61 = vadd.f32 1.0, %v3950_v48 }
 0x320   :  { %v1248_v36 = vadd.f32 %v1247_v35, %v1246_v44  ;;  %v1167_v33 = vmul.f32 0.5, %v1143_v21  ;;  %v1240_v45 = vrot.slane %v1239_v5, 4  ;;  %v1203_v29 = vmul.f32 %v1179_v58, %v4399_v43 }
 0x321   :  { %v1204_v26 = vmul.f32 %v1180_v34, %v4385_v23  ;;  %v1218_v50 = vmul.f32 %v4708_v10, %v1188_v12  ;;  %v1168_v19 = vmul.f32 0.5, %v1144_v61  ;;  %3957 = vtanh.f32 %v1100_v25 }
 0x322   :  { %v1249_v60 = vrot.slane %v1248_v36, 4  ;;  %v1191_v32 = vmul.f32 %v1167_v33, %v4322_v4  ;;  %v1318_v20 = vsel %vm50_vm0, %v1231_v41, 0.0  ;;  %v1319_v49 = vsel %vm580_vm1, %v1232_v18, 0.0 }
 0x323   :  { %v1255_v48 = vsel %vm50_vm0, %v1217_v51, 0.0  ;;  %v1256_v44 = vsel %vm580_vm1, %v1218_v50, 0.0  ;;  %v1192_v58 = vmul.f32 %v1168_v19, %v4320_v3  ;;  %v1141_v35 = vadd.f32 1.0, %v3952_v42  ;;  %v4752_v42 = vld [vmem:[%s5767_s4 + $0x2] sm:$0x3] }
 0x324   :  { %v1250_v52 = vadd.f32 %v1249_v60, %v1248_v36  ;;  %v1221_v34 = vmul.f32 %v4704_v47, %v1191_v32  ;;  %v1241_v27 = vadd.f32 %v1240_v45, %v1239_v5  ;;  %v1233_v21 = vmul.f32 %v4704_v47, %v1203_v29 }
 0x325   :  { %v1234_v25 = vmul.f32 %v4708_v10, %v1204_v26  ;;  %v1257_v61 = vadd.f32 %v1256_v44, %v1255_v48  ;;  %v1222_v41 = vmul.f32 %v4708_v10, %v1192_v58  ;;  %v1142_v18 = vadd.f32 1.0, %v3954_v53  ;;  %v5856_v48 = vld [vmem:[#allocation14_spill] sm:$0xff] }
 0x326   :  { %v1251_v12 = vrot.slane %v1250_v52, 2  ;;  %v5855_v36 = vcombine.high %v4690_v31, %v4690_v31  ;;  %v1320_v33 = vadd.f32 %v1319_v49, %v1318_v20  ;;  %v1273_v60 = vsel %vm50_vm0, %v1221_v34, 0.0 }
 0x327   :  { %v1074_v5 = vadd.f32 %v4666_v30, %v4697_v8  ;;  %3959 = vtanh.f32 %v1097_v13  ;;  %v1258_v45 = vrot.slane %v1257_v61, 4  ;;  %v1274_v29 = vsel %vm580_vm1, %v1222_v41, 0.0 }
 0x328   :  { %v1028_v51 = vrot.slane %v5855_v36, %v4231_v14  ;;  %v1165_v26 = vmul.f32 0.5, %v1141_v35  ;;  %v1166_v50 = vmul.f32 0.5, %v1142_v18  ;;  %v3956_v19 = vpop.eup %3955  ;;  %v1242_v31 = vrot.slane %v1241_v27, 2 }
 0x329   :  { %v1327_v32 = vsel %vm50_vm0, %v1233_v21, 0.0  ;;  %v1328_v53 = vsel %vm580_vm1, %v1234_v25, 0.0  ;;  %v1252_v20 = vadd.f32 %v1251_v12, %v1250_v52  ;;  %v1259_v49 = vadd.f32 %v1258_v45, %v1257_v61 }
 0x32a   :  { %v1275_v8 = vadd.f32 %v1274_v29, %v1273_v60  ;;  %v1189_v13 = vmul.f32 %v1165_v26, %v4313_v63  ;;  %v1190_v44 = vmul.f32 %v1166_v50, %v5856_v48  ;;  %v4761_v58 = vrot.slane %v4752_v42, %v4231_v14  ;;  %v4773_v26 = vpop.permute.xlu1 %1373  ;;  %v1356_v50 = vpop.permute.xlu0 %1355 }
 0x32b   :  { %v1077_v34 = vadd.f32 %v4669_v11, %v1028_v51  ;;  %v1078_v35 = vadd.f32 %v4666_v30, %v1028_v51  ;;  %v1032_v21 = vrot.slane %v4653_v1, %v4231_v14  ;;  %v3958_v41 = vpop.eup %3957  ;;  %v1329_v25 = vadd.f32 %v1328_v53, %v1327_v32 }
 0x32c   :  { %v1260_v52 = vrot.slane %v1259_v49, 2  ;;  %v1219_v12 = vmul.f32 %v4704_v47, %v1189_v13  ;;  %v1220_v61 = vmul.f32 %v4708_v10, %v1190_v44  ;;  %v1243_v18 = vadd.f32 %v1242_v31, %v1241_v27 }
 0x32d   :  { %v1253_v36 = vrot.slane %v1252_v20, 1  ;;  %v1098_v60 = vmul.f32 0.5, %v1074_v5  ;;  %v5857_v45 = vcombine.high %v4656_v62, %v4656_v62  ;;  %v1321_v51 = vrot.slane %v1320_v33, 4 }
 0x32e   :  { %v1276_v1 = vrot.slane %v1275_v8, 4  ;;  %v1264_v32 = vsel %vm50_vm0, %v1219_v12, 0.0  ;;  %v1265_v53 = vsel %vm580_vm1, %v1220_v61, 0.0  ;;  %v1261_v13 = vadd.f32 %v1260_v52, %v1259_v49  ;;  %v4781_v56 = vpop.permute.xlu1 %1375 }
 0x32f   :  { %v1044_v29 = vrot.slane %v5857_v45, %v4231_v14  ;;  %v1101_v48 = vmul.f32 0.5, %v1077_v34  ;;  %v1102_v44 = vmul.f32 0.5, %v1078_v35  ;;  %v1330_v5 = vrot.slane %v1329_v25, 4 }
 0x330   :  { %v1266_v31 = vadd.f32 %v1265_v53, %v1264_v32  ;;  %v1147_v63 = vadd.f32 1.0, %v3956_v19  ;;  %v1244_v3 = vrot.slane %v1243_v18, 1  ;;  %v1254_v4 = vadd.f32 %v1253_v36, %v1252_v20  ;;  %v1358_v32 = vpop.permute.xlu0 %1357 }
 0x331   :  { %v1085_v27 = vadd.f32 %v4669_v11, %v1044_v29  ;;  %v1086_v62 = vadd.f32 %v4666_v30, %v1044_v29  ;;  %v3960_v45 = vpop.eup %3959  ;;  %v1079_v23 = vadd.f32 %v4669_v11, %v1032_v21  ;;  %v1080_v43 = vadd.f32 %v4666_v30, %v1032_v21 }
 0x332   :  { %v1322_v12 = vadd.f32 %v1321_v51, %v1320_v33  ;;  %v1277_v57 = vadd.f32 %v1276_v1, %v1275_v8  ;;  %v1267_v61 = vrot.slane %v1266_v31, 4  ;;  %v1148_v49 = vadd.f32 1.0, %v3958_v41 }
 0x333   :  { %v1262_v34 = vrot.slane %v1261_v13, 1  ;;  %v1171_v35 = vmul.f32 0.5, %v1147_v63  ;;  %3961 = vtanh.f32 %v1098_v60  ;;  %v1109_v52 = vmul.f32 0.5, %v1085_v27 }
 0x334   :  { %v1331_v19 = vadd.f32 %v1330_v5, %v1329_v25  ;;  %v1268_v29 = vadd.f32 %v1267_v61, %v1266_v31  ;;  %v1172_v53 = vmul.f32 0.5, %v1148_v49  ;;  %v1110_v40 = vmul.f32 0.5, %v1086_v62  ;;  %v1360_v62 = vpop.permute.xlu1 %1359 }
 0x335   :  { %v1245_v20 = vadd.f32 %v1244_v3, %v1243_v18  ;;  %v1392_v36 = vadd.f32 %v1358_v32, %v1254_v4  ;;  %v1195_v11 = vmul.f32 %v1171_v35, %v4339_v17  ;;  %v1145_v30 = vadd.f32 1.0, %v3960_v45  ;;  %v5858_v35 = vld [vmem:[#allocation20_spill] sm:$0xff]  ;;  %v5859_v32 = vld [vmem:[#allocation6_spill] sm:$0xff] }
 0x336   :  { %v1323_v33 = vrot.slane %v1322_v12, 2  ;;  %v1278_v8 = vrot.slane %v1277_v57, 2  ;;  %v1269_v21 = vrot.slane %v1268_v29, 2  ;;  %v1196_v41 = vmul.f32 %v1172_v53, %v4337_v16 }
 0x337   :  { %v1263_v63 = vadd.f32 %v1262_v34, %v1261_v13  ;;  %v1225_v60 = vmul.f32 %v4704_v47, %v1195_v11  ;;  %v1169_v51 = vmul.f32 0.5, %v1145_v30  ;;  %3963 = vtanh.f32 %v1101_v48 }
 0x338   :  { %v1332_v25 = vrot.slane %v1331_v19, 2  ;;  %v1270_v1 = vadd.f32 %v1269_v21, %v1268_v29  ;;  %v1226_v27 = vmul.f32 %v4708_v10, %v1196_v41  ;;  %v1103_v5 = vmul.f32 0.5, %v1079_v23 }
 0x339   :  { %v1391_v3 = vadd.f32 %v1356_v50, %v1245_v20  ;;  %v1404_v4 = vmax.f32 %v1392_v36, 0.0  ;;  %v1291_v18 = vsel %vm50_vm0, %v1225_v60, 0.0  ;;  %3965 = vtanh.f32 %v1102_v44  ;;  %v5860_v60 = vld [vmem:[#allocation19_spill] sm:$0xff] }
 0x33a   :  { %v1324_v31 = vadd.f32 %v1323_v33, %v1322_v12  ;;  %v1279_v45 = vadd.f32 %v1278_v8, %v1277_v57  ;;  %v1292_v61 = vsel %vm580_vm1, %v1226_v27, 0.0  ;;  %v1104_v13 = vmul.f32 0.5, %v1080_v43 }
 0x33b   :  { %v1393_v49 = vadd.f32 %v1360_v62, %v1263_v63  ;;  %v1293_v34 = vadd.f32 %v1292_v61, %v1291_v18  ;;  %v1193_v48 = vmul.f32 %v1169_v51, %v5858_v35  ;;  %3967 = vtanh.f32 %v1109_v52 }
 0x33c   :  { %v4792_v29 = vrot.slane %v4752_v42, %v5859_v32  ;;  %v1333_v23 = vadd.f32 %v1332_v25, %v1331_v19  ;;  %v1271_v50 = vrot.slane %v1270_v1, 1  ;;  %3969 = vtanh.f32 %v1110_v40 }
 0x33d   :  { %v3962_v53 = vpop.eup %3961  ;;  %v1403_v44 = vmax.f32 %v1391_v3, 0.0  ;;  %v1422_v12 = vmul.f32 %v4761_v58, %v1404_v4  ;;  %v1294_v57 = vrot.slane %v1293_v34, 4  ;;  %3971 = vtanh.f32 %v1103_v5  ;;  %v1362_v4 = vpop.permute.xlu1 %1361 }
 0x33e   :  { %v1325_v20 = vrot.slane %v1324_v31, 1  ;;  %v1280_v43 = vrot.slane %v1279_v45, 1  ;;  %v1146_v36 = vadd.f32 1.0, %v3962_v53  ;;  %v1405_v11 = vmax.f32 %v1393_v49, 0.0 }
 0x33f   :  { %v1295_v30 = vadd.f32 %v1294_v57, %v1293_v34  ;;  %v1223_v52 = vmul.f32 %v4704_v47, %v1193_v48  ;;  %3973 = vtanh.f32 %v1104_v13  ;;  %v1272_v33 = vadd.f32 %v1271_v50, %v1270_v1 }
 0x340   :  { %v1170_v42 = vmul.f32 0.5, %v1146_v36  ;;  %v1421_v19 = vmul.f32 %v4761_v58, %v1403_v44  ;;  %v1334_v40 = vrot.slane %v1333_v23, 1  ;;  %v1438_v21 = vadd.f32 %v4792_v29, %v1422_v12 }
 0x341   :  { %v3964_v8 = vpop.eup %3963  ;;  %v1296_v41 = vrot.slane %v1295_v30, 2  ;;  %v1281_v63 = vadd.f32 %v1280_v43, %v1279_v45  ;;  %v4799_v5 = vadd.f32 %v1325_v20, %v1324_v31  ;;  %v1423_v3 = vmul.f32 %v4761_v58, %v1405_v11  ;;  %v1364_v31 = vpop.permute.xlu0 %1363  ;;  %v5861_v43 = vld [vmem:[#allocation25_spill] sm:$0xff] }
 0x342   :  { %v1194_v51 = vmul.f32 %v1170_v42, %v5860_v60  ;;  %v1149_v25 = vadd.f32 1.0, %v3964_v8  ;;  %v1282_v1 = vsel %vm50_vm0, %v1223_v52, 0.0  ;;  %v1394_v62 = vadd.f32 %v1362_v4, %v1272_v33 }
 0x343   :  { %v3966_v27 = vpop.eup %3965  ;;  %v1297_v18 = vadd.f32 %v1296_v41, %v1295_v30  ;;  %v1437_v45 = vadd.f32 %v4792_v29, %v1421_v19  ;;  %v1335_v48 = vadd.f32 %v1334_v40, %v1333_v23  ;;  %v4806_v50 = vadd.f32 %v1438_v21, %v4539_v28  ;;  %v5862_v23 = vld [vmem:[#allocation22_spill] sm:$0xff] }
 0x344   :  { %v1224_v61 = vmul.f32 %v4708_v10, %v1194_v51  ;;  %v1150_v13 = vadd.f32 1.0, %v3966_v27  ;;  %v1173_v49 = vmul.f32 0.5, %v1149_v25  ;;  %v1395_v12 = vadd.f32 %v1364_v31, %v1281_v63 }
 0x345   :  { %v3968_v34 = vpop.eup %3967  ;;  %v1298_v53 = vrot.slane %v1297_v18, 1  ;;  %v1439_v30 = vadd.f32 %v4792_v29, %v1423_v3  ;;  %v1406_v8 = vmax.f32 %v1394_v62, 0.0 }
 0x346   :  { %v3970_v44 = vpop.eup %3969  ;;  %v1283_v57 = vsel %vm580_vm1, %v1224_v61, 0.0  ;;  %v1174_v20 = vmul.f32 0.5, %v1150_v13  ;;  %v1197_v36 = vmul.f32 %v1173_v49, %v5861_v43  ;;  %v1157_v33 = vadd.f32 1.0, %v3968_v34  ;;  %v5863_v49 = vld [vmem:[#allocation29_spill] sm:$0xff]  ;;  %v5864_v34 = vld [vmem:[#allocation28_spill] sm:$0xff] }
 0x347   :  { %v3972_v11 = vpop.eup %3971  ;;  %v1284_v52 = vadd.f32 %v1283_v57, %v1282_v1  ;;  %v1158_v42 = vadd.f32 1.0, %v3970_v44  ;;  %v1299_v41 = vadd.f32 %v1298_v53, %v1297_v18  ;;  %v1407_v1 = vmax.f32 %v1395_v12, 0.0 }
 0x348   :  { %v1198_v19 = vmul.f32 %v1174_v20, %v5862_v23  ;;  %v1227_v28 = vmul.f32 %v4704_v47, %v1197_v36  ;;  %v1151_v40 = vadd.f32 1.0, %v3972_v11  ;;  %v1181_v51 = vmul.f32 0.5, %v1157_v33  ;;  %v1368_v36 = vpop.permute.xlu0 %1367 }
 0x349   :  { %v3974_v21 = vpop.eup %3973  ;;  %v1285_v63 = vrot.slane %v1284_v52, 4  ;;  %v1182_v25 = vmul.f32 0.5, %v1158_v42  ;;  %v1424_v44 = vmul.f32 %v4761_v58, %v1406_v8  ;;  %v1486_v20 = vrot.slane %v4806_v50, 7 }
 0x34a   :  { %v1228_v27 = vmul.f32 %v4708_v10, %v1198_v19  ;;  %v1300_v4 = vsel %vm50_vm0, %v1227_v28, 0.0  ;;  %v1152_v61 = vadd.f32 1.0, %v3974_v21  ;;  %v1175_v3 = vmul.f32 0.5, %v1151_v40  ;;  %v5865_v19 = vld [vmem:[#allocation27_spill] sm:$0xff] }
 0x34b   :  { %v1286_v13 = vadd.f32 %v1285_v63, %v1284_v52  ;;  %v1205_v62 = vmul.f32 %v1181_v51, %v5863_v49  ;;  %v1206_v31 = vmul.f32 %v1182_v25, %v5864_v34  ;;  %v1397_v12 = vadd.f32 %v1368_v36, %v1299_v41 }
 0x34c   :  { %v1301_v57 = vsel %vm580_vm1, %v1228_v27, 0.0  ;;  %v1176_v18 = vmul.f32 0.5, %v1152_v61  ;;  %v1199_v53 = vmul.f32 %v1175_v3, %v4408_v9  ;;  %v4826_v8 = vadd.f32 %v1439_v30, %v4536_v55 }
 0x34d   :  { %v1287_v11 = vrot.slane %v1286_v13, 2  ;;  %v1302_v33 = vadd.f32 %v1301_v57, %v1300_v4  ;;  %v1235_v42 = vmul.f32 %v4704_v47, %v1205_v62  ;;  %v1236_v52 = vmul.f32 %v4708_v10, %v1206_v31 }
 0x34e   :  { %v1200_v28 = vmul.f32 %v1176_v18, %v5865_v19  ;;  %v1229_v40 = vmul.f32 %v4704_v47, %v1199_v53  ;;  %v1425_v25 = vmul.f32 %v4761_v58, %v1407_v1  ;;  %v1440_v27 = vadd.f32 %v4792_v29, %v1424_v44 }
 0x34f   :  { %v1288_v21 = vadd.f32 %v1287_v11, %v1286_v13  ;;  %v1303_v63 = vrot.slane %v1302_v33, 4  ;;  %v1336_v51 = vsel %vm50_vm0, %v1235_v42, 0.0  ;;  %v1337_v4 = vsel %vm580_vm1, %v1236_v52, 0.0  ;;  %v1366_v11 = vpop.permute.xlu1 %1365 }
 0x350   :  { %v1230_v41 = vmul.f32 %v4708_v10, %v1200_v28  ;;  %v1338_v62 = vadd.f32 %v1337_v4, %v1336_v51  ;;  %v1309_v47 = vsel %vm50_vm0, %v1229_v40, 0.0  ;;  %v1400_v55 = vadd.f32 %v4773_v26, %v4799_v5 }
 0x351   :  { %v1289_v61 = vrot.slane %v1288_v21, 1  ;;  %v1304_v3 = vadd.f32 %v1303_v63, %v1302_v33  ;;  %v4837_v30 = vadd.f32 %v1437_v45, %v4550_v38  ;;  %v1409_v13 = vmax.f32 %v1397_v12, 0.0 }
 0x352   :  { %v1310_v1 = vsel %vm580_vm1, %v1230_v41, 0.0  ;;  %v1401_v31 = vadd.f32 %v4781_v56, %v1335_v48  ;;  %v1339_v18 = vrot.slane %v1338_v62, 4  ;;  %v1488_v53 = vrot.slane %v4826_v8, 6  ;;  %v1370_v41 = vpop.permute.xlu0 %1369 }
 0x353   :  { %v1290_v44 = vadd.f32 %v1289_v61, %v1288_v21  ;;  %v1305_v57 = vrot.slane %v1304_v3, 2  ;;  %v1487_v10 = vsel %vm817_vm2, %v1486_v20, %v4837_v30  ;;  %v1441_v36 = vadd.f32 %v4792_v29, %v1425_v25 }
 0x354   :  { %v1311_v26 = vadd.f32 %v1310_v1, %v1309_v47  ;;  %v4846_v38 = vadd.f32 %v1440_v27, %v4561_v39  ;;  %v1340_v33 = vadd.f32 %v1339_v18, %v1338_v62  ;;  %v1427_v56 = vmul.f32 %v4761_v58, %v1409_v13 }
 0x355   :  { %v1396_v5 = vadd.f32 %v1366_v11, %v1290_v44  ;;  %v1306_v45 = vadd.f32 %v1305_v57, %v1304_v3  ;;  %v1412_v42 = vmax.f32 %v1400_v55, 0.0  ;;  %v1413_v20 = vmax.f32 %v1401_v31, 0.0 }
 0x356   :  { %v1312_v48 = vrot.slane %v1311_v26, 4  ;;  %v1341_v28 = vrot.slane %v1340_v33, 2  ;;  %v1489_v40 = vsel %vm820_vm3, %v1488_v53, %v1487_v10  ;;  %v4851_v21 = vadd.f32 %v1441_v36, %v4569_v6  ;;  %v1378_v53 = vpop.permute.xlu1 %1377 }
 0x357   :  { %v1408_v12 = vmax.f32 %v1396_v5, 0.0  ;;  %v1307_v52 = vrot.slane %v1306_v45, 1  ;;  %v1490_v39 = vrot.slane %v4846_v38, 5  ;;  %v1443_v4 = vadd.f32 %v4792_v29, %v1427_v56 }
 0x358   :  { %v1313_v63 = vadd.f32 %v1312_v48, %v1311_v26  ;;  %v1342_v27 = vadd.f32 %v1341_v28, %v1340_v33  ;;  %v1430_v6 = vmul.f32 %v4761_v58, %v1412_v42  ;;  %v1492_v13 = vrot.slane %v4851_v21, 4 }
 0x359   :  { %v1426_v51 = vmul.f32 %v4761_v58, %v1408_v12  ;;  %v1308_v25 = vadd.f32 %v1307_v52, %v1306_v45  ;;  %v1491_v55 = vsel %vm823_vm4, %v1490_v39, %v1489_v40  ;;  %v1431_v31 = vmul.f32 %v4761_v58, %v1413_v20  ;;  %v1372_v12 = vpop.permute.xlu0 %1371 }
 0x35a   :  { %v1314_v61 = vrot.slane %v1313_v63, 2  ;;  %v1343_v47 = vrot.slane %v1342_v27, 1  ;;  %v4865_v10 = vadd.f32 %v1443_v4, %v4586_v22  ;;  %v1493_v11 = vsel %vm826_vm5, %v1492_v13, %v1491_v55 }
 0x35b   :  { %v1442_v3 = vadd.f32 %v4792_v29, %v1426_v51  ;;  %v1398_v62 = vadd.f32 %v1370_v41, %v1308_v25  ;;  %v1446_v33 = vadd.f32 %v4792_v29, %v1430_v6 }
 0x35c   :  { %v1315_v1 = vadd.f32 %v1314_v61, %v1313_v63  ;;  %v1344_v18 = vadd.f32 %v1343_v47, %v1342_v27  ;;  %v1496_v52 = vrot.slane %v4865_v10, 2 }
 0x35d   :  { %v4862_v44 = vadd.f32 %v1442_v3, %v4573_v15  ;;  %v1410_v57 = vmax.f32 %v1398_v62, 0.0  ;;  %v1447_v15 = vadd.f32 %v4792_v29, %v1431_v31  ;;  %v4880_v63 = vadd.f32 %v1446_v33, %v4601_v24 }
 0x35e   :  { %v1316_v36 = vrot.slane %v1315_v1, 1  ;;  %v1402_v45 = vadd.f32 %v1378_v53, %v1344_v18 }
 0x35f   :  { %v1494_v26 = vrot.slane %v4862_v44, 3  ;;  %v1428_v5 = vmul.f32 %v4761_v58, %v1410_v57  ;;  %5866 = vst [vmem:[#allocation20_spill] sm:$0xff] %v4880_v63  ;;  %v4884_v25 = vadd.f32 %v1447_v15, %v4610_v46  ;;  %v1500_v61 = vrot.slane %v4880_v63, 7  ;;  %v3692_v15 = vld [vmem:[%s5765_s2 + $0x68] sm:$0xff] }
 0x360   :  { %v1317_v56 = vadd.f32 %v1316_v36, %v1315_v1  ;;  %v1414_v42 = vmax.f32 %v1402_v45, 0.0 }
 0x361   :  { %v1444_v48 = vadd.f32 %v4792_v29, %v1428_v5  ;;  %v1495_v22 = vsel %vm829_vm6, %v1494_v26, %v1493_v11  ;;  %5867 = vst [vmem:[#allocation6_spill] sm:$0xff] %v4884_v25  ;;  %v1502_v46 = vrot.slane %v4884_v25, 6 }
 0x362   :  { %v1399_v28 = vadd.f32 %v1372_v12, %v1317_v56  ;;  %v1432_v40 = vmul.f32 %v4761_v58, %v1414_v42  ;;  %v1497_v51 = vsel %vm832_vm7, %v1496_v52, %v1495_v22  ;;  %v3691_v56 = vld [vmem:[%s5765_s2 + $0x60] sm:$0xff]  ;;  %v3694_v12 = vld [vmem:[%s5765_s2 + $0x78] sm:$0xff] }
 0x363   :  { %v4876_v20 = vadd.f32 %v1444_v48, %v4582_v37  ;;  %v3693_v48 = vld [vmem:[%s5765_s2 + $0x70] sm:$0xff]  ;;  %v3846_v42 = vpack.c.bf16 %v3692_v15, %v3691_v56 }
 0x364   :  { %v1411_v39 = vmax.f32 %v1399_v28, 0.0  ;;  %v1448_v27 = vadd.f32 %v4792_v29, %v1432_v40  ;;  %v3850_v22 = vpack.c.bf16 %v3694_v12, %v3693_v48 }
 0x365   :  { %v1498_v4 = vrot.slane %v4876_v20, 1  ;;  %3847 = vmatprep.subr.bf16.mxu1 %v3846_v42 }
 0x366   :  { %v1429_v41 = vmul.f32 %v4761_v58, %v1411_v39  ;;  %v4892_v3 = vadd.f32 %v1448_v27, %v4606_v7  ;;  %v3687_v7 = vld [vmem:[%s5766_s3 + $0x2] ss:$0 sm:$0xff]  ;;  %3849 = vmatpush3.bf16.msra.mxu1 %v3846_v42 }
 0x367   :  { %v1499_v37 = vsel %vm835_vm8, %v1498_v4, %v1497_v51  ;;  %3851 = vmatprep.subr.bf16.mxu1 %v3850_v22 }
 0x368   :  { %5868 = vst [vmem:[#allocation19_spill] sm:$0xff] %v4892_v3  ;;  %v1445_v24 = vadd.f32 %v4792_v29, %v1429_v41  ;;  %3779 = vmatprep.mubr.msk.f32.mxu0 %vm50_vm0, %v1499_v37  ;;  %v1504_v47 = vrot.slane %v4892_v3, 5 }
 0x36a   :  { %v4898_v62 = vadd.f32 %v1445_v24, %v4597_v54  ;;  %3853 = vmatpush3.bf16.msra.mxu1 %v3850_v22 }
 0x36c   :  { %5869 = vst [vmem:[#allocation25_spill] sm:$0xff] %v4898_v62  ;;  %v1501_v58 = vsel %vm817_vm2, %v1500_v61, %v4898_v62 }
 0x36d   :  { %v1503_v55 = vsel %vm820_vm3, %v1502_v46, %v1501_v58 }
 0x36e   :  { %v1505_v6 = vsel %vm823_vm4, %v1504_v47, %v1503_v55 }
 0x36f   :  { %3780 = vmatmul.mubr.msk.f32.vlgmr.msra.gmra.mrb[2].mxu0 %vm50_vm0, %v1505_v6 }
 0x442   :  { %v3781_v29 = vpop.f32.mrb[2].mxu0 }
 0x443   :  { %v1582_v13 = vadd.f32 %v3781_v29, %v3687_v7  ;;  %v1576_v1 = vpop.f32.mrb[3].mxu0 }
 0x444   :  { %v1577_v54 = vadd.f32 %v3687_v7, %v1576_v1 }
 0x445   :  { %1722 = vrot.lane.b32.xlu1 %v1582_v13, %s4144_s28  ;;  %v2015_v31 = vrot.slane %v1582_v13, 1  ;;  %v2016_v57 = vrot.slane %v1582_v13, 2  ;;  %v2017_v33 = vrot.slane %v1582_v13, 3  ;;  %v1642_v52 = vrot.slane %v1582_v13, %v4318_v2 }
 0x446   :  { %1720 = vrot.lane.b32.xlu0 %v1577_v54, %s4144_s28  ;;  %v2008_v18 = vrot.slane %v1577_v54, 1  ;;  %v2009_v53 = vrot.slane %v1577_v54, 2  ;;  %v2011_v36 = vrot.slane %v1577_v54, 4  ;;  %v2010_v11 = vrot.slane %v1577_v54, 3 }
 0x447   :  { %v2013_v26 = vrot.slane %v1577_v54, 6  ;;  %v2012_v5 = vrot.slane %v1577_v54, 5  ;;  %v2014_v45 = vrot.slane %v1577_v54, 7  ;;  %v1594_v28 = vrot.slane %v1577_v54, %v4318_v2 }
 0x448   :  { %v1643_v40 = vcombine.high %v1642_v52, %v1642_v52  ;;  %v4940_v39 = vrot.slane %v1642_v52, %v4318_v2  ;;  %v1587_v41 = vcombine.high %v1577_v54, %v1577_v54 }
 0x449   :  { %1872 = vrot.lane.b32.xlu1 %v1582_v13, %s4143_s27  ;;  %v1602_v51 = vcombine.high %v1594_v28, %v1594_v28  ;;  %v1610_v4 = vrot.slane %v1594_v28, %v4318_v2 }
 0x44a   :  { %1870 = vrot.lane.b32.xlu0 %v1577_v54, %s4143_s27  ;;  %v4943_v27 = vrot.slane %v1643_v40, %v4318_v2  ;;  %v1658_v37 = vcombine.high %v4940_v39, %v4940_v39  ;;  %v1601_v58 = vrot.slane %v1587_v41, %v4318_v2 }
 0x44b   :  { %v1624_v61 = vrot.slane %v1602_v51, %v4318_v2  ;;  %v1663_v46 = vrot.slane %v1610_v4, %v4231_v14  ;;  %v1632_v47 = vcombine.high %v1610_v4, %v1610_v4 }
 0x44c   :  { %v1699_v24 = vrot.slane %v4943_v27, %v4231_v14  ;;  %v1703_v6 = vrot.slane %v1658_v37, %v4231_v14 }
 0x44d   :  { %2036 = vrot.lane.b32.xlu1 %v2015_v31, %s4145_s1  ;;  %v1667_v1 = vrot.slane %v1624_v61, %v4231_v14  ;;  %v1634_v40 = vcombine.high %v1624_v61, %v1624_v61 }
 0x44e   :  { %2018 = vrot.lane.b32.xlu0 %v1577_v54, %s4145_s1 }
 0x451   :  { %2038 = vrot.lane.b32.xlu1 %v2016_v57, %s4145_s1 }
 0x452   :  { %2020 = vrot.lane.b32.xlu0 %v2008_v18, %s4145_s1 }
 0x455   :  { %2022 = vrot.lane.b32.xlu1 %v2009_v53, %s4145_s1 }
 0x456   :  { %2026 = vrot.lane.b32.xlu0 %v2011_v36, %s4145_s1  ;;  %v1671_v36 = vrot.slane %v1632_v47, %v4231_v14 }
 0x459   :  { %2024 = vrot.lane.b32.xlu1 %v2010_v11, %s4145_s1  ;;  %v1617_v11 = vrot.slane %v1601_v58, %v4318_v2 }
 0x45a   :  { %2030 = vrot.lane.b32.xlu0 %v2013_v26, %s4145_s1 }
 0x45b   :  { %v1679_v52 = vrot.slane %v1617_v11, %v4231_v14 }
 0x45d   :  { %2028 = vrot.lane.b32.xlu1 %v2012_v5, %s4145_s1 }
 0x45e   :  { %2032 = vrot.lane.b32.xlu0 %v2014_v45, %s4145_s1 }
 0x461   :  { %2040 = vrot.lane.b32.xlu1 %v2017_v33, %s4145_s1 }
 0x462   :  { %2034 = vrot.lane.b32.xlu0 %v1582_v13, %s4145_s1 }
 0x4b7   :  { %v4953_v55 = vpop.permute.xlu1 %1722 }
 0x4b8   :  { %v4956_v7 = vpop.permute.xlu0 %1720  ;;  %v1745_v29 = vadd.f32 %v4953_v55, %v1699_v24  ;;  %v1727_v13 = vadd.f32 %v4953_v55, %v1663_v46  ;;  %v1729_v33 = vadd.f32 %v4953_v55, %v1667_v1  ;;  %v1747_v56 = vadd.f32 %v4953_v55, %v1703_v6 }
 0x4b9   :  { %v1744_v54 = vadd.f32 %v4956_v7, %v1699_v24  ;;  %v1726_v31 = vadd.f32 %v4956_v7, %v1663_v46  ;;  %v1746_v57 = vadd.f32 %v4956_v7, %v1703_v6  ;;  %v1728_v53 = vadd.f32 %v4956_v7, %v1667_v1 }
 0x4ba   :  { %v1769_v18 = vmul.f32 0.5, %v1745_v29  ;;  %v1751_v45 = vmul.f32 0.5, %v1727_v13  ;;  %v1730_v48 = vadd.f32 %v4956_v7, %v1671_v36  ;;  %v1753_v12 = vmul.f32 0.5, %v1729_v33 }
 0x4bb   :  { %v1768_v26 = vmul.f32 0.5, %v1744_v54  ;;  %v1750_v5 = vmul.f32 0.5, %v1726_v31  ;;  %v1770_v15 = vmul.f32 0.5, %v1746_v57  ;;  %v1752_v42 = vmul.f32 0.5, %v1728_v53 }
 0x4bc   :  { %3975 = vtanh.f32 %v1769_v18  ;;  %v1731_v22 = vadd.f32 %v4953_v55, %v1671_v36  ;;  %v1771_v28 = vmul.f32 0.5, %v1747_v56  ;;  %v1754_v51 = vmul.f32 0.5, %v1730_v48 }
 0x4bd   :  { %3977 = vtanh.f32 %v1768_v26  ;;  %v1734_v4 = vadd.f32 %v4956_v7, %v1679_v52  ;;  %v1735_v37 = vadd.f32 %v4953_v55, %v1679_v52  ;;  %v1675_v24 = vrot.slane %v1634_v40, %v4231_v14 }
 0x4be   :  { %3979 = vtanh.f32 %v1750_v5  ;;  %v1755_v41 = vmul.f32 0.5, %v1731_v22  ;;  %v1603_v46 = vcombine.high %v1601_v58, %v1601_v58  ;;  %v1633_v13 = vcombine.high %v1617_v11, %v1617_v11 }
 0x4bf   :  { %3981 = vtanh.f32 %v1751_v45  ;;  %v1758_v47 = vmul.f32 0.5, %v1734_v4  ;;  %v1732_v29 = vadd.f32 %v4956_v7, %v1675_v24  ;;  %v1759_v1 = vmul.f32 0.5, %v1735_v37  ;;  %v5870_v37 = vld [vmem:[#allocation12_spill] sm:$0xff] }
 0x4c0   :  { %3983 = vtanh.f32 %v1770_v15  ;;  %v4977_v31 = vrot.slane %v1603_v46, %v4318_v2  ;;  %v1733_v53 = vadd.f32 %v4953_v55, %v1675_v24  ;;  %v1687_v26 = vrot.slane %v1633_v13, %v4231_v14 }
 0x4c1   :  { %3985 = vtanh.f32 %v1752_v42  ;;  %v1756_v58 = vmul.f32 0.5, %v1732_v29  ;;  %v4995_v29 = vpop.permute.xlu1 %1872 }
 0x4c2   :  { %3987 = vtanh.f32 %v1753_v12  ;;  %v1738_v48 = vadd.f32 %v4956_v7, %v1687_v26  ;;  %v4984_v42 = vrot.slane %v4977_v31, %v4231_v14  ;;  %v1757_v40 = vmul.f32 0.5, %v1733_v53 }
 0x4c3   :  { %3989 = vtanh.f32 %v1771_v28 }
 0x4c4   :  { %3991 = vtanh.f32 %v1754_v51  ;;  %v1762_v53 = vmul.f32 0.5, %v1738_v48  ;;  %v5873_v48 = vld [vmem:[#allocation21_spill] sm:$0xff] }
 0x4c5   :  { %3993 = vtanh.f32 %v1755_v41  ;;  %v4991_v41 = vpop.permute.xlu0 %1870 }
 0x4c6   :  { %v3976_v6 = vpop.eup %3975  ;;  %3995 = vtanh.f32 %v1758_v47  ;;  %v1739_v47 = vadd.f32 %v4953_v55, %v1687_v26 }
 0x4c7   :  { %v3978_v61 = vpop.eup %3977  ;;  %v1817_v33 = vadd.f32 1.0, %v3976_v6  ;;  %3997 = vtanh.f32 %v1759_v1 }
 0x4c8   :  { %v3980_v54 = vpop.eup %3979  ;;  %v1816_v45 = vadd.f32 1.0, %v3978_v61  ;;  %3999 = vtanh.f32 %v1756_v58 }
 0x4c9   :  { %v3982_v57 = vpop.eup %3981  ;;  %v1798_v18 = vadd.f32 1.0, %v3980_v54  ;;  %v1841_v61 = vmul.f32 0.5, %v1817_v33  ;;  %4001 = vtanh.f32 %v1757_v40  ;;  %v5872_v33 = vld [vmem:[#allocation9_spill] sm:$0xff] }
 0x4ca   :  { %v1799_v36 = vadd.f32 1.0, %v3982_v57  ;;  %v3984_v5 = vpop.eup %3983  ;;  %v1840_v13 = vmul.f32 0.5, %v1816_v45  ;;  %4003 = vtanh.f32 %v1762_v53 }
 0x4cb   :  { %v1822_v11 = vmul.f32 0.5, %v1798_v18  ;;  %v3986_v56 = vpop.eup %3985 }
 0x4cc   :  { %v1823_v15 = vmul.f32 0.5, %v1799_v36  ;;  %v3988_v22 = vpop.eup %3987  ;;  %v1800_v28 = vadd.f32 1.0, %v3986_v56  ;;  %v1736_v36 = vadd.f32 %v4956_v7, %v4984_v42  ;;  %v1818_v56 = vadd.f32 1.0, %v3984_v5 }
 0x4cd   :  { %v1846_v52 = vmul.f32 %v1822_v11, %v4309_v59  ;;  %v3990_v4 = vpop.eup %3989  ;;  %v1801_v46 = vadd.f32 1.0, %v3988_v22 }
 0x4ce   :  { %v1847_v24 = vmul.f32 %v1823_v15, %v5870_v37  ;;  %v3992_v6 = vpop.eup %3991  ;;  %v1824_v54 = vmul.f32 0.5, %v1800_v28  ;;  %v1819_v58 = vadd.f32 1.0, %v3990_v4  ;;  %v5871_v15 = vld [vmem:[#allocation8_spill] sm:$0xff]  ;;  %v1763_v37 = vmul.f32 0.5, %v1739_v47 }
 0x4cf   :  { %v1876_v1 = vmul.f32 %v4991_v41, %v1846_v52  ;;  %v1825_v18 = vmul.f32 0.5, %v1801_v46  ;;  %v3994_v11 = vpop.eup %3993  ;;  %v1802_v28 = vadd.f32 1.0, %v3992_v6  ;;  %v1865_v46 = vmul.f32 %v1841_v61, %v5873_v48 }
 0x4d0   :  { %v1877_v57 = vmul.f32 %v4995_v29, %v1847_v24  ;;  %v1848_v26 = vmul.f32 %v1824_v54, %v5871_v15  ;;  %v3996_v12 = vpop.eup %3995  ;;  %v1864_v24 = vmul.f32 %v1840_v13, %v4374_v0  ;;  %v1803_v4 = vadd.f32 1.0, %v3994_v11  ;;  %v5874_v13 = vld [vmem:[#allocation10_spill] sm:$0xff] }
 0x4d1   :  { %v1900_v22 = vsel %vm50_vm0, %v1876_v1, 0.0  ;;  %v1849_v52 = vmul.f32 %v1825_v18, %v5872_v33  ;;  %v1826_v54 = vmul.f32 0.5, %v1802_v28  ;;  %v1760_v40 = vmul.f32 0.5, %v1736_v36  ;;  %v3998_v15 = vpop.eup %3997  ;;  %v5875_v36 = vld [vmem:[#allocation11_spill] sm:$0xff] }
 0x4d2   :  { %v1901_v45 = vsel %vm580_vm1, %v1877_v57, 0.0  ;;  %v1878_v51 = vmul.f32 %v4991_v41, %v1848_v26  ;;  %v1842_v59 = vmul.f32 0.5, %v1818_v56  ;;  %v1843_v57 = vmul.f32 0.5, %v1819_v58  ;;  %v4000_v11 = vpop.eup %3999 }
 0x4d3   :  { %v1879_v5 = vmul.f32 %v4995_v29, %v1849_v52  ;;  %v1902_v1 = vadd.f32 %v1901_v45, %v1900_v22  ;;  %v1827_v33 = vmul.f32 0.5, %v1803_v4  ;;  %v1850_v0 = vmul.f32 %v1826_v54, %v5874_v13  ;;  %v5876_v45 = vld [vmem:[#allocation26_spill] sm:$0xff]  ;;  %v5877_v4 = vld [vmem:[#allocation24_spill] sm:$0xff]  ;;  %v4002_v53 = vpop.eup %4001 }
 0x4d4   :  { %v1909_v18 = vsel %vm50_vm0, %v1878_v51, 0.0  ;;  %v1806_v61 = vadd.f32 1.0, %v3996_v12  ;;  %v1894_v26 = vmul.f32 %v4991_v41, %v1864_v24  ;;  %v1895_v47 = vmul.f32 %v4995_v29, %v1865_v46  ;;  %v5878_v13 = vld [vmem:[#allocation18_spill] sm:$0xff] }
 0x4d5   :  { %v1910_v6 = vsel %vm580_vm1, %v1879_v5, 0.0  ;;  %v1851_v28 = vmul.f32 %v1827_v33, %v5875_v36  ;;  %v1880_v56 = vmul.f32 %v4991_v41, %v1850_v0  ;;  %v1807_v58 = vadd.f32 1.0, %v3998_v15 }
 0x4d6   :  { %v1911_v52 = vadd.f32 %v1910_v6, %v1909_v18  ;;  %v1830_v22 = vmul.f32 0.5, %v1806_v61  ;;  %v1903_v51 = vrot.slane %v1902_v1, 4  ;;  %v1866_v5 = vmul.f32 %v1842_v59, %v5876_v45  ;;  %v5879_v59 = vld [vmem:[#allocation17_spill] sm:$0xff] }
 0x4d7   :  { %v1867_v48 = vmul.f32 %v1843_v57, %v5877_v4  ;;  %v1881_v12 = vmul.f32 %v4995_v29, %v1851_v28  ;;  %v1831_v24 = vmul.f32 0.5, %v1807_v58  ;;  %4005 = vtanh.f32 %v1763_v37 }
 0x4d8   :  { %v1912_v54 = vrot.slane %v1911_v52, 4  ;;  %v1854_v46 = vmul.f32 %v1830_v22, %v5878_v13  ;;  %v1981_v18 = vsel %vm50_vm0, %v1894_v26, 0.0  ;;  %v1982_v33 = vsel %vm580_vm1, %v1895_v47, 0.0 }
 0x4d9   :  { %v1918_v15 = vsel %vm50_vm0, %v1880_v56, 0.0  ;;  %v1919_v6 = vsel %vm580_vm1, %v1881_v12, 0.0  ;;  %v1855_v61 = vmul.f32 %v1831_v24, %v5879_v59  ;;  %v1804_v4 = vadd.f32 1.0, %v4000_v11 }
 0x4da   :  { %v1913_v0 = vadd.f32 %v1912_v54, %v1911_v52  ;;  %v1884_v57 = vmul.f32 %v4991_v41, %v1854_v46  ;;  %v1904_v28 = vadd.f32 %v1903_v51, %v1902_v1  ;;  %v1896_v58 = vmul.f32 %v4991_v41, %v1866_v5  ;;  %v4004_v46 = vpop.eup %4003 }
 0x4db   :  { %v1897_v37 = vmul.f32 %v4995_v29, %v1867_v48  ;;  %v1920_v13 = vadd.f32 %v1919_v6, %v1918_v15  ;;  %v1885_v26 = vmul.f32 %v4995_v29, %v1855_v61  ;;  %v1805_v47 = vadd.f32 1.0, %v4002_v53  ;;  %v5039_v48 = vld [vmem:[%s5767_s4 + $0x4] sm:$0x3] }
 0x4dc   :  { %v1914_v22 = vrot.slane %v1913_v0, 2  ;;  %v5880_v52 = vcombine.high %v4977_v31, %v4977_v31  ;;  %v1983_v54 = vadd.f32 %v1982_v33, %v1981_v18  ;;  %v1936_v12 = vsel %vm50_vm0, %v1884_v57, 0.0  ;;  %v5882_v61 = vld [vmem:[#allocation14_spill] sm:$0xff] }
 0x4dd   :  { %v1737_v1 = vadd.f32 %v4953_v55, %v4984_v42  ;;  %4007 = vtanh.f32 %v1760_v40  ;;  %v1921_v11 = vrot.slane %v1920_v13, 4  ;;  %v1937_v51 = vsel %vm580_vm1, %v1885_v26, 0.0  ;;  %v5881_v40 = vld [vmem:[#allocation15_spill] sm:$0xff] }
 0x4de   :  { %v1691_v56 = vrot.slane %v5880_v52, %v4231_v14  ;;  %v1828_v5 = vmul.f32 0.5, %v1804_v4  ;;  %v1829_v24 = vmul.f32 0.5, %v1805_v47  ;;  %v1905_v31 = vrot.slane %v1904_v28, 2 }
 0x4df   :  { %v1990_v53 = vsel %vm50_vm0, %v1896_v58, 0.0  ;;  %v1991_v18 = vsel %vm580_vm1, %v1897_v37, 0.0  ;;  %v1915_v33 = vadd.f32 %v1914_v22, %v1913_v0  ;;  %v1922_v15 = vadd.f32 %v1921_v11, %v1920_v13 }
 0x4e0   :  { %v1938_v42 = vadd.f32 %v1937_v51, %v1936_v12  ;;  %v1852_v6 = vmul.f32 %v1828_v5, %v5881_v40  ;;  %v1853_v57 = vmul.f32 %v1829_v24, %v5882_v61  ;;  %v5048_v52 = vrot.slane %v5039_v48, %v4231_v14  ;;  %v5060_v61 = vpop.permute.xlu1 %2036  ;;  %v2019_v40 = vpop.permute.xlu0 %2018 }
 0x4e1   :  { %v1740_v4 = vadd.f32 %v4956_v7, %v1691_v56  ;;  %v1741_v26 = vadd.f32 %v4953_v55, %v1691_v56  ;;  %v1695_v58 = vrot.slane %v4940_v39, %v4231_v14  ;;  %v4006_v47 = vpop.eup %4005  ;;  %v1992_v37 = vadd.f32 %v1991_v18, %v1990_v53 }
 0x4e2   :  { %v1923_v0 = vrot.slane %v1922_v15, 2  ;;  %v1882_v13 = vmul.f32 %v4991_v41, %v1852_v6  ;;  %v1883_v22 = vmul.f32 %v4995_v29, %v1853_v57  ;;  %v1906_v12 = vadd.f32 %v1905_v31, %v1904_v28 }
 0x4e3   :  { %v1916_v11 = vrot.slane %v1915_v33, 1  ;;  %v1761_v51 = vmul.f32 0.5, %v1737_v1  ;;  %v5883_v5 = vcombine.high %v4943_v27, %v4943_v27  ;;  %v1984_v56 = vrot.slane %v1983_v54, 4 }
 0x4e4   :  { %v1939_v39 = vrot.slane %v1938_v42, 4  ;;  %v1927_v53 = vsel %vm50_vm0, %v1882_v13, 0.0  ;;  %v1928_v18 = vsel %vm580_vm1, %v1883_v22, 0.0  ;;  %v1924_v6 = vadd.f32 %v1923_v0, %v1922_v15  ;;  %v5068_v25 = vpop.permute.xlu1 %2038 }
 0x4e5   :  { %v1707_v24 = vrot.slane %v5883_v5, %v4231_v14  ;;  %v1764_v59 = vmul.f32 0.5, %v1740_v4  ;;  %v1765_v57 = vmul.f32 0.5, %v1741_v26  ;;  %v1993_v1 = vrot.slane %v1992_v37, 4 }
 0x4e6   :  { %v1929_v31 = vadd.f32 %v1928_v18, %v1927_v53  ;;  %v1810_v45 = vadd.f32 1.0, %v4004_v46  ;;  %v1907_v36 = vrot.slane %v1906_v12, 1  ;;  %v1917_v14 = vadd.f32 %v1916_v11, %v1915_v33  ;;  %v2021_v53 = vpop.permute.xlu0 %2020 }
 0x4e7   :  { %v1748_v28 = vadd.f32 %v4956_v7, %v1707_v24  ;;  %v1749_v27 = vadd.f32 %v4953_v55, %v1707_v24  ;;  %v4008_v5 = vpop.eup %4007  ;;  %v1742_v2 = vadd.f32 %v4956_v7, %v1695_v58  ;;  %v1743_v62 = vadd.f32 %v4953_v55, %v1695_v58 }
 0x4e8   :  { %v1985_v13 = vadd.f32 %v1984_v56, %v1983_v54  ;;  %v1940_v3 = vadd.f32 %v1939_v39, %v1938_v42  ;;  %v1930_v22 = vrot.slane %v1929_v31, 4  ;;  %v1811_v15 = vadd.f32 1.0, %v4006_v47 }
 0x4e9   :  { %v1925_v4 = vrot.slane %v1924_v6, 1  ;;  %v1834_v26 = vmul.f32 0.5, %v1810_v45  ;;  %4009 = vtanh.f32 %v1761_v51  ;;  %v1772_v0 = vmul.f32 0.5, %v1748_v28 }
 0x4ea   :  { %v1994_v46 = vadd.f32 %v1993_v1, %v1992_v37  ;;  %v1931_v24 = vadd.f32 %v1930_v22, %v1929_v31  ;;  %v1835_v18 = vmul.f32 0.5, %v1811_v15  ;;  %v1773_v63 = vmul.f32 0.5, %v1749_v27  ;;  %v2023_v27 = vpop.permute.xlu1 %2022 }
 0x4eb   :  { %v1908_v33 = vadd.f32 %v1907_v36, %v1906_v12  ;;  %v2055_v11 = vadd.f32 %v2021_v53, %v1917_v14  ;;  %v1858_v7 = vmul.f32 %v1834_v26, %v4339_v17  ;;  %v1808_v55 = vadd.f32 1.0, %v4008_v5 }
 0x4ec   :  { %v1986_v54 = vrot.slane %v1985_v13, 2  ;;  %v1941_v42 = vrot.slane %v1940_v3, 2  ;;  %v1932_v58 = vrot.slane %v1931_v24, 2  ;;  %v1859_v47 = vmul.f32 %v1835_v18, %v4337_v16 }
 0x4ed   :  { %v1926_v45 = vadd.f32 %v1925_v4, %v1924_v6  ;;  %v1888_v51 = vmul.f32 %v4991_v41, %v1858_v7  ;;  %v1832_v56 = vmul.f32 0.5, %v1808_v55  ;;  %4011 = vtanh.f32 %v1764_v59 }
 0x4ee   :  { %v1995_v37 = vrot.slane %v1994_v46, 2  ;;  %v1933_v39 = vadd.f32 %v1932_v58, %v1931_v24  ;;  %v1889_v28 = vmul.f32 %v4995_v29, %v1859_v47  ;;  %v1766_v1 = vmul.f32 0.5, %v1742_v2 }
 0x4ef   :  { %v2054_v36 = vadd.f32 %v2019_v40, %v1908_v33  ;;  %v2067_v14 = vmax.f32 %v2055_v11, 0.0  ;;  %v1954_v12 = vsel %vm50_vm0, %v1888_v51, 0.0  ;;  %4013 = vtanh.f32 %v1765_v57 }
 0x4f0   :  { %v1987_v31 = vadd.f32 %v1986_v54, %v1985_v13  ;;  %v1942_v5 = vadd.f32 %v1941_v42, %v1940_v3  ;;  %v1955_v22 = vsel %vm580_vm1, %v1889_v28, 0.0  ;;  %v1767_v6 = vmul.f32 0.5, %v1743_v62  ;;  %v2025_v28 = vpop.permute.xlu1 %2024 }
 0x4f1   :  { %v2056_v15 = vadd.f32 %v2023_v27, %v1926_v45  ;;  %v1956_v4 = vadd.f32 %v1955_v22, %v1954_v12  ;;  %v1856_v59 = vmul.f32 %v1832_v56, %v5858_v35  ;;  %4015 = vtanh.f32 %v1772_v0 }
 0x4f2   :  { %v5079_v26 = vrot.slane %v5039_v48, %v5859_v32  ;;  %v1996_v2 = vadd.f32 %v1995_v37, %v1994_v46  ;;  %v1934_v40 = vrot.slane %v1933_v39, 1  ;;  %4017 = vtanh.f32 %v1773_v63 }
 0x4f3   :  { %v4010_v53 = vpop.eup %4009  ;;  %v2066_v57 = vmax.f32 %v2054_v36, 0.0  ;;  %v2085_v13 = vmul.f32 %v5048_v52, %v2067_v14  ;;  %v1957_v3 = vrot.slane %v1956_v4, 4  ;;  %4019 = vtanh.f32 %v1766_v1 }
 0x4f4   :  { %v1988_v24 = vrot.slane %v1987_v31, 1  ;;  %v1943_v62 = vrot.slane %v1942_v5, 1  ;;  %v1809_v18 = vadd.f32 1.0, %v4010_v53  ;;  %v2068_v33 = vmax.f32 %v2056_v15, 0.0 }
 0x4f5   :  { %v1958_v11 = vadd.f32 %v1957_v3, %v1956_v4  ;;  %v1886_v0 = vmul.f32 %v4991_v41, %v1856_v59  ;;  %4021 = vtanh.f32 %v1767_v6  ;;  %v1935_v7 = vadd.f32 %v1934_v40, %v1933_v39 }
 0x4f6   :  { %v1833_v48 = vmul.f32 0.5, %v1809_v18  ;;  %v2084_v46 = vmul.f32 %v5048_v52, %v2066_v57  ;;  %v1997_v63 = vrot.slane %v1996_v2, 1  ;;  %v2101_v54 = vadd.f32 %v5079_v26, %v2085_v13 }
 0x4f7   :  { %v4012_v55 = vpop.eup %4011  ;;  %v1959_v42 = vrot.slane %v1958_v11, 2  ;;  %v1944_v58 = vadd.f32 %v1943_v62, %v1942_v5  ;;  %v5086_v56 = vadd.f32 %v1988_v24, %v1987_v31  ;;  %v2086_v37 = vmul.f32 %v5048_v52, %v2068_v33  ;;  %v2027_v31 = vpop.permute.xlu0 %2026 }
 0x4f8   :  { %v1857_v47 = vmul.f32 %v1833_v48, %v5860_v60  ;;  %v1812_v45 = vadd.f32 1.0, %v4012_v55  ;;  %v1945_v39 = vsel %vm50_vm0, %v1886_v0, 0.0  ;;  %v2057_v36 = vadd.f32 %v2025_v28, %v1935_v7 }
 0x4f9   :  { %v4014_v51 = vpop.eup %4013  ;;  %v1960_v1 = vadd.f32 %v1959_v42, %v1958_v11  ;;  %v2100_v5 = vadd.f32 %v5079_v26, %v2084_v46  ;;  %v1998_v6 = vadd.f32 %v1997_v63, %v1996_v2  ;;  %v5093_v15 = vadd.f32 %v2101_v54, %v4806_v50 }
 0x4fa   :  { %v1887_v14 = vmul.f32 %v4995_v29, %v1857_v47  ;;  %v1813_v12 = vadd.f32 1.0, %v4014_v51  ;;  %v1836_v27 = vmul.f32 0.5, %v1812_v45  ;;  %v2058_v40 = vadd.f32 %v2027_v31, %v1944_v58 }
 0x4fb   :  { %v4016_v22 = vpop.eup %4015  ;;  %v1961_v4 = vrot.slane %v1960_v1, 1  ;;  %v2102_v24 = vadd.f32 %v5079_v26, %v2086_v37  ;;  %v2069_v11 = vmax.f32 %v2057_v36, 0.0 }
 0x4fc   :  { %v4018_v59 = vpop.eup %4017  ;;  %v1946_v53 = vsel %vm580_vm1, %v1887_v14, 0.0  ;;  %v1837_v57 = vmul.f32 0.5, %v1813_v12  ;;  %v1860_v13 = vmul.f32 %v1836_v27, %v5861_v43  ;;  %v1820_v18 = vadd.f32 1.0, %v4016_v22  ;;  %v2031_v27 = vpop.permute.xlu0 %2030 }
 0x4fd   :  { %v4020_v3 = vpop.eup %4019  ;;  %v1947_v62 = vadd.f32 %v1946_v53, %v1945_v39  ;;  %v1821_v33 = vadd.f32 1.0, %v4018_v59  ;;  %v1962_v48 = vadd.f32 %v1961_v4, %v1960_v1  ;;  %v2070_v45 = vmax.f32 %v2058_v40, 0.0 }
 0x4fe   :  { %v1861_v2 = vmul.f32 %v1837_v57, %v5862_v23  ;;  %v1890_v50 = vmul.f32 %v4991_v41, %v1860_v13  ;;  %v1814_v0 = vadd.f32 1.0, %v4020_v3  ;;  %v1844_v46 = vmul.f32 0.5, %v1820_v18 }
 0x4ff   :  { %v4022_v7 = vpop.eup %4021  ;;  %v1948_v55 = vrot.slane %v1947_v62, 4  ;;  %v1845_v63 = vmul.f32 0.5, %v1821_v33  ;;  %v2087_v39 = vmul.f32 %v5048_v52, %v2069_v11  ;;  %v2149_v12 = vrot.slane %v5093_v15, 7 }
 0x500   :  { %v1891_v54 = vmul.f32 %v4995_v29, %v1861_v2  ;;  %v1963_v42 = vsel %vm50_vm0, %v1890_v50, 0.0  ;;  %v1815_v58 = vadd.f32 1.0, %v4022_v7  ;;  %v1838_v47 = vmul.f32 0.5, %v1814_v0 }
 0x501   :  { %v1949_v51 = vadd.f32 %v1948_v55, %v1947_v62  ;;  %v1868_v37 = vmul.f32 %v1844_v46, %v5863_v49  ;;  %v1869_v28 = vmul.f32 %v1845_v63, %v5864_v34  ;;  %v2060_v59 = vadd.f32 %v2031_v27, %v1962_v48 }
 0x502   :  { %v1964_v36 = vsel %vm580_vm1, %v1891_v54, 0.0  ;;  %v1839_v1 = vmul.f32 0.5, %v1815_v58  ;;  %v1862_v14 = vmul.f32 %v1838_v47, %v4408_v9  ;;  %v5113_v13 = vadd.f32 %v2102_v24, %v4826_v8 }
 0x503   :  { %v1950_v22 = vrot.slane %v1949_v51, 2  ;;  %v1965_v31 = vadd.f32 %v1964_v36, %v1963_v42  ;;  %v1898_v4 = vmul.f32 %v4991_v41, %v1868_v37  ;;  %v1899_v40 = vmul.f32 %v4995_v29, %v1869_v28 }
 0x504   :  { %v1863_v53 = vmul.f32 %v1839_v1, %v5865_v19  ;;  %v1892_v57 = vmul.f32 %v4991_v41, %v1862_v14  ;;  %v2088_v33 = vmul.f32 %v5048_v52, %v2070_v45  ;;  %v2103_v11 = vadd.f32 %v5079_v26, %v2087_v39 }
 0x505   :  { %v1951_v3 = vadd.f32 %v1950_v22, %v1949_v51  ;;  %v1966_v62 = vrot.slane %v1965_v31, 4  ;;  %v1999_v18 = vsel %vm50_vm0, %v1898_v4, 0.0  ;;  %v2000_v2 = vsel %vm580_vm1, %v1899_v40, 0.0  ;;  %v2029_v51 = vpop.permute.xlu1 %2028 }
 0x506   :  { %v1893_v50 = vmul.f32 %v4995_v29, %v1863_v53  ;;  %v2001_v48 = vadd.f32 %v2000_v2, %v1999_v18  ;;  %v1972_v41 = vsel %vm50_vm0, %v1892_v57, 0.0  ;;  %v2063_v8 = vadd.f32 %v5060_v61, %v5086_v56  ;;  %v2033_v53 = vpop.permute.xlu0 %2032 }
 0x507   :  { %v1952_v0 = vrot.slane %v1951_v3, 1  ;;  %v1967_v7 = vadd.f32 %v1966_v62, %v1965_v31  ;;  %v5124_v24 = vadd.f32 %v2100_v5, %v4837_v30  ;;  %v2072_v55 = vmax.f32 %v2060_v59, 0.0 }
 0x508   :  { %v1973_v46 = vsel %vm580_vm1, %v1893_v50, 0.0  ;;  %v2064_v63 = vadd.f32 %v5068_v25, %v1998_v6  ;;  %v2002_v58 = vrot.slane %v2001_v48, 4  ;;  %v2151_v47 = vrot.slane %v5113_v13, 6 }
 0x509   :  { %v1953_v54 = vadd.f32 %v1952_v0, %v1951_v3  ;;  %v1968_v42 = vrot.slane %v1967_v7, 2  ;;  %v2150_v29 = vsel %vm817_vm2, %v2149_v12, %v5124_v24  ;;  %v2104_v45 = vadd.f32 %v5079_v26, %v2088_v33 }
 0x50a   :  { %v1974_v61 = vadd.f32 %v1973_v46, %v1972_v41  ;;  %v5133_v30 = vadd.f32 %v2103_v11, %v4846_v38  ;;  %v2003_v37 = vadd.f32 %v2002_v58, %v2001_v48  ;;  %v2090_v25 = vmul.f32 %v5048_v52, %v2072_v55 }
 0x50b   :  { %v2059_v56 = vadd.f32 %v2029_v51, %v1953_v54  ;;  %v1969_v5 = vadd.f32 %v1968_v42, %v1967_v7  ;;  %v2075_v28 = vmax.f32 %v2063_v8, 0.0  ;;  %v2076_v14 = vmax.f32 %v2064_v63, 0.0  ;;  %v2041_v8 = vpop.permute.xlu1 %2040  ;;  %v2035_v51 = vpop.permute.xlu0 %2034 }
 0x50c   :  { %v1975_v6 = vrot.slane %v1974_v61, 4  ;;  %v2004_v1 = vrot.slane %v2003_v37, 2  ;;  %v2152_v12 = vsel %vm820_vm3, %v2151_v47, %v2150_v29  ;;  %v5138_v27 = vadd.f32 %v2104_v45, %v4851_v21 }
 0x50d   :  { %v2071_v39 = vmax.f32 %v2059_v56, 0.0  ;;  %v1970_v36 = vrot.slane %v1969_v5, 1  ;;  %v2153_v38 = vrot.slane %v5133_v30, 5  ;;  %v2106_v40 = vadd.f32 %v5079_v26, %v2090_v25  ;;  %v5884_v25 = vld [vmem:[#allocation20_spill] sm:$0xff] }
 0x50e   :  { %v1976_v22 = vadd.f32 %v1975_v6, %v1974_v61  ;;  %v2005_v59 = vadd.f32 %v2004_v1, %v2003_v37  ;;  %v2093_v21 = vmul.f32 %v5048_v52, %v2075_v28  ;;  %v2155_v11 = vrot.slane %v5138_v27, 4 }
 0x50f   :  { %v2089_v31 = vmul.f32 %v5048_v52, %v2071_v39  ;;  %v1971_v4 = vadd.f32 %v1970_v36, %v1969_v5  ;;  %v2154_v33 = vsel %vm823_vm4, %v2153_v38, %v2152_v12  ;;  %v2094_v50 = vmul.f32 %v5048_v52, %v2076_v14  ;;  %v5886_v36 = vld [vmem:[#allocation6_spill] sm:$0xff] }
 0x510   :  { %v1977_v57 = vrot.slane %v1976_v22, 2  ;;  %v2006_v18 = vrot.slane %v2005_v59, 1  ;;  %v5152_v41 = vadd.f32 %v2106_v40, %v4865_v10  ;;  %v2156_v46 = vsel %vm826_vm5, %v2155_v11, %v2154_v33 }
 0x511   :  { %v2105_v3 = vadd.f32 %v5079_v26, %v2089_v31  ;;  %v2061_v62 = vadd.f32 %v2033_v53, %v1971_v4  ;;  %v2109_v58 = vadd.f32 %v5079_v26, %v2093_v21  ;;  %v5888_v31 = vld [vmem:[#allocation19_spill] sm:$0xff]  ;;  %v5890_v53 = vld [vmem:[#allocation25_spill] sm:$0xff] }
 0x512   :  { %v1978_v2 = vadd.f32 %v1977_v57, %v1976_v22  ;;  %v2007_v48 = vadd.f32 %v2006_v18, %v2005_v59  ;;  %v2159_v61 = vrot.slane %v5152_v41, 2 }
 0x513   :  { %v5149_v0 = vadd.f32 %v2105_v3, %v4862_v44  ;;  %v2073_v7 = vmax.f32 %v2061_v62, 0.0  ;;  %v2110_v44 = vadd.f32 %v5079_v26, %v2094_v50  ;;  %v5167_v6 = vadd.f32 %v2109_v58, %v5884_v25 }
 0x514   :  { %v1979_v55 = vrot.slane %v1978_v2, 1  ;;  %v2065_v42 = vadd.f32 %v2041_v8, %v2007_v48 }
 0x515   :  { %v2157_v63 = vrot.slane %v5149_v0, 3  ;;  %v2091_v54 = vmul.f32 %v5048_v52, %v2073_v7  ;;  %5885 = vst [vmem:[#allocation22_spill] sm:$0xff] %v5167_v6  ;;  %v5171_v1 = vadd.f32 %v2110_v44, %v5886_v36  ;;  %v2163_v38 = vrot.slane %v5167_v6, 7  ;;  %v3701_v44 = vld [vmem:[%s5765_s2 + $0x88] sm:$0xff] }
 0x516   :  { %v1980_v29 = vadd.f32 %v1979_v55, %v1978_v2  ;;  %v2077_v45 = vmax.f32 %v2065_v42, 0.0 }
 0x517   :  { %v2107_v47 = vadd.f32 %v5079_v26, %v2091_v54  ;;  %v2158_v10 = vsel %vm829_vm6, %v2157_v63, %v2156_v46  ;;  %5887 = vst [vmem:[#allocation29_spill] sm:$0xff] %v5171_v1  ;;  %v2165_v40 = vrot.slane %v5171_v1, 6 }
 0x518   :  { %v2062_v56 = vadd.f32 %v2035_v51, %v1980_v29  ;;  %v2095_v37 = vmul.f32 %v5048_v52, %v2077_v45  ;;  %v2160_v39 = vsel %vm832_vm7, %v2159_v61, %v2158_v10  ;;  %v3700_v29 = vld [vmem:[%s5765_s2 + $0x80] sm:$0xff]  ;;  %v3703_v51 = vld [vmem:[%s5765_s2 + $0x98] sm:$0xff] }
 0x519   :  { %v5163_v5 = vadd.f32 %v2107_v47, %v4876_v20  ;;  %v3702_v47 = vld [vmem:[%s5765_s2 + $0x90] sm:$0xff]  ;;  %v3854_v45 = vpack.c.bf16 %v3701_v44, %v3700_v29 }
 0x51a   :  { %v2074_v28 = vmax.f32 %v2062_v56, 0.0  ;;  %v2111_v14 = vadd.f32 %v5079_v26, %v2095_v37  ;;  %v3858_v10 = vpack.c.bf16 %v3703_v51, %v3702_v47  ;;  %v5892_v61 = vld [vmem:[#allocation16_spill] sm:$0xff] }
 0x51b   :  { %v2161_v12 = vrot.slane %v5163_v5, 1  ;;  %3855 = vmatprep.subr.bf16.mxu0 %v3854_v45 }
 0x51c   :  { %v2092_v22 = vmul.f32 %v5048_v52, %v2074_v28  ;;  %v5179_v4 = vadd.f32 %v2111_v14, %v5888_v31  ;;  %3857 = vmatpush3.bf16.msra.mxu0 %v3854_v45 }
 0x51d   :  { %v2162_v20 = vsel %vm835_vm8, %v2161_v12, %v2160_v39  ;;  %3859 = vmatprep.subr.bf16.mxu0 %v3858_v10 }
 0x51e   :  { %5889 = vst [vmem:[#allocation28_spill] sm:$0xff] %v5179_v4  ;;  %v2108_v59 = vadd.f32 %v5079_v26, %v2092_v22  ;;  %3790 = vmatprep.mubr.msk.f32.mxu1 %vm50_vm0, %v2162_v20  ;;  %v2167_v3 = vrot.slane %v5179_v4, 5  ;;  %v3696_v26 = vld [vmem:[%s5766_s3 + $0x3] ss:$0 sm:$0xff] }
 0x520   :  { %v5185_v57 = vadd.f32 %v2108_v59, %v5890_v53  ;;  %3861 = vmatpush3.bf16.msra.mxu0 %v3858_v10 }
 0x522   :  { %5891 = vst [vmem:[#allocation27_spill] sm:$0xff] %v5185_v57  ;;  %v2164_v52 = vsel %vm817_vm2, %v2163_v38, %v5185_v57  ;;  %v5893_v38 = vld [vmem:[#allocation7_spill] sm:$0xff] }
 0x523   :  { %v2166_v62 = vsel %vm820_vm3, %v2165_v40, %v2164_v52 }
 0x524   :  { %v2168_v18 = vsel %vm823_vm4, %v2167_v3, %v2166_v62 }
 0x525   :  { %3791 = vmatmul.mubr.msk.f32.vlgmr.msra.gmra.mrb[2].mxu1 %vm50_vm0, %v2168_v18 }
 0x5f8   :  { %v3792_v33 = vpop.f32.mrb[2].mxu1 }
 0x5f9   :  { %v2245_v21 = vadd.f32 %v3792_v33, %v3696_v26  ;;  %v2239_v11 = vpop.f32.mrb[3].mxu1 }
 0x5fa   :  { %v2240_v2 = vadd.f32 %v3696_v26, %v2239_v11 }
 0x5fb   :  { %2385 = vrot.lane.b32.xlu1 %v2245_v21, %s4144_s28  ;;  %v2678_v50 = vrot.slane %v2245_v21, 1  ;;  %v2679_v7 = vrot.slane %v2245_v21, 2  ;;  %v2680_v58 = vrot.slane %v2245_v21, 3  ;;  %v2305_v56 = vrot.slane %v2245_v21, %v5892_v61 }
 0x5fc   :  { %2383 = vrot.lane.b32.xlu0 %v2240_v2, %s4144_s28  ;;  %v2671_v48 = vrot.slane %v2240_v2, 1  ;;  %v2672_v8 = vrot.slane %v2240_v2, 2  ;;  %v2674_v55 = vrot.slane %v2240_v2, 4  ;;  %v2673_v46 = vrot.slane %v2240_v2, 3 }
 0x5fd   :  { %v2676_v63 = vrot.slane %v2240_v2, 6  ;;  %v2675_v54 = vrot.slane %v2240_v2, 5  ;;  %v2677_v42 = vrot.slane %v2240_v2, 7  ;;  %v2257_v37 = vrot.slane %v2240_v2, %v5892_v61 }
 0x5fe   :  { %v2306_v25 = vcombine.high %v2305_v56, %v2305_v56  ;;  %v5227_v28 = vrot.slane %v2305_v56, %v5892_v61  ;;  %v2250_v12 = vcombine.high %v2240_v2, %v2240_v2 }
 0x5ff   :  { %2535 = vrot.lane.b32.xlu1 %v2245_v21, %s4143_s27  ;;  %v2265_v39 = vcombine.high %v2257_v37, %v2257_v37  ;;  %v2273_v14 = vrot.slane %v2257_v37, %v5892_v61 }
 0x600   :  { %2533 = vrot.lane.b32.xlu0 %v2240_v2, %s4143_s27  ;;  %v5230_v36 = vrot.slane %v2306_v25, %v5892_v61  ;;  %v2321_v22 = vcombine.high %v5227_v28, %v5227_v28  ;;  %v2264_v53 = vrot.slane %v2250_v12, %v5892_v61 }
 0x601   :  { %v2287_v20 = vrot.slane %v2265_v39, %v5892_v61  ;;  %v2326_v59 = vrot.slane %v2273_v14, %v5893_v38  ;;  %v2295_v40 = vcombine.high %v2273_v14, %v2273_v14 }
 0x602   :  { %v2362_v31 = vrot.slane %v5230_v36, %v5893_v38  ;;  %v2366_v52 = vrot.slane %v2321_v22, %v5893_v38  ;;  %v2266_v22 = vcombine.high %v2264_v53, %v2264_v53 }
 0x603   :  { %2699 = vrot.lane.b32.xlu1 %v2678_v50, %s4145_s1  ;;  %v2330_v33 = vrot.slane %v2287_v20, %v5893_v38  ;;  %v2297_v56 = vcombine.high %v2287_v20, %v2287_v20 }
 0x604   :  { %2681 = vrot.lane.b32.xlu0 %v2240_v2, %s4145_s1 }
 0x605   :  { %v2338_v12 = vrot.slane %v2297_v56, %v5893_v38 }
 0x607   :  { %2701 = vrot.lane.b32.xlu1 %v2679_v7, %s4145_s1 }
 0x608   :  { %2683 = vrot.lane.b32.xlu0 %v2671_v48, %s4145_s1  ;;  %v2334_v48 = vrot.slane %v2295_v40, %v5893_v38 }
 0x60b   :  { %2685 = vrot.lane.b32.xlu1 %v2672_v8, %s4145_s1  ;;  %v2280_v8 = vrot.slane %v2264_v53, %v5892_v61 }
 0x60c   :  { %2689 = vrot.lane.b32.xlu0 %v2674_v55, %s4145_s1 }
 0x60d   :  { %v2342_v51 = vrot.slane %v2280_v8, %v5893_v38 }
 0x60f   :  { %2687 = vrot.lane.b32.xlu1 %v2673_v46, %s4145_s1 }
 0x610   :  { %2693 = vrot.lane.b32.xlu0 %v2676_v63, %s4145_s1 }
 0x613   :  { %2691 = vrot.lane.b32.xlu1 %v2675_v54, %s4145_s1 }
 0x614   :  { %2695 = vrot.lane.b32.xlu0 %v2677_v42, %s4145_s1 }
 0x617   :  { %2703 = vrot.lane.b32.xlu1 %v2680_v58, %s4145_s1 }
 0x618   :  { %2697 = vrot.lane.b32.xlu0 %v2245_v21, %s4145_s1 }
 0x66d   :  { %v5240_v3 = vpop.permute.xlu1 %2385 }
 0x66e   :  { %v5243_v62 = vpop.permute.xlu0 %2383  ;;  %v2408_v18 = vadd.f32 %v5240_v3, %v2362_v31  ;;  %v2390_v26 = vadd.f32 %v5240_v3, %v2326_v59  ;;  %v2392_v54 = vadd.f32 %v5240_v3, %v2330_v33  ;;  %v2410_v42 = vadd.f32 %v5240_v3, %v2366_v52 }
 0x66f   :  { %v2407_v21 = vadd.f32 %v5243_v62, %v2362_v31  ;;  %v2389_v11 = vadd.f32 %v5243_v62, %v2326_v59  ;;  %v2409_v2 = vadd.f32 %v5243_v62, %v2366_v52  ;;  %v2391_v7 = vadd.f32 %v5243_v62, %v2330_v33 }
 0x670   :  { %v2432_v50 = vmul.f32 0.5, %v2408_v18  ;;  %v2414_v63 = vmul.f32 0.5, %v2390_v26  ;;  %v2393_v29 = vadd.f32 %v5243_v62, %v2334_v48  ;;  %v2416_v47 = vmul.f32 0.5, %v2392_v54 }
 0x671   :  { %v2431_v55 = vmul.f32 0.5, %v2407_v21  ;;  %v2413_v46 = vmul.f32 0.5, %v2389_v11  ;;  %v2433_v58 = vmul.f32 0.5, %v2409_v2  ;;  %v2415_v44 = vmul.f32 0.5, %v2391_v7 }
 0x672   :  { %4023 = vtanh.f32 %v2432_v50  ;;  %v2394_v45 = vadd.f32 %v5240_v3, %v2334_v48  ;;  %v2434_v10 = vmul.f32 0.5, %v2410_v42  ;;  %v2417_v37 = vmul.f32 0.5, %v2393_v29 }
 0x673   :  { %4025 = vtanh.f32 %v2431_v55  ;;  %v2397_v25 = vadd.f32 %v5243_v62, %v2342_v51  ;;  %v2398_v14 = vadd.f32 %v5240_v3, %v2342_v51  ;;  %v2395_v40 = vadd.f32 %v5243_v62, %v2338_v12 }
 0x674   :  { %4027 = vtanh.f32 %v2413_v46  ;;  %v2418_v39 = vmul.f32 0.5, %v2394_v45  ;;  %v2296_v52 = vcombine.high %v2280_v8, %v2280_v8  ;;  %v5264_v33 = vrot.slane %v2266_v22, %v5892_v61 }
 0x675   :  { %4029 = vtanh.f32 %v2414_v63  ;;  %v2421_v31 = vmul.f32 0.5, %v2397_v25  ;;  %v2422_v18 = vmul.f32 0.5, %v2398_v14  ;;  %v2396_v2 = vadd.f32 %v5240_v3, %v2338_v12  ;;  %v5278_v25 = vpop.permute.xlu0 %2533 }
 0x676   :  { %4031 = vtanh.f32 %v2433_v58  ;;  %v2419_v53 = vmul.f32 0.5, %v2395_v40  ;;  %v2350_v7 = vrot.slane %v2296_v52, %v5893_v38  ;;  %v5271_v58 = vrot.slane %v5264_v33, %v5893_v38 }
 0x677   :  { %4033 = vtanh.f32 %v2415_v44 }
 0x678   :  { %4035 = vtanh.f32 %v2416_v47  ;;  %v2401_v42 = vadd.f32 %v5243_v62, %v2350_v7  ;;  %v5894_v47 = vld [vmem:[#allocation13_spill] sm:$0xff]  ;;  %v2402_v22 = vadd.f32 %v5240_v3, %v2350_v7 }
 0x679   :  { %4037 = vtanh.f32 %v2434_v10  ;;  %v2420_v10 = vmul.f32 0.5, %v2396_v2  ;;  %v2399_v2 = vadd.f32 %v5243_v62, %v5271_v58 }
 0x67a   :  { %4039 = vtanh.f32 %v2417_v37 }
 0x67b   :  { %4041 = vtanh.f32 %v2418_v39  ;;  %v5895_v39 = vld [vmem:[#allocation12_spill] sm:$0xff] }
 0x67c   :  { %v4024_v59 = vpop.eup %4023  ;;  %4043 = vtanh.f32 %v2421_v31 }
 0x67d   :  { %v4026_v20 = vpop.eup %4025  ;;  %v2480_v46 = vadd.f32 1.0, %v4024_v59  ;;  %4045 = vtanh.f32 %v2422_v18  ;;  %v5282_v59 = vpop.permute.xlu1 %2535 }
 0x67e   :  { %v4028_v26 = vpop.eup %4027  ;;  %v2479_v55 = vadd.f32 1.0, %v4026_v20  ;;  %4047 = vtanh.f32 %v2419_v53 }
 0x67f   :  { %v4030_v21 = vpop.eup %4029  ;;  %v2461_v11 = vadd.f32 1.0, %v4028_v26  ;;  %v2504_v52 = vmul.f32 0.5, %v2480_v46  ;;  %4049 = vtanh.f32 %v2420_v10  ;;  %v5897_v46 = vld [vmem:[#allocation9_spill] sm:$0xff]  ;;  %v2423_v10 = vmul.f32 0.5, %v2399_v2  ;;  %v5901_v2 = vld [vmem:[#allocation11_spill] sm:$0xff] }
 0x680   :  { %v2462_v50 = vadd.f32 1.0, %v4030_v21  ;;  %v4032_v48 = vpop.eup %4031  ;;  %v2503_v40 = vmul.f32 0.5, %v2479_v55 }
 0x681   :  { %v2485_v8 = vmul.f32 0.5, %v2461_v11  ;;  %v4034_v63 = vpop.eup %4033  ;;  %v2425_v11 = vmul.f32 0.5, %v2401_v42  ;;  %v5899_v42 = vld [vmem:[#allocation21_spill] sm:$0xff] }
 0x682   :  { %v2486_v54 = vmul.f32 0.5, %v2462_v50  ;;  %v4036_v44 = vpop.eup %4035  ;;  %v2463_v51 = vadd.f32 1.0, %v4034_v63  ;;  %v5896_v63 = vld [vmem:[#allocation8_spill] sm:$0xff]  ;;  %v2528_v29 = vmul.f32 %v2504_v52, %v5899_v42 }
 0x683   :  { %v2509_v45 = vmul.f32 %v2485_v8, %v5894_v47  ;;  %v4038_v37 = vpop.eup %4037  ;;  %v2464_v12 = vadd.f32 1.0, %v4036_v44  ;;  %v2481_v8 = vadd.f32 1.0, %v4032_v48  ;;  %4051 = vtanh.f32 %v2425_v11 }
 0x684   :  { %v2510_v14 = vmul.f32 %v2486_v54, %v5895_v39  ;;  %v4040_v31 = vpop.eup %4039  ;;  %v2487_v18 = vmul.f32 0.5, %v2463_v51  ;;  %v2482_v53 = vadd.f32 1.0, %v4038_v37  ;;  %v2426_v39 = vmul.f32 0.5, %v2402_v22 }
 0x685   :  { %v2539_v20 = vmul.f32 %v5278_v25, %v2509_v45  ;;  %v2488_v21 = vmul.f32 0.5, %v2464_v12  ;;  %v4042_v50 = vpop.eup %4041  ;;  %v2465_v45 = vadd.f32 1.0, %v4040_v31  ;;  %v2505_v47 = vmul.f32 0.5, %v2481_v8 }
 0x686   :  { %v2540_v26 = vmul.f32 %v5282_v59, %v2510_v14  ;;  %v2511_v7 = vmul.f32 %v2487_v18, %v5896_v63  ;;  %v4044_v51 = vpop.eup %4043  ;;  %v5898_v14 = vld [vmem:[#allocation23_spill] sm:$0xff]  ;;  %v2466_v37 = vadd.f32 1.0, %v4042_v50  ;;  %v2558_v22 = vmul.f32 %v5282_v59, %v2528_v29 }
 0x687   :  { %v2563_v54 = vsel %vm50_vm0, %v2539_v20, 0.0  ;;  %v2512_v44 = vmul.f32 %v2488_v21, %v5897_v46  ;;  %v2527_v12 = vmul.f32 %v2503_v40, %v5898_v14  ;;  %v2489_v18 = vmul.f32 0.5, %v2465_v45  ;;  %v4046_v63 = vpop.eup %4045  ;;  %v5900_v40 = vld [vmem:[#allocation10_spill] sm:$0xff] }
 0x688   :  { %v2564_v55 = vsel %vm580_vm1, %v2540_v26, 0.0  ;;  %v2541_v56 = vmul.f32 %v5278_v25, %v2511_v7  ;;  %v2506_v26 = vmul.f32 0.5, %v2482_v53  ;;  %v2490_v46 = vmul.f32 0.5, %v2466_v37  ;;  %v4048_v50 = vpop.eup %4047  ;;  %v5903_v37 = vld [vmem:[#allocation24_spill] sm:$0xff] }
 0x689   :  { %v2542_v48 = vmul.f32 %v5282_v59, %v2512_v44  ;;  %v2565_v20 = vadd.f32 %v2564_v55, %v2563_v54  ;;  %v2513_v14 = vmul.f32 %v2489_v18, %v5900_v40  ;;  %v2469_v52 = vadd.f32 1.0, %v4044_v51  ;;  %v5902_v55 = vld [vmem:[#allocation26_spill] sm:$0xff]  ;;  %v4050_v11 = vpop.eup %4049 }
 0x68a   :  { %v2572_v21 = vsel %vm50_vm0, %v2541_v56, 0.0  ;;  %v2557_v7 = vmul.f32 %v5278_v25, %v2527_v12  ;;  %v2514_v45 = vmul.f32 %v2490_v46, %v5901_v2  ;;  %v2470_v53 = vadd.f32 1.0, %v4046_v63  ;;  %v5904_v40 = vld [vmem:[#allocation18_spill] sm:$0xff] }
 0x68b   :  { %v2573_v31 = vsel %vm580_vm1, %v2542_v48, 0.0  ;;  %v2543_v8 = vmul.f32 %v5278_v25, %v2513_v14  ;;  %v2493_v54 = vmul.f32 0.5, %v2469_v52  ;;  %v2566_v56 = vrot.slane %v2565_v20, 4 }
 0x68c   :  { %v2574_v44 = vadd.f32 %v2573_v31, %v2572_v21  ;;  %v2529_v48 = vmul.f32 %v2505_v47, %v5902_v55  ;;  %v2530_v42 = vmul.f32 %v2506_v26, %v5903_v37  ;;  %v2544_v51 = vmul.f32 %v5282_v59, %v2514_v45  ;;  %v5905_v47 = vld [vmem:[#allocation17_spill] sm:$0xff]  ;;  %v2682_v55 = vpop.permute.xlu0 %2681 }
 0x68d   :  { %v2494_v12 = vmul.f32 0.5, %v2470_v53  ;;  %v2517_v29 = vmul.f32 %v2493_v54, %v5904_v40  ;;  %4053 = vtanh.f32 %v2426_v39  ;;  %v2644_v21 = vsel %vm50_vm0, %v2557_v7, 0.0 }
 0x68e   :  { %v2575_v18 = vrot.slane %v2574_v44, 4  ;;  %v2645_v46 = vsel %vm580_vm1, %v2558_v22, 0.0  ;;  %v2581_v63 = vsel %vm50_vm0, %v2543_v8, 0.0  ;;  %v2582_v31 = vsel %vm580_vm1, %v2544_v51, 0.0 }
 0x68f   :  { %v2518_v52 = vmul.f32 %v2494_v12, %v5905_v47  ;;  %v2547_v26 = vmul.f32 %v5278_v25, %v2517_v29  ;;  %v2467_v37 = vadd.f32 1.0, %v4048_v50  ;;  %v2567_v45 = vadd.f32 %v2566_v56, %v2565_v20  ;;  %v4052_v29 = vpop.eup %4051  ;;  %v5347_v47 = vpop.permute.xlu1 %2699 }
 0x690   :  { %v2576_v14 = vadd.f32 %v2575_v18, %v2574_v44  ;;  %v2559_v53 = vmul.f32 %v5278_v25, %v2529_v48  ;;  %v2560_v39 = vmul.f32 %v5282_v59, %v2530_v42  ;;  %v2583_v40 = vadd.f32 %v2582_v31, %v2581_v63  ;;  %v5326_v42 = vld [vmem:[%s5767_s4 + $0x6] sm:$0x3] }
 0x691   :  { %v2548_v7 = vmul.f32 %v5282_v59, %v2518_v52  ;;  %v2468_v22 = vadd.f32 1.0, %v4050_v11  ;;  %v5906_v44 = vcombine.high %v5264_v33, %v5264_v33  ;;  %v2646_v18 = vadd.f32 %v2645_v46, %v2644_v21  ;;  %v5908_v52 = vld [vmem:[#allocation14_spill] sm:$0xff] }
 0x692   :  { %v2577_v54 = vrot.slane %v2576_v14, 2  ;;  %v2599_v51 = vsel %vm50_vm0, %v2547_v26, 0.0  ;;  %v2400_v20 = vadd.f32 %v5240_v3, %v5271_v58  ;;  %4055 = vtanh.f32 %v2423_v10  ;;  %v5907_v10 = vld [vmem:[#allocation15_spill] sm:$0xff] }
 0x693   :  { %v2354_v8 = vrot.slane %v5906_v44, %v5893_v38  ;;  %v2584_v50 = vrot.slane %v2583_v40, 4  ;;  %v2600_v56 = vsel %vm580_vm1, %v2548_v7, 0.0  ;;  %v2491_v48 = vmul.f32 0.5, %v2467_v37  ;;  %v5355_v1 = vpop.permute.xlu1 %2701 }
 0x694   :  { %v2492_v12 = vmul.f32 0.5, %v2468_v22  ;;  %v2568_v33 = vrot.slane %v2567_v45, 2  ;;  %v2653_v11 = vsel %vm50_vm0, %v2559_v53, 0.0  ;;  %v2654_v21 = vsel %vm580_vm1, %v2560_v39, 0.0 }
 0x695   :  { %v2578_v46 = vadd.f32 %v2577_v54, %v2576_v14  ;;  %v2585_v63 = vadd.f32 %v2584_v50, %v2583_v40  ;;  %v2601_v58 = vadd.f32 %v2600_v56, %v2599_v51  ;;  %v2515_v31 = vmul.f32 %v2491_v48, %v5907_v10 }
 0x696   :  { %v2516_v26 = vmul.f32 %v2492_v12, %v5908_v52  ;;  %v5335_v44 = vrot.slane %v5326_v42, %v5893_v38  ;;  %v2403_v37 = vadd.f32 %v5243_v62, %v2354_v8  ;;  %v2404_v7 = vadd.f32 %v5240_v3, %v2354_v8 }
 0x697   :  { %v2358_v53 = vrot.slane %v5227_v28, %v5893_v38  ;;  %v4054_v22 = vpop.eup %4053  ;;  %v2655_v39 = vadd.f32 %v2654_v21, %v2653_v11  ;;  %v2586_v14 = vrot.slane %v2585_v63, 2  ;;  %v2545_v40 = vmul.f32 %v5278_v25, %v2515_v31 }
 0x698   :  { %v2546_v54 = vmul.f32 %v5282_v59, %v2516_v26  ;;  %v2569_v51 = vadd.f32 %v2568_v33, %v2567_v45  ;;  %v2579_v50 = vrot.slane %v2578_v46, 1  ;;  %v2424_v56 = vmul.f32 0.5, %v2400_v20 }
 0x699   :  { %v5909_v48 = vcombine.high %v5230_v36, %v5230_v36  ;;  %v2647_v8 = vrot.slane %v2646_v18, 4  ;;  %v2602_v28 = vrot.slane %v2601_v58, 4  ;;  %v2590_v11 = vsel %vm50_vm0, %v2545_v40, 0.0 }
 0x69a   :  { %v2591_v21 = vsel %vm580_vm1, %v2546_v54, 0.0  ;;  %v2587_v31 = vadd.f32 %v2586_v14, %v2585_v63  ;;  %v2427_v52 = vmul.f32 0.5, %v2403_v37  ;;  %v2428_v26 = vmul.f32 0.5, %v2404_v7 }
 0x69b   :  { %v2370_v12 = vrot.slane %v5909_v48, %v5893_v38  ;;  %v2656_v20 = vrot.slane %v2655_v39, 4  ;;  %v2592_v33 = vadd.f32 %v2591_v21, %v2590_v11  ;;  %v2473_v10 = vadd.f32 1.0, %v4052_v29  ;;  %v2684_v11 = vpop.permute.xlu0 %2683 }
 0x69c   :  { %v4056_v48 = vpop.eup %4055  ;;  %v2570_v2 = vrot.slane %v2569_v51, 1  ;;  %v2580_v38 = vadd.f32 %v2579_v50, %v2578_v46  ;;  %v2405_v61 = vadd.f32 %v5243_v62, %v2358_v53  ;;  %v2406_v57 = vadd.f32 %v5240_v3, %v2358_v53 }
 0x69d   :  { %v2411_v45 = vadd.f32 %v5243_v62, %v2370_v12  ;;  %v2412_v36 = vadd.f32 %v5240_v3, %v2370_v12  ;;  %v2648_v40 = vadd.f32 %v2647_v8, %v2646_v18  ;;  %v2603_v4 = vadd.f32 %v2602_v28, %v2601_v58 }
 0x69e   :  { %v2593_v54 = vrot.slane %v2592_v33, 4  ;;  %v2474_v63 = vadd.f32 1.0, %v4054_v22  ;;  %v2588_v37 = vrot.slane %v2587_v31, 1  ;;  %v2497_v7 = vmul.f32 0.5, %v2473_v10 }
 0x69f   :  { %4057 = vtanh.f32 %v2424_v56  ;;  %v2435_v14 = vmul.f32 0.5, %v2411_v45  ;;  %v2657_v29 = vadd.f32 %v2656_v20, %v2655_v39  ;;  %v2436_v6 = vmul.f32 0.5, %v2412_v36  ;;  %v2686_v36 = vpop.permute.xlu1 %2685 }
 0x6a0   :  { %v2594_v12 = vadd.f32 %v2593_v54, %v2592_v33  ;;  %v2498_v21 = vmul.f32 0.5, %v2474_v63  ;;  %v2571_v46 = vadd.f32 %v2570_v2, %v2569_v51  ;;  %v2718_v50 = vadd.f32 %v2684_v11, %v2580_v38 }
 0x6a1   :  { %v2521_v62 = vmul.f32 %v2497_v7, %v4339_v17  ;;  %v2471_v3 = vadd.f32 1.0, %v4056_v48  ;;  %v2649_v18 = vrot.slane %v2648_v40, 2  ;;  %v2604_v58 = vrot.slane %v2603_v4, 2 }
 0x6a2   :  { %v2595_v53 = vrot.slane %v2594_v12, 2  ;;  %v2522_v22 = vmul.f32 %v2498_v21, %v4337_v16  ;;  %v2589_v10 = vadd.f32 %v2588_v37, %v2587_v31  ;;  %4059 = vtanh.f32 %v2427_v52 }
 0x6a3   :  { %v2551_v56 = vmul.f32 %v5278_v25, %v2521_v62  ;;  %v2495_v8 = vmul.f32 0.5, %v2471_v3  ;;  %v2658_v39 = vrot.slane %v2657_v29, 2  ;;  %v2429_v20 = vmul.f32 0.5, %v2405_v61 }
 0x6a4   :  { %v2596_v28 = vadd.f32 %v2595_v53, %v2594_v12  ;;  %v2552_v45 = vmul.f32 %v5282_v59, %v2522_v22  ;;  %v2717_v2 = vadd.f32 %v2682_v55, %v2571_v46  ;;  %v2730_v38 = vmax.f32 %v2718_v50, 0.0 }
 0x6a5   :  { %v2617_v51 = vsel %vm50_vm0, %v2551_v56, 0.0  ;;  %4061 = vtanh.f32 %v2428_v26  ;;  %v2650_v33 = vadd.f32 %v2649_v18, %v2648_v40  ;;  %v2605_v48 = vadd.f32 %v2604_v58, %v2603_v4 }
 0x6a6   :  { %v2618_v54 = vsel %vm580_vm1, %v2552_v45, 0.0  ;;  %v2430_v31 = vmul.f32 0.5, %v2406_v57  ;;  %v2719_v63 = vadd.f32 %v2686_v36, %v2589_v10  ;;  %v2519_v52 = vmul.f32 %v2495_v8, %v5858_v35  ;;  %v2688_v45 = vpop.permute.xlu1 %2687 }
 0x6a7   :  { %v2619_v37 = vadd.f32 %v2618_v54, %v2617_v51  ;;  %4063 = vtanh.f32 %v2435_v14  ;;  %v5366_v7 = vrot.slane %v5326_v42, %v5859_v32  ;;  %v2659_v61 = vadd.f32 %v2658_v39, %v2657_v29 }
 0x6a8   :  { %v2597_v55 = vrot.slane %v2596_v28, 1  ;;  %4065 = vtanh.f32 %v2436_v6  ;;  %v2729_v26 = vmax.f32 %v2717_v2, 0.0  ;;  %v2748_v40 = vmul.f32 %v5335_v44, %v2730_v38 }
 0x6a9   :  { %v4058_v11 = vpop.eup %4057  ;;  %v2620_v4 = vrot.slane %v2619_v37, 4  ;;  %4067 = vtanh.f32 %v2429_v20  ;;  %v2651_v12 = vrot.slane %v2650_v33, 1  ;;  %v2606_v57 = vrot.slane %v2605_v48, 1 }
 0x6aa   :  { %v2472_v21 = vadd.f32 1.0, %v4058_v11  ;;  %v2731_v46 = vmax.f32 %v2719_v63, 0.0  ;;  %v2549_v14 = vmul.f32 %v5278_v25, %v2519_v52  ;;  %4069 = vtanh.f32 %v2430_v31 }
 0x6ab   :  { %v2621_v50 = vadd.f32 %v2620_v4, %v2619_v37  ;;  %v2598_v62 = vadd.f32 %v2597_v55, %v2596_v28  ;;  %v2747_v29 = vmul.f32 %v5335_v44, %v2729_v26  ;;  %v2660_v6 = vrot.slane %v2659_v61, 1 }
 0x6ac   :  { %v2496_v42 = vmul.f32 0.5, %v2472_v21  ;;  %v4060_v3 = vpop.eup %4059  ;;  %v2764_v18 = vadd.f32 %v5366_v7, %v2748_v40  ;;  %v2607_v53 = vadd.f32 %v2606_v57, %v2605_v48  ;;  %v5373_v8 = vadd.f32 %v2651_v12, %v2650_v33  ;;  %v2690_v33 = vpop.permute.xlu0 %2689 }
 0x6ad   :  { %v2622_v58 = vrot.slane %v2621_v50, 2  ;;  %v2475_v10 = vadd.f32 1.0, %v4060_v3  ;;  %v2749_v39 = vmul.f32 %v5335_v44, %v2731_v46  ;;  %v2608_v28 = vsel %vm50_vm0, %v2549_v14, 0.0 }
 0x6ae   :  { %v2520_v22 = vmul.f32 %v2496_v42, %v5860_v60  ;;  %v2720_v2 = vadd.f32 %v2688_v45, %v2598_v62  ;;  %v2763_v48 = vadd.f32 %v5366_v7, %v2747_v29  ;;  %v2661_v31 = vadd.f32 %v2660_v6, %v2659_v61 }
 0x6af   :  { %v4062_v56 = vpop.eup %4061  ;;  %v2623_v20 = vadd.f32 %v2622_v58, %v2621_v50  ;;  %v2499_v36 = vmul.f32 0.5, %v2475_v10  ;;  %v5380_v63 = vadd.f32 %v2764_v18, %v5093_v15  ;;  %v2721_v55 = vadd.f32 %v2690_v33, %v2607_v53 }
 0x6b0   :  { %v2550_v38 = vmul.f32 %v5282_v59, %v2520_v22  ;;  %v2476_v51 = vadd.f32 1.0, %v4062_v56  ;;  %v2765_v12 = vadd.f32 %v5366_v7, %v2749_v39  ;;  %v2732_v50 = vmax.f32 %v2720_v2, 0.0 }
 0x6b1   :  { %v4064_v54 = vpop.eup %4063  ;;  %v2624_v37 = vrot.slane %v2623_v20, 1  ;;  %v2523_v40 = vmul.f32 %v2499_v36, %v5861_v43  ;;  %v2733_v10 = vmax.f32 %v2721_v55, 0.0  ;;  %v2694_v36 = vpop.permute.xlu0 %2693 }
 0x6b2   :  { %v4066_v52 = vpop.eup %4065  ;;  %v2609_v11 = vsel %vm580_vm1, %v2550_v38, 0.0  ;;  %v2500_v26 = vmul.f32 0.5, %v2476_v51  ;;  %v2483_v21 = vadd.f32 1.0, %v4064_v54  ;;  %v2812_v51 = vrot.slane %v5380_v63, 7 }
 0x6b3   :  { %v4068_v4 = vpop.eup %4067  ;;  %v2610_v57 = vadd.f32 %v2609_v11, %v2608_v28  ;;  %v2484_v46 = vadd.f32 1.0, %v4066_v52  ;;  %v2553_v15 = vmul.f32 %v5278_v25, %v2523_v40  ;;  %v2625_v42 = vadd.f32 %v2624_v37, %v2623_v20 }
 0x6b4   :  { %v2524_v61 = vmul.f32 %v2500_v26, %v5862_v23  ;;  %v2477_v14 = vadd.f32 1.0, %v4068_v4  ;;  %v4070_v62 = vpop.eup %4069  ;;  %v2507_v29 = vmul.f32 0.5, %v2483_v21  ;;  %v2750_v28 = vmul.f32 %v5335_v44, %v2732_v50 }
 0x6b5   :  { %v2611_v3 = vrot.slane %v2610_v57, 4  ;;  %v2508_v6 = vmul.f32 0.5, %v2484_v46  ;;  %v2626_v58 = vsel %vm50_vm0, %v2553_v15, 0.0  ;;  %v2478_v53 = vadd.f32 1.0, %v4070_v62 }
 0x6b6   :  { %v2554_v18 = vmul.f32 %v5282_v59, %v2524_v61  ;;  %v2501_v22 = vmul.f32 0.5, %v2477_v14  ;;  %v2531_v39 = vmul.f32 %v2507_v29, %v5863_v49  ;;  %v2723_v52 = vadd.f32 %v2694_v36, %v2625_v42 }
 0x6b7   :  { %v2612_v56 = vadd.f32 %v2611_v3, %v2610_v57  ;;  %v2532_v45 = vmul.f32 %v2508_v6, %v5864_v34  ;;  %v2502_v20 = vmul.f32 0.5, %v2478_v53  ;;  %v5400_v40 = vadd.f32 %v2765_v12, %v5113_v13 }
 0x6b8   :  { %v2627_v2 = vsel %vm580_vm1, %v2554_v18, 0.0  ;;  %v2525_v38 = vmul.f32 %v2501_v22, %v4408_v9  ;;  %v2561_v37 = vmul.f32 %v5278_v25, %v2531_v39  ;;  %v2751_v46 = vmul.f32 %v5335_v44, %v2733_v10 }
 0x6b9   :  { %v2613_v54 = vrot.slane %v2612_v56, 2  ;;  %v2628_v33 = vadd.f32 %v2627_v2, %v2626_v58  ;;  %v2562_v55 = vmul.f32 %v5282_v59, %v2532_v45  ;;  %v2526_v11 = vmul.f32 %v2502_v20, %v5865_v19 }
 0x6ba   :  { %v2555_v26 = vmul.f32 %v5278_v25, %v2525_v38  ;;  %v2662_v21 = vsel %vm50_vm0, %v2561_v37, 0.0  ;;  %v2766_v50 = vadd.f32 %v5366_v7, %v2750_v28  ;;  %v2726_v13 = vadd.f32 %v5347_v47, %v5373_v8 }
 0x6bb   :  { %v2614_v4 = vadd.f32 %v2613_v54, %v2612_v56  ;;  %v2629_v57 = vrot.slane %v2628_v33, 4  ;;  %v2663_v61 = vsel %vm580_vm1, %v2562_v55, 0.0  ;;  %v2556_v15 = vmul.f32 %v5282_v59, %v2526_v11  ;;  %v2692_v56 = vpop.permute.xlu1 %2691  ;;  %v2696_v11 = vpop.permute.xlu0 %2695 }
 0x6bc   :  { %v2664_v42 = vadd.f32 %v2663_v61, %v2662_v21  ;;  %v2635_v25 = vsel %vm50_vm0, %v2555_v26, 0.0  ;;  %v5411_v12 = vadd.f32 %v2763_v48, %v5124_v24  ;;  %v2735_v3 = vmax.f32 %v2723_v52, 0.0 }
 0x6bd   :  { %v2615_v14 = vrot.slane %v2614_v4, 1  ;;  %v2630_v62 = vadd.f32 %v2629_v57, %v2628_v33  ;;  %v2636_v29 = vsel %vm580_vm1, %v2556_v15, 0.0  ;;  %v2727_v6 = vadd.f32 %v5355_v1, %v2661_v31 }
 0x6be   :  { %v2665_v53 = vrot.slane %v2664_v42, 4  ;;  %v2813_v59 = vsel %vm817_vm2, %v2812_v51, %v5411_v12  ;;  %v2814_v22 = vrot.slane %v5400_v40, 6  ;;  %v2767_v10 = vadd.f32 %v5366_v7, %v2751_v46 }
 0x6bf   :  { %v2616_v18 = vadd.f32 %v2615_v14, %v2614_v4  ;;  %v2631_v58 = vrot.slane %v2630_v62, 2  ;;  %v2637_v47 = vadd.f32 %v2636_v29, %v2635_v25  ;;  %v5420_v24 = vadd.f32 %v2766_v50, %v5133_v30 }
 0x6c0   :  { %v2666_v39 = vadd.f32 %v2665_v53, %v2664_v42  ;;  %v2753_v1 = vmul.f32 %v5335_v44, %v2735_v3  ;;  %v2738_v45 = vmax.f32 %v2726_v13, 0.0  ;;  %v2739_v38 = vmax.f32 %v2727_v6, 0.0  ;;  %v2704_v13 = vpop.permute.xlu1 %2703 }
 0x6c1   :  { %v2722_v8 = vadd.f32 %v2692_v56, %v2616_v18  ;;  %v2632_v48 = vadd.f32 %v2631_v58, %v2630_v62  ;;  %v2638_v31 = vrot.slane %v2637_v47, 4  ;;  %v2815_v51 = vsel %vm820_vm3, %v2814_v22, %v2813_v59  ;;  %v2698_v56 = vpop.permute.xlu0 %2697 }
 0x6c2   :  { %v2667_v20 = vrot.slane %v2666_v39, 2  ;;  %v5425_v36 = vadd.f32 %v2767_v10, %v5138_v27  ;;  %v2816_v30 = vrot.slane %v5420_v24, 5  ;;  %v2769_v55 = vadd.f32 %v5366_v7, %v2753_v1  ;;  %v5910_v1 = vld [vmem:[#allocation22_spill] sm:$0xff] }
 0x6c3   :  { %v2734_v28 = vmax.f32 %v2722_v8, 0.0  ;;  %v2633_v2 = vrot.slane %v2632_v48, 1  ;;  %v2639_v54 = vadd.f32 %v2638_v31, %v2637_v47  ;;  %v2756_v27 = vmul.f32 %v5335_v44, %v2738_v45 }
 0x6c4   :  { %v2668_v52 = vadd.f32 %v2667_v20, %v2666_v39  ;;  %v2817_v46 = vsel %vm823_vm4, %v2816_v30, %v2815_v51  ;;  %v2818_v50 = vrot.slane %v5425_v36, 4  ;;  %v2757_v15 = vmul.f32 %v5335_v44, %v2739_v38 }
 0x6c5   :  { %v2752_v33 = vmul.f32 %v5335_v44, %v2734_v28  ;;  %v2634_v37 = vadd.f32 %v2633_v2, %v2632_v48  ;;  %v2640_v26 = vrot.slane %v2639_v54, 2  ;;  %v5439_v25 = vadd.f32 %v2769_v55, %v5152_v41  ;;  %v5911_v2 = vld [vmem:[#allocation29_spill] sm:$0xff] }
 0x6c6   :  { %v2669_v21 = vrot.slane %v2668_v52, 1  ;;  %v2819_v29 = vsel %vm826_vm5, %v2818_v50, %v2817_v46  ;;  %v2772_v53 = vadd.f32 %v5366_v7, %v2756_v27 }
 0x6c7   :  { %v2768_v4 = vadd.f32 %v5366_v7, %v2752_v33  ;;  %v2724_v57 = vadd.f32 %v2696_v11, %v2634_v37  ;;  %v2641_v61 = vadd.f32 %v2640_v26, %v2639_v54  ;;  %v2822_v47 = vrot.slane %v5439_v25, 2  ;;  %v5912_v33 = vld [vmem:[#allocation28_spill] sm:$0xff]  ;;  %v5913_v11 = vld [vmem:[#allocation27_spill] sm:$0xff] }
 0x6c8   :  { %v2670_v42 = vadd.f32 %v2669_v21, %v2668_v52  ;;  %v5454_v31 = vadd.f32 %v2772_v53, %v5910_v1 }
 0x6c9   :  { %v5436_v14 = vadd.f32 %v2768_v4, %v5149_v0  ;;  %v2736_v62 = vmax.f32 %v2724_v57, 0.0  ;;  %v2642_v3 = vrot.slane %v2641_v61, 1  ;;  %v2773_v0 = vadd.f32 %v5366_v7, %v2757_v15 }
 0x6ca   :  { %v2728_v58 = vadd.f32 %v2704_v13, %v2670_v42  ;;  %v2826_v30 = vrot.slane %v5454_v31, 7 }
 0x6cb   :  { %v2820_v6 = vrot.slane %v5436_v14, 3  ;;  %v2754_v18 = vmul.f32 %v5335_v44, %v2736_v62  ;;  %v2643_v59 = vadd.f32 %v2642_v3, %v2641_v61  ;;  %v5458_v20 = vadd.f32 %v2773_v0, %v5911_v2 }
 0x6cc   :  { %v2740_v10 = vmax.f32 %v2728_v58, 0.0 }
 0x6cd   :  { %v2770_v22 = vadd.f32 %v5366_v7, %v2754_v18  ;;  %v2821_v41 = vsel %vm829_vm6, %v2820_v6, %v2819_v29  ;;  %v2725_v8 = vadd.f32 %v2698_v56, %v2643_v59  ;;  %v2828_v55 = vrot.slane %v5458_v20, 6  ;;  %v5914_v59 = vld [vmem:[#allocation16_spill] sm:$0xff] }
 0x6ce   :  { %v2758_v39 = vmul.f32 %v5335_v44, %v2740_v10  ;;  %v2823_v28 = vsel %vm832_vm7, %v2822_v47, %v2821_v41  ;;  %v3495_v10 = vld [vmem:[%s5768_s5 + $0x8] sm:$0xff]  ;;  %v3496_v56 = vld [vmem:[%s5768_s5 + $0x10] sm:$0xff]  ;;  %v4147_v41 = vmov 0.0|0.0  }
 0x6cf   :  { %v5450_v48 = vadd.f32 %v2770_v22, %v5163_v5  ;;  %v2737_v45 = vmax.f32 %v2725_v8, 0.0  ;;  %v3494_v22 = vld [vmem:[%s5768_s5] sm:$0xff]  ;;  %3862 = vmatprep.subr.bf16.mxu1 %v4147_v41  ;;  %v3497_v8 = vld [vmem:[%s5768_s5 + $0x18] sm:$0xff]  ;;  %3868 = vmatprep.subr.bf16.mxu0 %v4147_v41 }
 0x6d0   :  { %v2774_v38 = vadd.f32 %v5366_v7, %v2758_v39  ;;  %v3863_v47 = vpack.c.bf16 %v3495_v10, %v3494_v22  ;;  %v4149_v39 = vmov 0.0  }
 0x6d1   :  { %v2824_v51 = vrot.slane %v5450_v48, 1  ;;  %v2755_v54 = vmul.f32 %v5335_v44, %v2737_v45  ;;  %3812 = vmatprep.mubr.msk.f32.mxu1 %vm4148_vm9, %v4149_v39  ;;  %v3866_v45 = vpack.c.bf16 %v3497_v8, %v3496_v56 }
 0x6d2   :  { %v5466_v37 = vadd.f32 %v2774_v38, %v5912_v33  ;;  %3864 = vmatpush3.bf16.msra.mxu1 %v3863_v47 }
 0x6d3   :  { %v2825_v5 = vsel %vm835_vm8, %v2824_v51, %v2823_v28  ;;  %v2771_v52 = vadd.f32 %v5366_v7, %v2755_v54  ;;  %v3705_v7 = vld [vmem:[%s5766_s3 + $0x4] ss:$0 sm:$0xff]  ;;  %3865 = vmatprep.subr.bf16.mxu1 %v4147_v41 }
 0x6d4   :  { %3801 = vmatprep.mubr.msk.f32.mxu0 %vm50_vm0, %v2825_v5  ;;  %v2830_v4 = vrot.slane %v5466_v37, 5 }
 0x6d5   :  { %v5472_v26 = vadd.f32 %v2771_v52, %v5913_v11 }
 0x6d6   :  { %3867 = vmatpush3.bf16.msra.mxu1 %v3866_v45 }
 0x6d7   :  { %v2827_v44 = vsel %vm817_vm2, %v2826_v30, %v5472_v26 }
 0x6d8   :  { %v2829_v57 = vsel %vm820_vm3, %v2828_v55, %v2827_v44  ;;  %v5915_v55 = vld [vmem:[#allocation7_spill] sm:$0xff] }
 0x6d9   :  { %v2831_v21 = vsel %vm823_vm4, %v2830_v4, %v2829_v57 }
 0x6da   :  { %3802 = vmatmul.mubr.msk.f32.vlgmr.msra.gmra.mrb[4].mxu0 %vm50_vm0, %v2831_v21 }
 0x6db   :  { %3819 = vmatprep.mubr.msk.f32.mxu0 %vm4148_vm9, %v4149_v39 }
 0x7ad   :  { %v3803_v46 = vpop.f32.mrb[4].mxu0 }
 0x7ae   :  { %v2908_v27 = vadd.f32 %v3803_v46, %v3705_v7  ;;  %v2902_v50 = vpop.f32.mrb[5].mxu0 }
 0x7af   :  { %v2903_v61 = vadd.f32 %v3705_v7, %v2902_v50 }
 0x7b0   :  { %3048 = vrot.lane.b32.xlu1 %v2908_v27, %s4144_s28  ;;  %v3341_v42 = vrot.slane %v2908_v27, 1  ;;  %v3342_v3 = vrot.slane %v2908_v27, 2  ;;  %v3343_v53 = vrot.slane %v2908_v27, 3  ;;  %v2968_v28 = vrot.slane %v2908_v27, %v5914_v59 }
 0x7b1   :  { %3046 = vrot.lane.b32.xlu0 %v2903_v61, %s4144_s28  ;;  %v3335_v15 = vrot.slane %v2903_v61, 2  ;;  %v3336_v62 = vrot.slane %v2903_v61, 3  ;;  %v3338_v13 = vrot.slane %v2903_v61, 5  ;;  %v3339_v29 = vrot.slane %v2903_v61, 6 }
 0x7b2   :  { %v3334_v6 = vrot.slane %v2903_v61, 1  ;;  %v3340_v18 = vrot.slane %v2903_v61, 7  ;;  %v3337_v58 = vrot.slane %v2903_v61, 4  ;;  %v2920_v0 = vrot.slane %v2903_v61, %v5914_v59 }
 0x7b3   :  { %v2913_v38 = vcombine.high %v2903_v61, %v2903_v61  ;;  %v2969_v54 = vcombine.high %v2968_v28, %v2968_v28 }
 0x7b4   :  { %3198 = vrot.lane.b32.xlu1 %v2908_v27, %s4143_s27  ;;  %v2928_v1 = vcombine.high %v2920_v0, %v2920_v0  ;;  %v2936_v2 = vrot.slane %v2920_v0, %v5914_v59 }
 0x7b5   :  { %3196 = vrot.lane.b32.xlu0 %v2903_v61, %s4143_s27  ;;  %v2927_v30 = vrot.slane %v2913_v38, %v5914_v59  ;;  %v5521_v52 = vrot.slane %v2969_v54, %v5914_v59 }
 0x7b6   :  { %v5515_v51 = vrot.slane %v2928_v1, %v5914_v59  ;;  %v2958_v5 = vcombine.high %v2936_v2, %v2936_v2  ;;  %v2989_v4 = vrot.slane %v2936_v2, %v5915_v55 }
 0x7b7   :  { %v2929_v44 = vcombine.high %v2927_v30, %v2927_v30  ;;  %v3025_v50 = vrot.slane %v5521_v52, %v5915_v55  ;;  %v5549_v41 = vrot.slane %v2927_v30, %v5914_v59 }
 0x7b8   :  { %3348 = vrot.lane.b32.xlu1 %v3335_v15, %s4145_s1  ;;  %v2960_v33 = vcombine.high %v5515_v51, %v5515_v51  ;;  %v2997_v11 = vrot.slane %v2958_v5, %v5915_v55 }
 0x7b9   :  { %3344 = vrot.lane.b32.xlu0 %v2903_v61, %s4145_s1  ;;  %v5535_v61 = vrot.slane %v2968_v28, %v5914_v59  ;;  %v2959_v2 = vcombine.high %v5549_v41, %v5549_v41 }
 0x7ba   :  { %v3001_v21 = vrot.slane %v2960_v33, %v5915_v55 }
 0x7bb   :  { %v2984_v56 = vcombine.high %v5535_v61, %v5535_v61  ;;  %v3013_v30 = vrot.slane %v2959_v2, %v5915_v55 }
 0x7bc   :  { %3350 = vrot.lane.b32.xlu1 %v3336_v62, %s4145_s1 }
 0x7bd   :  { %3362 = vrot.lane.b32.xlu0 %v3341_v42, %s4145_s1  ;;  %v3029_v28 = vrot.slane %v2984_v56, %v5915_v55  ;;  %v5917_v56 = vld [vmem:[#allocation10_spill] sm:$0xff] }
 0x7c0   :  { %3354 = vrot.lane.b32.xlu1 %v3338_v13, %s4145_s1 }
 0x7c1   :  { %3364 = vrot.lane.b32.xlu0 %v3342_v3, %s4145_s1 }
 0x7c4   :  { %3356 = vrot.lane.b32.xlu1 %v3339_v29, %s4145_s1  ;;  %v5542_v29 = vrot.slane %v2929_v44, %v5914_v59 }
 0x7c5   :  { %3346 = vrot.lane.b32.xlu0 %v3334_v6, %s4145_s1 }
 0x7c6   :  { %v3009_v47 = vrot.slane %v5542_v29, %v5915_v55 }
 0x7c8   :  { %3358 = vrot.lane.b32.xlu1 %v3340_v18, %s4145_s1 }
 0x7c9   :  { %3352 = vrot.lane.b32.xlu0 %v3337_v58, %s4145_s1 }
 0x7cc   :  { %3366 = vrot.lane.b32.xlu1 %v3343_v53, %s4145_s1 }
 0x7cd   :  { %3360 = vrot.lane.b32.xlu0 %v2908_v27, %s4145_s1 }
 0x822   :  { %v5525_v57 = vpop.permute.xlu1 %3048 }
 0x823   :  { %v5528_v7 = vpop.permute.xlu0 %3046  ;;  %v3057_v46 = vadd.f32 %v5525_v57, %v2997_v11  ;;  %v3053_v27 = vadd.f32 %v5525_v57, %v2989_v4  ;;  %v3059_v13 = vadd.f32 %v5525_v57, %v3001_v21  ;;  %v3071_v22 = vadd.f32 %v5525_v57, %v3025_v50 }
 0x824   :  { %v3056_v15 = vadd.f32 %v5528_v7, %v2997_v11  ;;  %v3052_v62 = vadd.f32 %v5528_v7, %v2989_v4  ;;  %v3058_v42 = vadd.f32 %v5528_v7, %v3001_v21  ;;  %v3070_v53 = vadd.f32 %v5528_v7, %v3025_v50 }
 0x825   :  { %v3081_v3 = vmul.f32 0.5, %v3057_v46  ;;  %v3077_v58 = vmul.f32 0.5, %v3053_v27  ;;  %v3083_v10 = vmul.f32 0.5, %v3059_v13  ;;  %v3095_v39 = vmul.f32 0.5, %v3071_v22 }
 0x826   :  { %v3080_v6 = vmul.f32 0.5, %v3056_v15  ;;  %v3076_v18 = vmul.f32 0.5, %v3052_v62  ;;  %v3082_v0 = vmul.f32 0.5, %v3058_v42  ;;  %v3094_v8 = vmul.f32 0.5, %v3070_v53  ;;  %v5916_v53 = vld [vmem:[#allocation11_spill] sm:$0xff] }
 0x827   :  { %4071 = vtanh.f32 %v3081_v3  ;;  %v3062_v1 = vadd.f32 %v5528_v7, %v3009_v47  ;;  %v3063_v45 = vadd.f32 %v5525_v57, %v3009_v47  ;;  %v3072_v59 = vadd.f32 %v5528_v7, %v3029_v28  ;;  %v5567_v2 = vpop.permute.xlu0 %3196 }
 0x828   :  { %4073 = vtanh.f32 %v3080_v6  ;;  %v3073_v5 = vadd.f32 %v5525_v57, %v3029_v28  ;;  %v3064_v21 = vadd.f32 %v5528_v7, %v3013_v30  ;;  %v3065_v50 = vadd.f32 %v5525_v57, %v3013_v30  ;;  %v5565_v28 = vpop.permute.xlu1 %3198  ;;  %v5918_v30 = vld [vmem:[#allocation13_spill] sm:$0xff] }
 0x829   :  { %4075 = vtanh.f32 %v3076_v18  ;;  %v3086_v38 = vmul.f32 0.5, %v3062_v1  ;;  %v3087_v54 = vmul.f32 0.5, %v3063_v45  ;;  %v3096_v44 = vmul.f32 0.5, %v3072_v59 }
 0x82a   :  { %4077 = vtanh.f32 %v3077_v58  ;;  %v3097_v13 = vmul.f32 0.5, %v3073_v5  ;;  %v3089_v59 = vmul.f32 0.5, %v3065_v50 }
 0x82b   :  { %4079 = vtanh.f32 %v3082_v0 }
 0x82c   :  { %4081 = vtanh.f32 %v3083_v10  ;;  %v3088_v10 = vmul.f32 0.5, %v3064_v21 }
 0x82d   :  { %4083 = vtanh.f32 %v3094_v8 }
 0x82e   :  { %4085 = vtanh.f32 %v3095_v39 }
 0x82f   :  { %4087 = vtanh.f32 %v3086_v38 }
 0x830   :  { %4089 = vtanh.f32 %v3087_v54 }
 0x831   :  { %v4072_v33 = vpop.eup %4071  ;;  %4091 = vtanh.f32 %v3096_v44  ;;  %v2993_v44 = vrot.slane %v5515_v51, %v5915_v55 }
 0x832   :  { %v4074_v11 = vpop.eup %4073  ;;  %v3129_v4 = vadd.f32 1.0, %v4072_v33  ;;  %4093 = vtanh.f32 %v3097_v13 }
 0x833   :  { %v4076_v46 = vpop.eup %4075  ;;  %v3128_v27 = vadd.f32 1.0, %v4074_v11  ;;  %v5919_v11 = vld [vmem:[#allocation12_spill] sm:$0xff]  ;;  %4095 = vtanh.f32 %v3088_v10  ;;  %v3054_v50 = vadd.f32 %v5528_v7, %v2993_v44 }
 0x834   :  { %v4078_v15 = vpop.eup %4077  ;;  %v3153_v62 = vmul.f32 0.5, %v3129_v4  ;;  %v3124_v42 = vadd.f32 1.0, %v4076_v46  ;;  %4097 = vtanh.f32 %v3089_v59 }
 0x835   :  { %v4080_v3 = vpop.eup %4079  ;;  %v3152_v6 = vmul.f32 0.5, %v3128_v27  ;;  %v3125_v18 = vadd.f32 1.0, %v4078_v15 }
 0x836   :  { %v4082_v58 = vpop.eup %4081  ;;  %v3177_v0 = vmul.f32 %v3153_v62, %v5916_v53  ;;  %v3148_v22 = vmul.f32 0.5, %v3124_v42  ;;  %v3130_v39 = vadd.f32 1.0, %v4080_v3  ;;  %v2961_v62 = vcombine.high %v5542_v29, %v5542_v29  ;;  %v5920_v53 = vld [vmem:[#allocation15_spill] sm:$0xff] }
 0x837   :  { %v3176_v47 = vmul.f32 %v3152_v6, %v5917_v56  ;;  %v3149_v8 = vmul.f32 0.5, %v3125_v18  ;;  %v3131_v1 = vadd.f32 1.0, %v4082_v58  ;;  %v4084_v45 = vpop.eup %4083  ;;  %v3055_v58 = vadd.f32 %v5525_v57, %v2993_v44  ;;  %v5922_v44 = vld [vmem:[#allocation23_spill] sm:$0xff] }
 0x838   :  { %v4086_v38 = vpop.eup %4085  ;;  %v3207_v5 = vmul.f32 %v5565_v28, %v3177_v0  ;;  %v3172_v33 = vmul.f32 %v3148_v22, %v5918_v30  ;;  %v3154_v21 = vmul.f32 0.5, %v3130_v39  ;;  %v3142_v27 = vadd.f32 1.0, %v4084_v45  ;;  %v5921_v22 = vld [vmem:[#allocation14_spill] sm:$0xff] }
 0x839   :  { %v3206_v54 = vmul.f32 %v5567_v2, %v3176_v47  ;;  %v3173_v4 = vmul.f32 %v3149_v8, %v5919_v11  ;;  %v3155_v46 = vmul.f32 0.5, %v3131_v1  ;;  %v3143_v15 = vadd.f32 1.0, %v4086_v38  ;;  %v4088_v42 = vpop.eup %4087 }
 0x83a   :  { %v3245_v3 = vsel %vm580_vm1, %v3207_v5, 0.0  ;;  %v3202_v6 = vmul.f32 %v5567_v2, %v3172_v33  ;;  %v4090_v51 = vpop.eup %4089  ;;  %v3178_v0 = vmul.f32 %v3154_v21, %v5920_v53  ;;  %v3166_v56 = vmul.f32 0.5, %v3142_v27 }
 0x83b   :  { %v3244_v13 = vsel %vm50_vm0, %v3206_v54, 0.0  ;;  %v3203_v18 = vmul.f32 %v5565_v28, %v3173_v4  ;;  %v3179_v10 = vmul.f32 %v3155_v46, %v5921_v22  ;;  %v4092_v47 = vpop.eup %4091  ;;  %v3167_v29 = vmul.f32 0.5, %v3143_v15 }
 0x83c   :  { %v3246_v8 = vadd.f32 %v3245_v3, %v3244_v13  ;;  %v3134_v39 = vadd.f32 1.0, %v4088_v42  ;;  %v3017_v1 = vrot.slane %v2961_v62, %v5915_v55  ;;  %v3226_v45 = vsel %vm50_vm0, %v3202_v6, 0.0  ;;  %v4094_v5 = vpop.eup %4093  ;;  %v5923_v62 = vld [vmem:[#allocation21_spill] sm:$0xff] }
 0x83d   :  { %v3227_v59 = vsel %vm580_vm1, %v3203_v18, 0.0  ;;  %v3135_v38 = vadd.f32 1.0, %v4090_v51  ;;  %v3078_v54 = vmul.f32 0.5, %v3054_v50  ;;  %v3079_v30 = vmul.f32 0.5, %v3055_v58  ;;  %v4096_v46 = vpop.eup %4095 }
 0x83e   :  { %v3066_v33 = vadd.f32 %v5528_v7, %v3017_v1  ;;  %v3208_v11 = vmul.f32 %v5567_v2, %v3178_v0  ;;  %v3209_v4 = vmul.f32 %v5565_v28, %v3179_v10  ;;  %v3190_v21 = vmul.f32 %v3166_v56, %v5922_v44  ;;  %v4098_v50 = vpop.eup %4097 }
 0x83f   :  { %v3247_v27 = vrot.slane %v3246_v8, 4  ;;  %v3228_v15 = vadd.f32 %v3227_v59, %v3226_v45  ;;  %v3191_v42 = vmul.f32 %v3167_v29, %v5923_v62  ;;  %v3158_v13 = vmul.f32 0.5, %v3134_v39 }
 0x840   :  { %v3159_v3 = vmul.f32 0.5, %v3135_v38  ;;  %v3144_v6 = vadd.f32 1.0, %v4092_v47  ;;  %4099 = vtanh.f32 %v3078_v54  ;;  %v3145_v18 = vadd.f32 1.0, %v4094_v5 }
 0x841   :  { %4101 = vtanh.f32 %v3079_v30  ;;  %v3090_v51 = vmul.f32 0.5, %v3066_v33  ;;  %v3253_v58 = vsel %vm50_vm0, %v3208_v11, 0.0  ;;  %v3254_v53 = vsel %vm580_vm1, %v3209_v4, 0.0 }
 0x842   :  { %v3220_v0 = vmul.f32 %v5567_v2, %v3190_v21  ;;  %v3136_v22 = vadd.f32 1.0, %v4096_v46  ;;  %v3248_v10 = vadd.f32 %v3247_v27, %v3246_v8  ;;  %v3229_v56 = vrot.slane %v3228_v15, 4  ;;  %v5924_v46 = vld [vmem:[#allocation26_spill] sm:$0xff] }
 0x843   :  { %v3221_v45 = vmul.f32 %v5565_v28, %v3191_v42  ;;  %v3182_v29 = vmul.f32 %v3158_v13, %v5858_v35  ;;  %v3183_v47 = vmul.f32 %v3159_v3, %v5860_v60  ;;  %v3168_v39 = vmul.f32 0.5, %v3144_v6 }
 0x844   :  { %v3137_v59 = vadd.f32 1.0, %v4098_v50  ;;  %v2985_v38 = vcombine.high %v5521_v52, %v5521_v52  ;;  %v3169_v54 = vmul.f32 0.5, %v3145_v18  ;;  %v3067_v5 = vadd.f32 %v5525_v57, %v3017_v1 }
 0x845   :  { %4103 = vtanh.f32 %v3090_v51  ;;  %v3005_v30 = vrot.slane %v5549_v41, %v5915_v55  ;;  %v3255_v8 = vadd.f32 %v3254_v53, %v3253_v58  ;;  %v3307_v33 = vsel %vm50_vm0, %v3220_v0, 0.0  ;;  %v5925_v41 = vld [vmem:[#allocation24_spill] sm:$0xff] }
 0x846   :  { %v3160_v11 = vmul.f32 0.5, %v3136_v22  ;;  %v3161_v4 = vmul.f32 0.5, %v3137_v59  ;;  %v3249_v35 = vrot.slane %v3248_v10, 2  ;;  %v3230_v44 = vadd.f32 %v3229_v56, %v3228_v15 }
 0x847   :  { %v3308_v60 = vsel %vm580_vm1, %v3221_v45, 0.0  ;;  %v3212_v21 = vmul.f32 %v5567_v2, %v3182_v29  ;;  %v3213_v52 = vmul.f32 %v5565_v28, %v3183_v47  ;;  %v3192_v27 = vmul.f32 %v3168_v39, %v5924_v46 }
 0x848   :  { %v3184_v1 = vmul.f32 %v3160_v11, %v4339_v17  ;;  %v3185_v62 = vmul.f32 %v3161_v4, %v4337_v16  ;;  %v3193_v42 = vmul.f32 %v3169_v54, %v5925_v41  ;;  %v3060_v13 = vadd.f32 %v5528_v7, %v3005_v30 }
 0x849   :  { %v3061_v3 = vadd.f32 %v5525_v57, %v3005_v30  ;;  %v3256_v15 = vrot.slane %v3255_v8, 4  ;;  %v3021_v51 = vrot.slane %v5535_v61, %v5915_v55  ;;  %v3250_v53 = vadd.f32 %v3249_v35, %v3248_v10 }
 0x84a   :  { %v4100_v6 = vpop.eup %4099  ;;  %v3214_v50 = vmul.f32 %v5567_v2, %v3184_v1  ;;  %v3215_v18 = vmul.f32 %v5565_v28, %v3185_v62  ;;  %v3309_v17 = vadd.f32 %v3308_v60, %v3307_v33  ;;  %v3091_v0 = vmul.f32 0.5, %v3067_v5 }
 0x84b   :  { %v4102_v58 = vpop.eup %4101  ;;  %v3033_v16 = vrot.slane %v2985_v38, %v5915_v55  ;;  %v3231_v22 = vrot.slane %v3230_v44, 2  ;;  %v3271_v56 = vsel %vm50_vm0, %v3212_v21, 0.0  ;;  %v3272_v45 = vsel %vm580_vm1, %v3213_v52, 0.0 }
 0x84c   :  { %v3222_v29 = vmul.f32 %v5567_v2, %v3192_v27  ;;  %v3223_v47 = vmul.f32 %v5565_v28, %v3193_v42  ;;  %v3084_v39 = vmul.f32 0.5, %v3060_v13  ;;  %v3085_v59 = vmul.f32 0.5, %v3061_v3 }
 0x84d   :  { %v3074_v54 = vadd.f32 %v5528_v7, %v3033_v16  ;;  %v3257_v61 = vadd.f32 %v3256_v15, %v3255_v8  ;;  %v3280_v10 = vsel %vm50_vm0, %v3214_v50, 0.0  ;;  %v3281_v5 = vsel %vm580_vm1, %v3215_v18, 0.0  ;;  %v5926_v15 = vld [vmem:[#allocation8_spill] sm:$0xff] }
 0x84e   :  { %v3126_v30 = vadd.f32 1.0, %v4100_v6  ;;  %v3310_v33 = vrot.slane %v3309_v17, 4  ;;  %v3273_v11 = vadd.f32 %v3272_v45, %v3271_v56  ;;  %v3075_v4 = vadd.f32 %v5525_v57, %v3033_v16 }
 0x84f   :  { %v4104_v38 = vpop.eup %4103  ;;  %v3068_v35 = vadd.f32 %v5528_v7, %v3021_v51  ;;  %v3251_v60 = vrot.slane %v3250_v53, 1  ;;  %v3232_v21 = vadd.f32 %v3231_v22, %v3230_v44  ;;  %v3316_v52 = vsel %vm50_vm0, %v3222_v29, 0.0  ;;  %v3345_v44 = vpop.permute.xlu0 %3344  ;;  %v5927_v22 = vld [vmem:[#allocation9_spill] sm:$0xff] }
 0x850   :  { %v3127_v46 = vadd.f32 1.0, %v4102_v58  ;;  %v3317_v27 = vsel %vm580_vm1, %v3223_v47, 0.0  ;;  %v3282_v8 = vadd.f32 %v3281_v5, %v3280_v10  ;;  %v3150_v1 = vmul.f32 0.5, %v3126_v30 }
 0x851   :  { %4105 = vtanh.f32 %v3091_v0  ;;  %v3258_v62 = vrot.slane %v3257_v61, 2  ;;  %v3098_v42 = vmul.f32 0.5, %v3074_v54  ;;  %v3069_v13 = vadd.f32 %v5525_v57, %v3021_v51 }
 0x852   :  { %v3151_v41 = vmul.f32 0.5, %v3127_v46  ;;  %v3311_v3 = vadd.f32 %v3310_v33, %v3309_v17  ;;  %v3274_v6 = vrot.slane %v3273_v11, 4  ;;  %v3174_v50 = vmul.f32 %v3150_v1, %v5926_v15  ;;  %v3349_v17 = vpop.permute.xlu1 %3348 }
 0x853   :  { %v3138_v7 = vadd.f32 1.0, %v4104_v38  ;;  %v3252_v18 = vadd.f32 %v3251_v60, %v3250_v53  ;;  %v3318_v16 = vadd.f32 %v3317_v27, %v3316_v52  ;;  %v3099_v56 = vmul.f32 0.5, %v3075_v4  ;;  %v5640_v46 = vpop.permute.xlu0 %3362 }
 0x854   :  { %v3175_v58 = vmul.f32 %v3151_v41, %v5927_v22  ;;  %v3233_v45 = vrot.slane %v3232_v21, 1  ;;  %v3283_v29 = vrot.slane %v3282_v8, 4  ;;  %v3204_v0 = vmul.f32 %v5567_v2, %v3174_v50 }
 0x855   :  { %4107 = vtanh.f32 %v3084_v39  ;;  %v3259_v47 = vadd.f32 %v3258_v62, %v3257_v61  ;;  %v3162_v57 = vmul.f32 0.5, %v3138_v7  ;;  %v3092_v51 = vmul.f32 0.5, %v3068_v35  ;;  %v3708_v39 = vld [vmem:[%s5767_s4 + $0x8] sm:$0x3] }
 0x856   :  { %v3205_v54 = vmul.f32 %v5565_v28, %v3175_v58  ;;  %v3312_v10 = vrot.slane %v3311_v3, 2  ;;  %v3275_v5 = vadd.f32 %v3274_v6, %v3273_v11  ;;  %v3235_v53 = vsel %vm50_vm0, %v3204_v0, 0.0 }
 0x857   :  { %4109 = vtanh.f32 %v3085_v59  ;;  %v3382_v30 = vadd.f32 %v3349_v17, %v3252_v18  ;;  %v3319_v38 = vrot.slane %v3318_v16, 4  ;;  %v3093_v4 = vmul.f32 0.5, %v3069_v13 }
 0x858   :  { %v3236_v33 = vsel %vm580_vm1, %v3205_v54, 0.0  ;;  %v3234_v61 = vadd.f32 %v3233_v45, %v3232_v21  ;;  %v3284_v60 = vadd.f32 %v3283_v29, %v3282_v8  ;;  %4111 = vtanh.f32 %v3098_v42 }
 0x859   :  { %v3237_v52 = vadd.f32 %v3236_v33, %v3235_v53  ;;  %v3260_v35 = vrot.slane %v3259_v47, 1  ;;  %v3186_v11 = vmul.f32 %v3162_v57, %v5861_v43  ;;  %4113 = vtanh.f32 %v3099_v56 }
 0x85a   :  { %v3313_v27 = vadd.f32 %v3312_v10, %v3311_v3  ;;  %v3276_v1 = vrot.slane %v3275_v5, 2  ;;  %4115 = vtanh.f32 %v3092_v51  ;;  %v5644_v41 = vrot.slane %v3708_v39, %v5915_v55  ;;  %v3351_v55 = vpop.permute.xlu1 %3350 }
 0x85b   :  { %v4106_v59 = vpop.eup %4105  ;;  %v3238_v62 = vrot.slane %v3237_v52, 4  ;;  %v3394_v13 = vmax.f32 %v3382_v30, 0.0  ;;  %v3320_v6 = vadd.f32 %v3319_v38, %v3318_v16  ;;  %v5646_v8 = vadd.f32 %v3345_v44, %v3234_v61  ;;  %v5652_v16 = vpop.permute.xlu0 %3364 }
 0x85c   :  { %v3139_v21 = vadd.f32 1.0, %v4106_v59  ;;  %v3285_v42 = vrot.slane %v3284_v60, 2  ;;  %4117 = vtanh.f32 %v3093_v4  ;;  %v3216_v43 = vmul.f32 %v5567_v2, %v3186_v11 }
 0x85d   :  { %v3239_v15 = vadd.f32 %v3238_v62, %v3237_v52  ;;  %v3261_v18 = vadd.f32 %v3260_v35, %v3259_v47  ;;  %v3314_v3 = vrot.slane %v3313_v27, 1  ;;  %v3277_v22 = vadd.f32 %v3276_v1, %v3275_v5  ;;  %v5928_v35 = vld [vmem:[#allocation18_spill] sm:$0xff] }
 0x85e   :  { %v3163_v50 = vmul.f32 0.5, %v3139_v21  ;;  %v5650_v56 = vrot.slane %v3708_v39, %v5859_v32  ;;  %v3321_v45 = vrot.slane %v3320_v6, 2  ;;  %v5656_v54 = vmul.f32 %v5644_v41, %v3394_v13  ;;  %v3355_v21 = vpop.permute.xlu1 %3354 }
 0x85f   :  { %v4108_v7 = vpop.eup %4107  ;;  %v3240_v58 = vrot.slane %v3239_v15, 2  ;;  %v3392_v57 = vmax.f32 %v5646_v8, 0.0  ;;  %v3286_v47 = vadd.f32 %v3285_v42, %v3284_v60  ;;  %v3289_v32 = vsel %vm50_vm0, %v3216_v43, 0.0 }
 0x860   :  { %v3187_v44 = vmul.f32 %v3163_v50, %v5862_v23  ;;  %v3132_v29 = vadd.f32 1.0, %v4108_v7  ;;  %v5661_v30 = vadd.f32 %v3351_v55, %v3261_v18  ;;  %v3315_v38 = vadd.f32 %v3314_v3, %v3313_v27  ;;  %v5929_v50 = vld [vmem:[#allocation17_spill] sm:$0xff] }
 0x861   :  { %v4110_v0 = vpop.eup %4109  ;;  %v3241_v51 = vadd.f32 %v3240_v58, %v3239_v15  ;;  %v3278_v23 = vrot.slane %v3277_v22, 1  ;;  %v3322_v39 = vadd.f32 %v3321_v45, %v3320_v6  ;;  %v3287_v42 = vrot.slane %v3286_v47, 1  ;;  %v3347_v15 = vpop.permute.xlu0 %3346 }
 0x862   :  { %v3217_v17 = vmul.f32 %v5565_v28, %v3187_v44  ;;  %v3133_v10 = vadd.f32 1.0, %v4110_v0  ;;  %v3156_v5 = vmul.f32 0.5, %v3132_v29  ;;  %v4112_v53 = vpop.eup %4111 }
 0x863   :  { %v3242_v33 = vrot.slane %v3241_v51, 1  ;;  %v4114_v4 = vpop.eup %4113  ;;  %v3146_v62 = vadd.f32 1.0, %v4112_v53 }
 0x864   :  { %v3290_v61 = vsel %vm580_vm1, %v3217_v17, 0.0  ;;  %v3157_v52 = vmul.f32 0.5, %v3133_v10  ;;  %v3180_v60 = vmul.f32 %v3156_v5, %v5928_v35  ;;  %v4116_v11 = vpop.eup %4115  ;;  %v3147_v13 = vadd.f32 1.0, %v4114_v4 }
 0x865   :  { %v3243_v59 = vadd.f32 %v3242_v33, %v3241_v51  ;;  %v3291_v1 = vadd.f32 %v3290_v61, %v3289_v32  ;;  %v3140_v7 = vadd.f32 1.0, %v4116_v11  ;;  %v3170_v58 = vmul.f32 0.5, %v3146_v62  ;;  %v3357_v11 = vpop.permute.xlu1 %3356 }
 0x866   :  { %v3181_v43 = vmul.f32 %v3157_v52, %v5929_v50  ;;  %v3210_v27 = vmul.f32 %v5567_v2, %v3180_v60  ;;  %v4118_v18 = vpop.eup %4117  ;;  %v3171_v55 = vmul.f32 0.5, %v3147_v13  ;;  %v3323_v5 = vrot.slane %v3322_v39, 1 }
 0x867   :  { %v3381_v6 = vadd.f32 %v3347_v15, %v3243_v59  ;;  %v3292_v3 = vrot.slane %v3291_v1, 4  ;;  %v3141_v29 = vadd.f32 1.0, %v4118_v18  ;;  %v3164_v0 = vmul.f32 0.5, %v3140_v7 }
 0x868   :  { %v3211_v45 = vmul.f32 %v5565_v28, %v3181_v43  ;;  %v3262_v44 = vsel %vm50_vm0, %v3210_v27, 0.0  ;;  %v3194_v32 = vmul.f32 %v3170_v58, %v5863_v49  ;;  %v3195_v10 = vmul.f32 %v3171_v55, %v5864_v34 }
 0x869   :  { %v3393_v51 = vmax.f32 %v3381_v6, 0.0  ;;  %v3293_v17 = vadd.f32 %v3292_v3, %v3291_v1  ;;  %v3165_v33 = vmul.f32 0.5, %v3141_v29  ;;  %v3188_v4 = vmul.f32 %v3164_v0, %v4408_v9 }
 0x86a   :  { %v3263_v53 = vsel %vm580_vm1, %v3211_v45, 0.0  ;;  %v3279_v61 = vadd.f32 %v3278_v23, %v3277_v22  ;;  %v3224_v60 = vmul.f32 %v5567_v2, %v3194_v32  ;;  %v3225_v1 = vmul.f32 %v5565_v28, %v3195_v10  ;;  %v3359_v45 = vpop.permute.xlu1 %3358 }
 0x86b   :  { %v3294_v52 = vrot.slane %v3293_v17, 2  ;;  %v3264_v35 = vadd.f32 %v3263_v53, %v3262_v44  ;;  %v3411_v59 = vmul.f32 %v5644_v41, %v3393_v51  ;;  %v3189_v49 = vmul.f32 %v3165_v33, %v5865_v19 }
 0x86c   :  { %v3218_v34 = vmul.f32 %v5567_v2, %v3188_v4  ;;  %v3288_v62 = vadd.f32 %v3287_v42, %v3286_v47  ;;  %v3325_v50 = vsel %vm50_vm0, %v3224_v60, 0.0  ;;  %v3395_v9 = vmax.f32 %v5661_v30, 0.0 }
 0x86d   :  { %v3295_v13 = vadd.f32 %v3294_v52, %v3293_v17  ;;  %v3265_v15 = vrot.slane %v3264_v35, 4  ;;  %v3324_v22 = vadd.f32 %v3323_v5, %v3322_v39  ;;  %v3326_v23 = vsel %vm580_vm1, %v3225_v1, 0.0 }
 0x86e   :  { %v3219_v43 = vmul.f32 %v5565_v28, %v3189_v49  ;;  %v3327_v18 = vadd.f32 %v3326_v23, %v3325_v50  ;;  %v3298_v6 = vsel %vm50_vm0, %v3218_v34, 0.0  ;;  %v3389_v19 = vadd.f32 %v5640_v46, %v3315_v38 }
 0x86f   :  { %v3296_v27 = vrot.slane %v3295_v13, 1  ;;  %v3266_v7 = vadd.f32 %v3265_v15, %v3264_v35  ;;  %v3385_v2 = vadd.f32 %v3355_v21, %v3279_v61  ;;  %v3427_v47 = vadd.f32 %v5650_v56, %v3411_v59 }
 0x870   :  { %v3299_v42 = vsel %vm580_vm1, %v3219_v43, 0.0  ;;  %v3386_v3 = vadd.f32 %v3357_v11, %v3288_v62  ;;  %v3328_v39 = vrot.slane %v3327_v18, 4  ;;  %v3428_v55 = vadd.f32 %v5650_v56, %v5656_v54 }
 0x871   :  { %v3297_v58 = vadd.f32 %v3296_v27, %v3295_v13  ;;  %v3267_v30 = vrot.slane %v3266_v7, 2  ;;  %v3410_v28 = vmul.f32 %v5644_v41, %v3392_v57  ;;  %v3300_v44 = vadd.f32 %v3299_v42, %v3298_v6 }
 0x872   :  { %v3390_v46 = vadd.f32 %v5652_v16, %v3324_v22  ;;  %v3329_v29 = vadd.f32 %v3328_v39, %v3327_v18  ;;  %v3413_v0 = vmul.f32 %v5644_v41, %v3395_v9  ;;  %v3397_v51 = vmax.f32 %v3385_v2, 0.0  ;;  %v3367_v18 = vpop.permute.xlu1 %3366 }
 0x873   :  { %v3387_v38 = vadd.f32 %v3359_v45, %v3297_v58  ;;  %v3268_v21 = vadd.f32 %v3267_v30, %v3266_v7  ;;  %v3439_v17 = vadd.f32 %v3427_v47, %v5380_v63  ;;  %v3301_v32 = vrot.slane %v3300_v44, 4  ;;  %v3353_v63 = vpop.permute.xlu0 %3352 }
 0x874   :  { %v3401_v10 = vmax.f32 %v3389_v19, 0.0  ;;  %v3398_v5 = vmax.f32 %v3386_v3, 0.0  ;;  %v3330_v53 = vrot.slane %v3329_v29, 2  ;;  %v3426_v8 = vadd.f32 %v5650_v56, %v3410_v28 }
 0x875   :  { %v3269_v54 = vrot.slane %v3268_v21, 1  ;;  %v3399_v57 = vmax.f32 %v3387_v38, 0.0  ;;  %v3302_v33 = vadd.f32 %v3301_v32, %v3300_v44  ;;  %v3440_v4 = vadd.f32 %v3428_v55, %v5400_v40 }
 0x876   :  { %v3402_v16 = vmax.f32 %v3390_v46, 0.0  ;;  %v3331_v52 = vadd.f32 %v3330_v53, %v3329_v29  ;;  %v3429_v35 = vadd.f32 %v5650_v56, %v3413_v0  ;;  %v3415_v60 = vmul.f32 %v5644_v41, %v3397_v51 }
 0x877   :  { %v3270_v61 = vadd.f32 %v3269_v54, %v3268_v21  ;;  %v3462_v11 = vrot.slane %v3439_v17, 7  ;;  %v3303_v59 = vrot.slane %v3302_v33, 2  ;;  %v3419_v1 = vmul.f32 %v5644_v41, %v3401_v10  ;;  %v3361_v55 = vpop.permute.xlu0 %3360 }
 0x878   :  { %v3416_v49 = vmul.f32 %v5644_v41, %v3398_v5  ;;  %v3332_v62 = vrot.slane %v3331_v52, 1  ;;  %v3438_v13 = vadd.f32 %v3426_v8, %v5411_v12  ;;  %v3417_v40 = vmul.f32 %v5644_v41, %v3399_v57 }
 0x879   :  { %v3384_v34 = vadd.f32 %v3353_v63, %v3270_v61  ;;  %v3304_v15 = vadd.f32 %v3303_v59, %v3302_v33  ;;  %v3464_v50 = vrot.slane %v3440_v4, 6  ;;  %v3420_v9 = vmul.f32 %v5644_v41, %v3402_v16 }
 0x87a   :  { %v3333_v23 = vadd.f32 %v3332_v62, %v3331_v52  ;;  %v3441_v43 = vadd.f32 %v3429_v35, %v5420_v24  ;;  %v3431_v27 = vadd.f32 %v5650_v56, %v3415_v60  ;;  %v3463_v7 = vsel %vm817_vm2, %v3462_v11, %v3438_v13  ;;  %v3578_v13 = vld [vmem:[%s5770_s7 + $0x8] sm:$0xff] }
 0x87b   :  { %v3396_v22 = vmax.f32 %v3384_v34, 0.0  ;;  %v3305_v6 = vrot.slane %v3304_v15, 1  ;;  %v3435_v19 = vadd.f32 %v5650_v56, %v3419_v1  ;;  %v3432_v12 = vadd.f32 %v5650_v56, %v3416_v49 }
 0x87c   :  { %v3391_v47 = vadd.f32 %v3367_v18, %v3333_v23  ;;  %v3433_v42 = vadd.f32 %v5650_v56, %v3417_v40  ;;  %v3436_v58 = vadd.f32 %v5650_v56, %v3420_v9  ;;  %v3465_v24 = vsel %vm820_vm3, %v3464_v50, %v3463_v7  ;;  %v3573_v23 = vld [vmem:[%s5769_s6 + $0x1] sm:$0x1] }
 0x87d   :  { %v3414_v2 = vmul.f32 %v5644_v41, %v3396_v22  ;;  %v3306_v3 = vadd.f32 %v3305_v6, %v3304_v15  ;;  %v3466_v28 = vrot.slane %v3441_v43, 5  ;;  %v3443_v45 = vadd.f32 %v3431_v27, %v5436_v14  ;;  %v3498_v15 = vld [vmem:[%s5769_s6] sm:$0x1]  ;;  %v3575_v27 = vld [vmem:[%s5769_s6 + $0x2] sm:$0x1] }
 0x87e   :  { %v3403_v39 = vmax.f32 %v3391_v47, 0.0  ;;  %v3447_v46 = vadd.f32 %v3435_v19, %v5454_v31  ;;  %v3444_v38 = vadd.f32 %v3432_v12, %v5439_v25  ;;  %v3445_v0 = vadd.f32 %v3433_v42, %v5450_v48  ;;  %v3579_v6 = vld [vmem:[#allocation2] sm:$0x1] }
 0x87f   :  { %v3430_v30 = vadd.f32 %v5650_v56, %v3414_v2  ;;  %v3388_v44 = vadd.f32 %v3361_v55, %v3306_v3  ;;  %v3467_v51 = vsel %vm823_vm4, %v3466_v28, %v3465_v24  ;;  %v3448_v32 = vadd.f32 %v3436_v58, %v5458_v20 }
 0x880   :  { %v3421_v29 = vmul.f32 %v5644_v41, %v3403_v39  ;;  %v3470_v14 = vrot.slane %v3443_v45, 3  ;;  %v3476_v31 = vrot.slane %v3447_v46, 7  ;;  %v3472_v53 = vrot.slane %v3444_v38, 2 }
 0x881   :  { %v3442_v21 = vadd.f32 %v3430_v30, %v5425_v36  ;;  %v3400_v17 = vmax.f32 %v3388_v44, 0.0  ;;  %v3474_v36 = vrot.slane %v3445_v0, 1  ;;  %v3478_v33 = vrot.slane %v3448_v32, 6 }
 0x882   :  { %v3437_v5 = vadd.f32 %v5650_v56, %v3421_v29 }
 0x883   :  { %v3468_v10 = vrot.slane %v3442_v21, 4  ;;  %v3418_v54 = vmul.f32 %v5644_v41, %v3400_v17 }
 0x884   :  { %v3449_v48 = vadd.f32 %v3437_v5, %v5466_v37 }
 0x885   :  { %v3469_v25 = vsel %vm826_vm5, %v3468_v10, %v3467_v51  ;;  %v3434_v57 = vadd.f32 %v5650_v56, %v3418_v54 }
 0x886   :  { %v3471_v8 = vsel %vm829_vm6, %v3470_v14, %v3469_v25  ;;  %v3480_v61 = vrot.slane %v3449_v48, 5 }
 0x887   :  { %v3473_v20 = vsel %vm832_vm7, %v3472_v53, %v3471_v8  ;;  %v3446_v16 = vadd.f32 %v3434_v57, %v5472_v26  ;;  %v3577_v26 = vld [vmem:[%s5770_s7] sm:$0xff]  ;;  %s4150_s7 = smov [#allocation3]  }
 0x888   :  { %v3475_v4 = vsel %vm835_vm8, %v3474_v36, %v3473_v20  ;;  %v3869_v40 = vpack.c.bf16 %v3578_v13, %v3577_v26  ;;  %s3662_s25 = sshll.u32 %s4150_s7, 4  ;;  %s3663_s25 = int_to_ptr.vmem [resolvable:$true] %s3662_s25 }
 0x889   :  { %v3477_v41 = vsel %vm817_vm2, %v3476_v31, %v3446_v16  ;;  %v3484_v35 = vsel %vm50_vm0, %v3475_v4, 0.0  ;;  %s4119_s26 = scalar_lea.vmem %s3663_s25, 16  ;;  %s4123_s29 = scalar_lea.vmem %s3663_s25, 32 }
 0x88a   :  { %v3479_v52 = vsel %vm820_vm3, %v3478_v33, %v3477_v41  ;;  %3870 = vmatpush3.bf16.msra.mxu0 %v3869_v40  ;;  %p4120_p0 = scmp.ne.s32.totalorder %s3663_s25, %s4119_s26  ;;  %p4124_p1 = scmp.lt.s32.totalorder %s3663_s25, %s3663_s25 }
 0x88b   :  { %v3481_v60 = vsel %vm823_vm4, %v3480_v61, %v3479_v52  ;;  %p4125_p2 = scmp.lt.s32.totalorder %s4123_s29, %s4119_s26 }
 0x88c   :  { %v3485_v37 = vsel %vm580_vm1, %v3481_v60, 0.0 }
 0x88d   :  { %v3486_v11 = vadd.f32 %v3485_v37, %v3484_v35  ;;  %p4126_p3 = por %p4125_p2, %p4124_p1 }
 0x88f   :  { %v3487_v56 = vrot.slane %v3486_v11, 4  ;;  %p4127_p4 = pnand %p4126_p3, %p4120_p0 }
 0x891   :  { %v3488_v63 = vadd.f32 %v3487_v56, %v3486_v11 }
 0x893   :  { %v3489_v59 = vrot.slane %v3488_v63, 2 }
 0x895   :  { %v3490_v1 = vadd.f32 %v3489_v59, %v3488_v63 }
 0x897   :  { %v3491_v49 = vrot.slane %v3490_v1, 1 }
 0x899   :  { %v3492_v34 = vadd.f32 %v3491_v49, %v3490_v1 }
 0x89b   :  { %v3493_v62 = vmul.f32 0.083333336, %v3492_v34 }
 0x89d   :  { %3813 = vmatmul.mubr.msk.f32.vlgmr.msra.gmra.mrb[4].mxu1 %vm50_vm0, %v3493_v62 }
 0x970   :  { %v3568_v50 = vpop.f32.mrb[4].mxu1 }
 0x971   :  { %v3569_v9 = vadd.f32 %v3568_v50, %v3498_v15  ;;  %v3814_v22 = vpop.f32.mrb[5].mxu1 }
 0x973   :  { %v3572_v43 = vmax.f32 %v3569_v9, 0.0 }
 0x975   :  { %v3574_v7 = vmul.f32 %v3573_v23, %v3572_v43 }
 0x977   :  { %v3576_v18 = vadd.f32 %v3575_v27, %v3574_v7 }
 0x979   :  { %3820 = vmatmul.mubr.msk.f32.vlgmr.msra.gmra.mrb[6].mxu0 %vm3580_vm10, %v3576_v18 }
 0xa4c   :  { %v3650_v19 = vpop.f32.mrb[6].mxu0 }
 0xa4d   :  { %v3651_v12 = vadd.f32 %v3650_v19, %v3579_v6  ;;  %v3821_v2 = vpop.f32.mrb[7].mxu0 }
 0xa4f   :  { %3655 = vst.msk [vmem:[#allocation3] sm:$0x1] %vm3654_vm11, %v3651_v12 }
 0xa50   :  { %4130 = shalt.err (!%p4127_p4)
}
 0xa51   :  { %s4131_s2 = scalar_lea.hbm %s5772_s9, 16 }
 0xa52   :  { %p4132_p5 = scmp.ne.s32.totalorder %s5772_s9, %s4131_s2  ;;  %p4135_p6 = scmp.lt.u32.totalorder %s4131_s2, %s5772_s9 }
 0xa54   :  { %p4137_p7 = pnand %p4135_p6, %p4132_p5 }
 0xa56   :  { %4140 = shalt.err (!%p4137_p7)
}
 0xa57   :  { %3665 = dma.vmem_to_hbm [thread:$0]  %s3663_s25, 16, %s5772_s9, [#allocation4]  }
 0xa58   :  { %4141 = dma.done.wait [#allocation4], 16  }
 0xa59   :  { %4142 = vsyncadd [#allocation4], 4294967280 }
 0xa5a   :  { %3669 = vsyncpa [#allocation4], 1 }

</bundles_post_ra>
